<compile_context>
chip_gen: v7x
topology: tpu7x:2x2x1
jax: 0.10.0
libtpu: 0.0.40
codegen_flags: <defaults>
</compile_context>

<pallas_src>
import functools
import math

import jax
import jax.numpy as jnp
from jax.experimental import pallas as pl
from jax.experimental.pallas import tpu as pltpu


def _tcn_kernel(q_ref, map_ref, mask_ref, colmask_ref,
                cw_ref, cb_ref, crw_ref, crb_ref,
                w1_ref, b1_ref, w2_ref, b2_ref, w3_ref, b3_ref,
                pw_ref, out_ref, pad_ref, *, H, W, C, KS, PS, OFFP):
    HW = H * W
    f32 = jnp.float32
    bf16 = jnp.bfloat16

    mask = mask_ref[0]                                  # (1, HW) f32
    q = q_ref[0]                                        # (C, 1)  f32

    # 1x1 conv on map2d (bf16 MXU, f32 accum), then * mask
    m = jnp.dot(cw_ref[...], map_ref[0],
                preferred_element_type=f32) + cb_ref[...]      # (C, HW)
    m = m * mask

    # F.normalize(q * m, p=2, dim=channel) * mask   (rsqrt -> EUP)
    x = q * m
    ssq = jnp.sum(x * x, axis=0, keepdims=True)         # (1, HW)
    f = x * jax.lax.rsqrt(jnp.maximum(ssq, 1e-24)) * mask

    # Zero only the pad strips the conv windows can ever read (aligned stores);
    # cheap enough to redo each grid step, so it stays correct when the batch
    # axis is sharded across TensorCores.
    zpad = jnp.zeros((C, OFFP), f32)
    pad_ref[:, pl.ds(0, OFFP)] = zpad
    pad_ref[:, pl.ds(OFFP + HW, OFFP)] = zpad

    def conv_kxk(x_in, wg_ref, b_ref):
        # write current feature map into the centre (lane-aligned store)
        pad_ref[:, pl.ds(OFFP, HW)] = x_in
        acc = jnp.zeros((C, HW), f32)
        for kx in range(KS):                             # unrolled at trace time
            dx = kx - PS
            # stack the KS row-shifted windows along the input-channel axis
            parts = [pad_ref[:, pl.ds(OFFP + (ky - PS) * W + dx, HW)]
                     for ky in range(KS)]
            xg = jnp.concatenate(parts, axis=0).astype(bf16)   # (KS*C, HW)
            contrib = jnp.dot(wg_ref[kx], xg, preferred_element_type=f32)
            acc = acc + contrib * colmask_ref[kx]        # kill column wrap-around
        return acc + b_ref[...]

    h = jnp.maximum(conv_kxk(f, w1_ref, b1_ref), 0.0) * mask
    h = jnp.maximum(conv_kxk(h, w2_ref, b2_ref), 0.0) * mask
    h = jnp.maximum(conv_kxk(h, w3_ref, b3_ref), 0.0) * mask

    res = jnp.maximum(
        jnp.dot(crw_ref[...], f.astype(bf16), preferred_element_type=f32)
        + crb_ref[...], 0.0) * mask
    out = h + res                                        # (C, HW) f32

    # scores = pred_weight . out  -> lane-dense (1, HW) row via one matmul
    out_ref[0] = jnp.dot(pw_ref[...], out.astype(bf16),
                         preferred_element_type=f32)


def tcn_pallas(qry, map2d, mask, params, ks, ps):
    """qry: (B, C) f32, map2d: (B, C, H, W) f32 (NCHW), mask: (B, 1, H, W) f32."""
    B, C, H, W = map2d.shape
    # Kernel assumes 'same' convolution (ks odd, ps == (ks-1)//2), as used by the module.
    assert ks % 2 == 1 and ps == (ks - 1) // 2, "only 'same' conv supported"
    HW = H * W
    OFF = ps * W + ps                       # max |flat shift| of any conv tap
    OFFP = max(128, ((OFF + 127) // 128) * 128)   # 128-lane-aligned pad margin

    # fc(qry) hoisted out of the kernel (one small XLA matmul for all B)
    q = (qry @ params["fc_w"].T + params["fc_b"]).astype(jnp.float32)[:, :, None]
    map_r = map2d.reshape(B, C, HW).astype(jnp.bfloat16)
    mask_r = mask.reshape(B, 1, HW).astype(jnp.float32)

    # column-validity masks per horizontal tap (handle W wrap of the flattened layout)
    col = jnp.arange(HW, dtype=jnp.int32) % W
    colmask = jnp.stack(
        [((col + (kx - ps) >= 0) & (col + (kx - ps) < W)).astype(jnp.float32)
         for kx in range(ks)], axis=0)[:, None, :]          # (KS, 1, HW)

    def group_w(w):
        # OIHW (C, C, ks, ks) -> (KS, C, KS*C): for each kx, stack taps over ky
        return jnp.stack(
            [jnp.concatenate([w[:, :, ky, kx] for ky in range(ks)], axis=1)
             for kx in range(ks)], axis=0).astype(jnp.bfloat16)

    wg1, wg2, wg3 = group_w(params["w1"]), group_w(params["w2"]), group_w(params["w3"])
    b1 = params["b1"].reshape(C, 1).astype(jnp.float32)
    b2 = params["b2"].reshape(C, 1).astype(jnp.float32)
    b3 = params["b3"].reshape(C, 1).astype(jnp.float32)
    cw = params["conv_w"].astype(jnp.bfloat16)
    cb = params["conv_b"].reshape(C, 1).astype(jnp.float32)
    crw = params["conv_res_w"].astype(jnp.bfloat16)
    crb = params["conv_res_b"].reshape(C, 1).astype(jnp.float32)
    pw = params["pred_w"].astype(jnp.bfloat16)

    kern = functools.partial(_tcn_kernel, H=H, W=W, C=C, KS=ks, PS=ps, OFFP=OFFP)

    def full(shape):
        n = len(shape)
        return pl.BlockSpec(shape, lambda b, n=n: (0,) * n)

    grid_spec = pltpu.PrefetchScalarGridSpec(
        num_scalar_prefetch=0,
        grid=(B,),
        in_specs=[
            pl.BlockSpec((1, C, 1), lambda b: (b, 0, 0)),      # q = fc(qry)
            pl.BlockSpec((1, C, HW), lambda b: (b, 0, 0)),     # map2d (bf16)
            pl.BlockSpec((1, 1, HW), lambda b: (b, 0, 0)),     # mask
            full((ks, 1, HW)),                                 # column masks
            full((C, C)), full((C, 1)),                        # conv (1x1)
            full((C, C)), full((C, 1)),                        # conv_res (1x1)
            full((ks, C, ks * C)), full((C, 1)),               # conv2d_1
            full((ks, C, ks * C)), full((C, 1)),               # conv2d_2
            full((ks, C, ks * C)), full((C, 1)),               # conv2d_3
            full((1, C)),                                      # pred_weight
        ],
        out_specs=pl.BlockSpec((1, 1, HW), lambda b: (b, 0, 0)),
        scratch_shapes=[pltpu.VMEM((C, 2 * OFFP + HW), jnp.float32)],
    )

    out = pl.pallas_call(
        kern,
        out_shape=jax.ShapeDtypeStruct((B, 1, HW), jnp.float32),
        grid_spec=grid_spec,
        compiler_params=pltpu.CompilerParams(
            dimension_semantics=("parallel",)),
    )(q, map_r, mask_r, colmask,
      cw, cb, crw, crb,
      wg1, b1, wg2, b2, wg3, b3,
      pw)
    return out.reshape(B, H, W)


def tcn_reference(qry, map2d, mask, params, ks, ps):
    """Pure-JAX NCHW reference matching the PyTorch forward semantics."""
    q = qry @ params["fc_w"].T + params["fc_b"]                     # (B, C)
    x = (jnp.einsum("oi,bihw->bohw", params["conv_w"], map2d)
         + params["conv_b"][None, :, None, None]) * mask
    x = q[:, :, None, None] * x
    nrm = jnp.sqrt(jnp.sum(x * x, axis=1, keepdims=True))
    f = x / jnp.maximum(nrm, 1e-12) * mask

    def conv(z, w, b):
        o = jax.lax.conv_general_dilated(
            z, w, (1, 1), [(ps, ps), (ps, ps)],
            dimension_numbers=("NCHW", "OIHW", "NCHW"))
        return o + b[None, :, None, None]

    h = jnp.maximum(conv(f, params["w1"], params["b1"]), 0.0) * mask
    h = jnp.maximum(conv(h, params["w2"], params["b2"]), 0.0) * mask
    h = jnp.maximum(conv(h, params["w3"], params["b3"]), 0.0) * mask
    res = jnp.maximum(
        jnp.einsum("oi,bihw->bohw", params["conv_res_w"], f)
        + params["conv_res_b"][None, :, None, None], 0.0) * mask
    out = h + res
    return jnp.einsum("bchw,c->bhw", out, params["pred_w"][0])


def init_params(key, C, ks):
    keys = jax.random.split(key, 13)
    u = lambda k, shape, s: jax.random.uniform(k, shape, jnp.float32, -s, s)
    s_lin = 1.0 / math.sqrt(C)
    s_cnv = 1.0 / math.sqrt(C * ks * ks)
    return {
        # Linear: y = x @ W.T + b with W (out, in), like nn.Linear
        "fc_w": u(keys[0], (C, C), s_lin), "fc_b": u(keys[1], (C,), s_lin),
        # 1x1 convs as (Cout, Cin)
        "conv_w": u(keys[2], (C, C), s_lin), "conv_b": u(keys[3], (C,), s_lin),
        "conv_res_w": u(keys[4], (C, C), s_lin), "conv_res_b": u(keys[5], (C,), s_lin),
        # kxk convs stored OIHW like PyTorch: (Cout, Cin, ks, ks)
        "w1": u(keys[6], (C, C, ks, ks), s_cnv), "b1": u(keys[7], (C,), s_cnv),
        "w2": u(keys[8], (C, C, ks, ks), s_cnv), "b2": u(keys[9], (C,), s_cnv),
        "w3": u(keys[10], (C, C, ks, ks), s_cnv), "b3": u(keys[11], (C,), s_cnv),
        # pred_weight (1, C), uniform(-1/sqrt(C), 1/sqrt(C)) like reset_parameters
        "pred_w": u(keys[12], (1, C), s_lin),
    }


if __name__ == "__main__":
    key = jax.random.PRNGKey(0)
    B, C, H, W = 2, 32, 16, 16          # batch, hidden_size, 2D map size
    ks, ps = 3, 1                        # 'same' convolution

    k1, k2, k3, kp = jax.random.split(key, 4)
    qry = jax.random.normal(k1, (B, C), jnp.float32)
    map2d = jax.random.normal(k2, (B, C, H, W), jnp.float32)   # NCHW like PyTorch
    mask = (jax.random.uniform(k3, (B, 1, H, W)) > 0.3).astype(jnp.float32)
    params = init_params(kp, C, ks)

    out = jax.block_until_ready(tcn_pallas(qry, map2d, mask, params, ks, ps))
    assert out.shape == (B, H, W)

    ref = tcn_reference(qry, map2d, mask, params, ks, ps)
    max_err = float(jnp.max(jnp.abs(out - ref)))
    assert jnp.allclose(out, ref, atol=3e-2, rtol=3e-2), f"max abs err {max_err}"

    print("KERNEL_OK")
</pallas_src>

<mosaic_0001>
module attributes {stable_mosaic.version = 11 : i64} {
  func.func @_tcn_kernel(%arg0: i32, %arg1: memref<1x32x1xf32, #tpu.memory_space<vmem>>, %arg2: memref<1x32x256xbf16, #tpu.memory_space<vmem>>, %arg3: memref<1x1x256xf32, #tpu.memory_space<vmem>>, %arg4: memref<3x1x256xf32, #tpu.memory_space<vmem>>, %arg5: memref<32x32xbf16, #tpu.memory_space<vmem>>, %arg6: memref<32x1xf32, #tpu.memory_space<vmem>>, %arg7: memref<32x32xbf16, #tpu.memory_space<vmem>>, %arg8: memref<32x1xf32, #tpu.memory_space<vmem>>, %arg9: memref<3x32x96xbf16, #tpu.memory_space<vmem>>, %arg10: memref<32x1xf32, #tpu.memory_space<vmem>>, %arg11: memref<3x32x96xbf16, #tpu.memory_space<vmem>>, %arg12: memref<32x1xf32, #tpu.memory_space<vmem>>, %arg13: memref<3x32x96xbf16, #tpu.memory_space<vmem>>, %arg14: memref<32x1xf32, #tpu.memory_space<vmem>>, %arg15: memref<1x32xbf16, #tpu.memory_space<vmem>>, %arg16: memref<1x1x256xf32, #tpu.memory_space<vmem>>, %arg17: memref<32x512xf32, #tpu.memory_space<vmem>>) attributes {dimension_semantics = [#tpu.dimension_semantics<parallel>], iteration_bounds = array<i64: 2>, scalar_prefetch = 0 : i64, scratch_operands = 1 : i64, tpu.core_type = #tpu.core_type<tc>, window_params = [{transform_indices = @transform_0, window_bounds = array<i64: 1, 32, 1>}, {transform_indices = @transform_1, window_bounds = array<i64: 1, 32, 256>}, {transform_indices = @transform_2, window_bounds = array<i64: 1, 1, 256>}, {pipeline_mode = #tpu.pipeline_mode<synchronous>, transform_indices = @transform_3, window_bounds = array<i64: 3, 1, 256>}, {pipeline_mode = #tpu.pipeline_mode<synchronous>, transform_indices = @transform_4, window_bounds = array<i64: 32, 32>}, {pipeline_mode = #tpu.pipeline_mode<synchronous>, transform_indices = @transform_5, window_bounds = array<i64: 32, 1>}, {pipeline_mode = #tpu.pipeline_mode<synchronous>, transform_indices = @transform_6, window_bounds = array<i64: 32, 32>}, {pipeline_mode = #tpu.pipeline_mode<synchronous>, transform_indices = @transform_7, window_bounds = array<i64: 32, 1>}, {pipeline_mode = #tpu.pipeline_mode<synchronous>, transform_indices = @transform_8, window_bounds = array<i64: 3, 32, 96>}, {pipeline_mode = #tpu.pipeline_mode<synchronous>, transform_indices = @transform_9, window_bounds = array<i64: 32, 1>}, {pipeline_mode = #tpu.pipeline_mode<synchronous>, transform_indices = @transform_10, window_bounds = array<i64: 3, 32, 96>}, {pipeline_mode = #tpu.pipeline_mode<synchronous>, transform_indices = @transform_11, window_bounds = array<i64: 32, 1>}, {pipeline_mode = #tpu.pipeline_mode<synchronous>, transform_indices = @transform_12, window_bounds = array<i64: 3, 32, 96>}, {pipeline_mode = #tpu.pipeline_mode<synchronous>, transform_indices = @transform_13, window_bounds = array<i64: 32, 1>}, {pipeline_mode = #tpu.pipeline_mode<synchronous>, transform_indices = @transform_14, window_bounds = array<i64: 1, 32>}, {transform_indices = @transform_15, window_bounds = array<i64: 1, 1, 256>}]} {
    %c0 = arith.constant 0 : index
    %c0_0 = arith.constant 0 : index
    %c0_1 = arith.constant 0 : index
    %0 = vector.load %arg3[%c0, %c0_0, %c0_1] : memref<1x1x256xf32, #tpu.memory_space<vmem>>, vector<1x1x256xf32>
    %1 = vector.shape_cast %0 : vector<1x1x256xf32> to vector<1x256xf32>
    %c0_2 = arith.constant 0 : index
    %c0_3 = arith.constant 0 : index
    %c0_4 = arith.constant 0 : index
    %2 = vector.load %arg1[%c0_2, %c0_3, %c0_4] : memref<1x32x1xf32, #tpu.memory_space<vmem>>, vector<1x32x1xf32>
    %3 = vector.shape_cast %2 : vector<1x32x1xf32> to vector<32x1xf32>
    %c0_5 = arith.constant 0 : index
    %c0_6 = arith.constant 0 : index
    %4 = vector.load %arg5[%c0_5, %c0_6] : memref<32x32xbf16, #tpu.memory_space<vmem>>, vector<32x32xbf16>
    %c0_7 = arith.constant 0 : index
    %c0_8 = arith.constant 0 : index
    %c0_9 = arith.constant 0 : index
    %5 = vector.load %arg2[%c0_7, %c0_8, %c0_9] : memref<1x32x256xbf16, #tpu.memory_space<vmem>>, vector<1x32x256xbf16>
    %6 = vector.shape_cast %5 : vector<1x32x256xbf16> to vector<32x256xbf16>
    %cst = arith.constant dense<0.000000e+00> : vector<32x256xf32>
    %7 = tpu.matmul %4, %6, %cst {dimension_numbers = #tpu.dot_dimension_numbers<[1], [0], [0], [1], [0, 0, 1, 1], [], []>} : vector<32x32xbf16>, vector<32x256xbf16>, vector<32x256xf32> -> vector<32x256xf32>
    %c0_10 = arith.constant 0 : index
    %c0_11 = arith.constant 0 : index
    %8 = vector.load %arg6[%c0_10, %c0_11] : memref<32x1xf32, #tpu.memory_space<vmem>>, vector<32x1xf32>
    %9 = vector.broadcast %8 : vector<32x1xf32> to vector<32x256xf32>
    %10 = arith.addf %7, %9 : vector<32x256xf32>
    %11 = vector.broadcast %1 : vector<1x256xf32> to vector<32x256xf32>
    %12 = arith.mulf %10, %11 : vector<32x256xf32>
    %13 = vector.broadcast %3 : vector<32x1xf32> to vector<32x256xf32>
    %14 = arith.mulf %13, %12 : vector<32x256xf32>
    %15 = arith.mulf %14, %14 : vector<32x256xf32>
    %cst_12 = arith.constant dense<0.000000e+00> : vector<256xf32>
    %16 = vector.multi_reduction <add>, %15, %cst_12 [0] : vector<32x256xf32> to vector<256xf32>
    %17 = vector.shape_cast %16 : vector<256xf32> to vector<1x256xf32>
    %cst_13 = arith.constant 1.000000e-24 : f32
    %18 = vector.broadcast %cst_13 : f32 to vector<1x256xf32>
    %19 = arith.maximumf %17, %18 : vector<1x256xf32>
    %20 = math.rsqrt %19 : vector<1x256xf32>
    %21 = vector.broadcast %20 : vector<1x256xf32> to vector<32x256xf32>
    %22 = arith.mulf %14, %21 : vector<32x256xf32>
    %23 = vector.broadcast %1 : vector<1x256xf32> to vector<32x256xf32>
    %24 = arith.mulf %22, %23 : vector<32x256xf32>
    %cst_14 = arith.constant 0.000000e+00 : f32
    %25 = vector.broadcast %cst_14 : f32 to vector<32x128xf32>
    %c0_15 = arith.constant 0 : index
    %c0_16 = arith.constant 0 : index
    %26 = vector.load %arg17[%c0_15, %c0_16] : memref<32x512xf32, #tpu.memory_space<vmem>>, vector<32x128xf32>
    tpu.vector_store %arg17[%c0_15, %c0_16], %25 {strides = array<i32>} : memref<32x512xf32, #tpu.memory_space<vmem>>, vector<32x128xf32>,
    %c0_17 = arith.constant 0 : index
    %c384 = arith.constant 384 : index
    %27 = vector.load %arg17[%c0_17, %c384] : memref<32x512xf32, #tpu.memory_space<vmem>>, vector<32x128xf32>
    tpu.vector_store %arg17[%c0_17, %c384], %25 {strides = array<i32>} : memref<32x512xf32, #tpu.memory_space<vmem>>, vector<32x128xf32>,
    %c0_18 = arith.constant 0 : index
    %c128 = arith.constant 128 : index
    %28 = vector.load %arg17[%c0_18, %c128] : memref<32x512xf32, #tpu.memory_space<vmem>>, vector<32x256xf32>
    tpu.vector_store %arg17[%c0_18, %c128], %24 {strides = array<i32>} : memref<32x512xf32, #tpu.memory_space<vmem>>, vector<32x256xf32>,
    %cst_19 = arith.constant 0.000000e+00 : f32
    %29 = vector.broadcast %cst_19 : f32 to vector<32x256xf32>
    %c0_20 = arith.constant 0 : index
    %c111 = arith.constant 111 : index
    %30 = vector.load %arg17[%c0_20, %c111] : memref<32x512xf32, #tpu.memory_space<vmem>>, vector<32x256xf32>
    %c0_21 = arith.constant 0 : index
    %c127 = arith.constant 127 : index
    %31 = vector.load %arg17[%c0_21, %c127] : memref<32x512xf32, #tpu.memory_space<vmem>>, vector<32x256xf32>
    %c0_22 = arith.constant 0 : index
    %c143 = arith.constant 143 : index
    %32 = vector.load %arg17[%c0_22, %c143] : memref<32x512xf32, #tpu.memory_space<vmem>>, vector<32x256xf32>
    %33 = tpu.concatenate %30, %31, %32 in 0 : vector<32x256xf32>, vector<32x256xf32>, vector<32x256xf32> -> vector<96x256xf32>
    %34 = arith.truncf %33 : vector<96x256xf32> to vector<96x256xbf16>
    %c0_23 = arith.constant 0 : index
    %c0_24 = arith.constant 0 : index
    %c0_25 = arith.constant 0 : index
    %35 = vector.load %arg9[%c0_23, %c0_24, %c0_25] : memref<3x32x96xbf16, #tpu.memory_space<vmem>>, vector<1x32x96xbf16>
    %36 = vector.shape_cast %35 : vector<1x32x96xbf16> to vector<32x96xbf16>
    %cst_26 = arith.constant dense<0.000000e+00> : vector<32x256xf32>
    %37 = tpu.matmul %36, %34, %cst_26 {dimension_numbers = #tpu.dot_dimension_numbers<[1], [0], [0], [1], [0, 0, 1, 1], [], []>} : vector<32x96xbf16>, vector<96x256xbf16>, vector<32x256xf32> -> vector<32x256xf32>
    %c0_27 = arith.constant 0 : index
    %c0_28 = arith.constant 0 : index
    %c0_29 = arith.constant 0 : index
    %38 = vector.load %arg4[%c0_27, %c0_28, %c0_29] : memref<3x1x256xf32, #tpu.memory_space<vmem>>, vector<1x1x256xf32>
    %39 = vector.shape_cast %38 : vector<1x1x256xf32> to vector<1x256xf32>
    %40 = vector.broadcast %39 : vector<1x256xf32> to vector<32x256xf32>
    %41 = arith.mulf %37, %40 : vector<32x256xf32>
    %42 = arith.addf %29, %41 : vector<32x256xf32>
    %c0_30 = arith.constant 0 : index
    %c112 = arith.constant 112 : index
    %43 = vector.load %arg17[%c0_30, %c112] : memref<32x512xf32, #tpu.memory_space<vmem>>, vector<32x256xf32>
    %c0_31 = arith.constant 0 : index
    %c128_32 = arith.constant 128 : index
    %44 = vector.load %arg17[%c0_31, %c128_32] : memref<32x512xf32, #tpu.memory_space<vmem>>, vector<32x256xf32>
    %c0_33 = arith.constant 0 : index
    %c144 = arith.constant 144 : index
    %45 = vector.load %arg17[%c0_33, %c144] : memref<32x512xf32, #tpu.memory_space<vmem>>, vector<32x256xf32>
    %46 = tpu.concatenate %43, %44, %45 in 0 : vector<32x256xf32>, vector<32x256xf32>, vector<32x256xf32> -> vector<96x256xf32>
    %47 = arith.truncf %46 : vector<96x256xf32> to vector<96x256xbf16>
    %c1 = arith.constant 1 : index
    %c0_34 = arith.constant 0 : index
    %c0_35 = arith.constant 0 : index
    %48 = vector.load %arg9[%c1, %c0_34, %c0_35] : memref<3x32x96xbf16, #tpu.memory_space<vmem>>, vector<1x32x96xbf16>
    %49 = vector.shape_cast %48 : vector<1x32x96xbf16> to vector<32x96xbf16>
    %cst_36 = arith.constant dense<0.000000e+00> : vector<32x256xf32>
    %50 = tpu.matmul %49, %47, %cst_36 {dimension_numbers = #tpu.dot_dimension_numbers<[1], [0], [0], [1], [0, 0, 1, 1], [], []>} : vector<32x96xbf16>, vector<96x256xbf16>, vector<32x256xf32> -> vector<32x256xf32>
    %c1_37 = arith.constant 1 : index
    %c0_38 = arith.constant 0 : index
    %c0_39 = arith.constant 0 : index
    %51 = vector.load %arg4[%c1_37, %c0_38, %c0_39] : memref<3x1x256xf32, #tpu.memory_space<vmem>>, vector<1x1x256xf32>
    %52 = vector.shape_cast %51 : vector<1x1x256xf32> to vector<1x256xf32>
    %53 = vector.broadcast %52 : vector<1x256xf32> to vector<32x256xf32>
    %54 = arith.mulf %50, %53 : vector<32x256xf32>
    %55 = arith.addf %42, %54 : vector<32x256xf32>
    %c0_40 = arith.constant 0 : index
    %c113 = arith.constant 113 : index
    %56 = vector.load %arg17[%c0_40, %c113] : memref<32x512xf32, #tpu.memory_space<vmem>>, vector<32x256xf32>
    %c0_41 = arith.constant 0 : index
    %c129 = arith.constant 129 : index
    %57 = vector.load %arg17[%c0_41, %c129] : memref<32x512xf32, #tpu.memory_space<vmem>>, vector<32x256xf32>
    %c0_42 = arith.constant 0 : index
    %c145 = arith.constant 145 : index
    %58 = vector.load %arg17[%c0_42, %c145] : memref<32x512xf32, #tpu.memory_space<vmem>>, vector<32x256xf32>
    %59 = tpu.concatenate %56, %57, %58 in 0 : vector<32x256xf32>, vector<32x256xf32>, vector<32x256xf32> -> vector<96x256xf32>
    %60 = arith.truncf %59 : vector<96x256xf32> to vector<96x256xbf16>
    %c2 = arith.constant 2 : index
    %c0_43 = arith.constant 0 : index
    %c0_44 = arith.constant 0 : index
    %61 = vector.load %arg9[%c2, %c0_43, %c0_44] : memref<3x32x96xbf16, #tpu.memory_space<vmem>>, vector<1x32x96xbf16>
    %62 = vector.shape_cast %61 : vector<1x32x96xbf16> to vector<32x96xbf16>
    %cst_45 = arith.constant dense<0.000000e+00> : vector<32x256xf32>
    %63 = tpu.matmul %62, %60, %cst_45 {dimension_numbers = #tpu.dot_dimension_numbers<[1], [0], [0], [1], [0, 0, 1, 1], [], []>} : vector<32x96xbf16>, vector<96x256xbf16>, vector<32x256xf32> -> vector<32x256xf32>
    %c2_46 = arith.constant 2 : index
    %c0_47 = arith.constant 0 : index
    %c0_48 = arith.constant 0 : index
    %64 = vector.load %arg4[%c2_46, %c0_47, %c0_48] : memref<3x1x256xf32, #tpu.memory_space<vmem>>, vector<1x1x256xf32>
    %65 = vector.shape_cast %64 : vector<1x1x256xf32> to vector<1x256xf32>
    %66 = vector.broadcast %65 : vector<1x256xf32> to vector<32x256xf32>
    %67 = arith.mulf %63, %66 : vector<32x256xf32>
    %68 = arith.addf %55, %67 : vector<32x256xf32>
    %c0_49 = arith.constant 0 : index
    %c0_50 = arith.constant 0 : index
    %69 = vector.load %arg10[%c0_49, %c0_50] : memref<32x1xf32, #tpu.memory_space<vmem>>, vector<32x1xf32>
    %70 = vector.broadcast %69 : vector<32x1xf32> to vector<32x256xf32>
    %71 = arith.addf %68, %70 : vector<32x256xf32>
    %cst_51 = arith.constant 0.000000e+00 : f32
    %72 = vector.broadcast %cst_51 : f32 to vector<32x256xf32>
    %73 = arith.maximumf %71, %72 : vector<32x256xf32>
    %74 = vector.broadcast %1 : vector<1x256xf32> to vector<32x256xf32>
    %75 = arith.mulf %73, %74 : vector<32x256xf32>
    %c0_52 = arith.constant 0 : index
    %c128_53 = arith.constant 128 : index
    %76 = vector.load %arg17[%c0_52, %c128_53] : memref<32x512xf32, #tpu.memory_space<vmem>>, vector<32x256xf32>
    tpu.vector_store %arg17[%c0_52, %c128_53], %75 {strides = array<i32>} : memref<32x512xf32, #tpu.memory_space<vmem>>, vector<32x256xf32>,
    %cst_54 = arith.constant 0.000000e+00 : f32
    %77 = vector.broadcast %cst_54 : f32 to vector<32x256xf32>
    %c0_55 = arith.constant 0 : index
    %c111_56 = arith.constant 111 : index
    %78 = vector.load %arg17[%c0_55, %c111_56] : memref<32x512xf32, #tpu.memory_space<vmem>>, vector<32x256xf32>
    %c0_57 = arith.constant 0 : index
    %c127_58 = arith.constant 127 : index
    %79 = vector.load %arg17[%c0_57, %c127_58] : memref<32x512xf32, #tpu.memory_space<vmem>>, vector<32x256xf32>
    %c0_59 = arith.constant 0 : index
    %c143_60 = arith.constant 143 : index
    %80 = vector.load %arg17[%c0_59, %c143_60] : memref<32x512xf32, #tpu.memory_space<vmem>>, vector<32x256xf32>
    %81 = tpu.concatenate %78, %79, %80 in 0 : vector<32x256xf32>, vector<32x256xf32>, vector<32x256xf32> -> vector<96x256xf32>
    %82 = arith.truncf %81 : vector<96x256xf32> to vector<96x256xbf16>
    %c0_61 = arith.constant 0 : index
    %c0_62 = arith.constant 0 : index
    %c0_63 = arith.constant 0 : index
    %83 = vector.load %arg11[%c0_61, %c0_62, %c0_63] : memref<3x32x96xbf16, #tpu.memory_space<vmem>>, vector<1x32x96xbf16>
    %84 = vector.shape_cast %83 : vector<1x32x96xbf16> to vector<32x96xbf16>
    %cst_64 = arith.constant dense<0.000000e+00> : vector<32x256xf32>
    %85 = tpu.matmul %84, %82, %cst_64 {dimension_numbers = #tpu.dot_dimension_numbers<[1], [0], [0], [1], [0, 0, 1, 1], [], []>} : vector<32x96xbf16>, vector<96x256xbf16>, vector<32x256xf32> -> vector<32x256xf32>
    %c0_65 = arith.constant 0 : index
    %c0_66 = arith.constant 0 : index
    %c0_67 = arith.constant 0 : index
    %86 = vector.load %arg4[%c0_65, %c0_66, %c0_67] : memref<3x1x256xf32, #tpu.memory_space<vmem>>, vector<1x1x256xf32>
    %87 = vector.shape_cast %86 : vector<1x1x256xf32> to vector<1x256xf32>
    %88 = vector.broadcast %87 : vector<1x256xf32> to vector<32x256xf32>
    %89 = arith.mulf %85, %88 : vector<32x256xf32>
    %90 = arith.addf %77, %89 : vector<32x256xf32>
    %c0_68 = arith.constant 0 : index
    %c112_69 = arith.constant 112 : index
    %91 = vector.load %arg17[%c0_68, %c112_69] : memref<32x512xf32, #tpu.memory_space<vmem>>, vector<32x256xf32>
    %c0_70 = arith.constant 0 : index
    %c128_71 = arith.constant 128 : index
    %92 = vector.load %arg17[%c0_70, %c128_71] : memref<32x512xf32, #tpu.memory_space<vmem>>, vector<32x256xf32>
    %c0_72 = arith.constant 0 : index
    %c144_73 = arith.constant 144 : index
    %93 = vector.load %arg17[%c0_72, %c144_73] : memref<32x512xf32, #tpu.memory_space<vmem>>, vector<32x256xf32>
    %94 = tpu.concatenate %91, %92, %93 in 0 : vector<32x256xf32>, vector<32x256xf32>, vector<32x256xf32> -> vector<96x256xf32>
    %95 = arith.truncf %94 : vector<96x256xf32> to vector<96x256xbf16>
    %c1_74 = arith.constant 1 : index
    %c0_75 = arith.constant 0 : index
    %c0_76 = arith.constant 0 : index
    %96 = vector.load %arg11[%c1_74, %c0_75, %c0_76] : memref<3x32x96xbf16, #tpu.memory_space<vmem>>, vector<1x32x96xbf16>
    %97 = vector.shape_cast %96 : vector<1x32x96xbf16> to vector<32x96xbf16>
    %cst_77 = arith.constant dense<0.000000e+00> : vector<32x256xf32>
    %98 = tpu.matmul %97, %95, %cst_77 {dimension_numbers = #tpu.dot_dimension_numbers<[1], [0], [0], [1], [0, 0, 1, 1], [], []>} : vector<32x96xbf16>, vector<96x256xbf16>, vector<32x256xf32> -> vector<32x256xf32>
    %c1_78 = arith.constant 1 : index
    %c0_79 = arith.constant 0 : index
    %c0_80 = arith.constant 0 : index
    %99 = vector.load %arg4[%c1_78, %c0_79, %c0_80] : memref<3x1x256xf32, #tpu.memory_space<vmem>>, vector<1x1x256xf32>
    %100 = vector.shape_cast %99 : vector<1x1x256xf32> to vector<1x256xf32>
    %101 = vector.broadcast %100 : vector<1x256xf32> to vector<32x256xf32>
    %102 = arith.mulf %98, %101 : vector<32x256xf32>
    %103 = arith.addf %90, %102 : vector<32x256xf32>
    %c0_81 = arith.constant 0 : index
    %c113_82 = arith.constant 113 : index
    %104 = vector.load %arg17[%c0_81, %c113_82] : memref<32x512xf32, #tpu.memory_space<vmem>>, vector<32x256xf32>
    %c0_83 = arith.constant 0 : index
    %c129_84 = arith.constant 129 : index
    %105 = vector.load %arg17[%c0_83, %c129_84] : memref<32x512xf32, #tpu.memory_space<vmem>>, vector<32x256xf32>
    %c0_85 = arith.constant 0 : index
    %c145_86 = arith.constant 145 : index
    %106 = vector.load %arg17[%c0_85, %c145_86] : memref<32x512xf32, #tpu.memory_space<vmem>>, vector<32x256xf32>
    %107 = tpu.concatenate %104, %105, %106 in 0 : vector<32x256xf32>, vector<32x256xf32>, vector<32x256xf32> -> vector<96x256xf32>
    %108 = arith.truncf %107 : vector<96x256xf32> to vector<96x256xbf16>
    %c2_87 = arith.constant 2 : index
    %c0_88 = arith.constant 0 : index
    %c0_89 = arith.constant 0 : index
    %109 = vector.load %arg11[%c2_87, %c0_88, %c0_89] : memref<3x32x96xbf16, #tpu.memory_space<vmem>>, vector<1x32x96xbf16>
    %110 = vector.shape_cast %109 : vector<1x32x96xbf16> to vector<32x96xbf16>
    %cst_90 = arith.constant dense<0.000000e+00> : vector<32x256xf32>
    %111 = tpu.matmul %110, %108, %cst_90 {dimension_numbers = #tpu.dot_dimension_numbers<[1], [0], [0], [1], [0, 0, 1, 1], [], []>} : vector<32x96xbf16>, vector<96x256xbf16>, vector<32x256xf32> -> vector<32x256xf32>
    %c2_91 = arith.constant 2 : index
    %c0_92 = arith.constant 0 : index
    %c0_93 = arith.constant 0 : index
    %112 = vector.load %arg4[%c2_91, %c0_92, %c0_93] : memref<3x1x256xf32, #tpu.memory_space<vmem>>, vector<1x1x256xf32>
    %113 = vector.shape_cast %112 : vector<1x1x256xf32> to vector<1x256xf32>
    %114 = vector.broadcast %113 : vector<1x256xf32> to vector<32x256xf32>
    %115 = arith.mulf %111, %114 : vector<32x256xf32>
    %116 = arith.addf %103, %115 : vector<32x256xf32>
    %c0_94 = arith.constant 0 : index
    %c0_95 = arith.constant 0 : index
    %117 = vector.load %arg12[%c0_94, %c0_95] : memref<32x1xf32, #tpu.memory_space<vmem>>, vector<32x1xf32>
    %118 = vector.broadcast %117 : vector<32x1xf32> to vector<32x256xf32>
    %119 = arith.addf %116, %118 : vector<32x256xf32>
    %cst_96 = arith.constant 0.000000e+00 : f32
    %120 = vector.broadcast %cst_96 : f32 to vector<32x256xf32>
    %121 = arith.maximumf %119, %120 : vector<32x256xf32>
    %122 = vector.broadcast %1 : vector<1x256xf32> to vector<32x256xf32>
    %123 = arith.mulf %121, %122 : vector<32x256xf32>
    %c0_97 = arith.constant 0 : index
    %c128_98 = arith.constant 128 : index
    %124 = vector.load %arg17[%c0_97, %c128_98] : memref<32x512xf32, #tpu.memory_space<vmem>>, vector<32x256xf32>
    tpu.vector_store %arg17[%c0_97, %c128_98], %123 {strides = array<i32>} : memref<32x512xf32, #tpu.memory_space<vmem>>, vector<32x256xf32>,
    %cst_99 = arith.constant 0.000000e+00 : f32
    %125 = vector.broadcast %cst_99 : f32 to vector<32x256xf32>
    %c0_100 = arith.constant 0 : index
    %c111_101 = arith.constant 111 : index
    %126 = vector.load %arg17[%c0_100, %c111_101] : memref<32x512xf32, #tpu.memory_space<vmem>>, vector<32x256xf32>
    %c0_102 = arith.constant 0 : index
    %c127_103 = arith.constant 127 : index
    %127 = vector.load %arg17[%c0_102, %c127_103] : memref<32x512xf32, #tpu.memory_space<vmem>>, vector<32x256xf32>
    %c0_104 = arith.constant 0 : index
    %c143_105 = arith.constant 143 : index
    %128 = vector.load %arg17[%c0_104, %c143_105] : memref<32x512xf32, #tpu.memory_space<vmem>>, vector<32x256xf32>
    %129 = tpu.concatenate %126, %127, %128 in 0 : vector<32x256xf32>, vector<32x256xf32>, vector<32x256xf32> -> vector<96x256xf32>
    %130 = arith.truncf %129 : vector<96x256xf32> to vector<96x256xbf16>
    %c0_106 = arith.constant 0 : index
    %c0_107 = arith.constant 0 : index
    %c0_108 = arith.constant 0 : index
    %131 = vector.load %arg13[%c0_106, %c0_107, %c0_108] : memref<3x32x96xbf16, #tpu.memory_space<vmem>>, vector<1x32x96xbf16>
    %132 = vector.shape_cast %131 : vector<1x32x96xbf16> to vector<32x96xbf16>
    %cst_109 = arith.constant dense<0.000000e+00> : vector<32x256xf32>
    %133 = tpu.matmul %132, %130, %cst_109 {dimension_numbers = #tpu.dot_dimension_numbers<[1], [0], [0], [1], [0, 0, 1, 1], [], []>} : vector<32x96xbf16>, vector<96x256xbf16>, vector<32x256xf32> -> vector<32x256xf32>
    %c0_110 = arith.constant 0 : index
    %c0_111 = arith.constant 0 : index
    %c0_112 = arith.constant 0 : index
    %134 = vector.load %arg4[%c0_110, %c0_111, %c0_112] : memref<3x1x256xf32, #tpu.memory_space<vmem>>, vector<1x1x256xf32>
    %135 = vector.shape_cast %134 : vector<1x1x256xf32> to vector<1x256xf32>
    %136 = vector.broadcast %135 : vector<1x256xf32> to vector<32x256xf32>
    %137 = arith.mulf %133, %136 : vector<32x256xf32>
    %138 = arith.addf %125, %137 : vector<32x256xf32>
    %c0_113 = arith.constant 0 : index
    %c112_114 = arith.constant 112 : index
    %139 = vector.load %arg17[%c0_113, %c112_114] : memref<32x512xf32, #tpu.memory_space<vmem>>, vector<32x256xf32>
    %c0_115 = arith.constant 0 : index
    %c128_116 = arith.constant 128 : index
    %140 = vector.load %arg17[%c0_115, %c128_116] : memref<32x512xf32, #tpu.memory_space<vmem>>, vector<32x256xf32>
    %c0_117 = arith.constant 0 : index
    %c144_118 = arith.constant 144 : index
    %141 = vector.load %arg17[%c0_117, %c144_118] : memref<32x512xf32, #tpu.memory_space<vmem>>, vector<32x256xf32>
    %142 = tpu.concatenate %139, %140, %141 in 0 : vector<32x256xf32>, vector<32x256xf32>, vector<32x256xf32> -> vector<96x256xf32>
    %143 = arith.truncf %142 : vector<96x256xf32> to vector<96x256xbf16>
    %c1_119 = arith.constant 1 : index
    %c0_120 = arith.constant 0 : index
    %c0_121 = arith.constant 0 : index
    %144 = vector.load %arg13[%c1_119, %c0_120, %c0_121] : memref<3x32x96xbf16, #tpu.memory_space<vmem>>, vector<1x32x96xbf16>
    %145 = vector.shape_cast %144 : vector<1x32x96xbf16> to vector<32x96xbf16>
    %cst_122 = arith.constant dense<0.000000e+00> : vector<32x256xf32>
    %146 = tpu.matmul %145, %143, %cst_122 {dimension_numbers = #tpu.dot_dimension_numbers<[1], [0], [0], [1], [0, 0, 1, 1], [], []>} : vector<32x96xbf16>, vector<96x256xbf16>, vector<32x256xf32> -> vector<32x256xf32>
    %c1_123 = arith.constant 1 : index
    %c0_124 = arith.constant 0 : index
    %c0_125 = arith.constant 0 : index
    %147 = vector.load %arg4[%c1_123, %c0_124, %c0_125] : memref<3x1x256xf32, #tpu.memory_space<vmem>>, vector<1x1x256xf32>
    %148 = vector.shape_cast %147 : vector<1x1x256xf32> to vector<1x256xf32>
    %149 = vector.broadcast %148 : vector<1x256xf32> to vector<32x256xf32>
    %150 = arith.mulf %146, %149 : vector<32x256xf32>
    %151 = arith.addf %138, %150 : vector<32x256xf32>
    %c0_126 = arith.constant 0 : index
    %c113_127 = arith.constant 113 : index
    %152 = vector.load %arg17[%c0_126, %c113_127] : memref<32x512xf32, #tpu.memory_space<vmem>>, vector<32x256xf32>
    %c0_128 = arith.constant 0 : index
    %c129_129 = arith.constant 129 : index
    %153 = vector.load %arg17[%c0_128, %c129_129] : memref<32x512xf32, #tpu.memory_space<vmem>>, vector<32x256xf32>
    %c0_130 = arith.constant 0 : index
    %c145_131 = arith.constant 145 : index
    %154 = vector.load %arg17[%c0_130, %c145_131] : memref<32x512xf32, #tpu.memory_space<vmem>>, vector<32x256xf32>
    %155 = tpu.concatenate %152, %153, %154 in 0 : vector<32x256xf32>, vector<32x256xf32>, vector<32x256xf32> -> vector<96x256xf32>
    %156 = arith.truncf %155 : vector<96x256xf32> to vector<96x256xbf16>
    %c2_132 = arith.constant 2 : index
    %c0_133 = arith.constant 0 : index
    %c0_134 = arith.constant 0 : index
    %157 = vector.load %arg13[%c2_132, %c0_133, %c0_134] : memref<3x32x96xbf16, #tpu.memory_space<vmem>>, vector<1x32x96xbf16>
    %158 = vector.shape_cast %157 : vector<1x32x96xbf16> to vector<32x96xbf16>
    %cst_135 = arith.constant dense<0.000000e+00> : vector<32x256xf32>
    %159 = tpu.matmul %158, %156, %cst_135 {dimension_numbers = #tpu.dot_dimension_numbers<[1], [0], [0], [1], [0, 0, 1, 1], [], []>} : vector<32x96xbf16>, vector<96x256xbf16>, vector<32x256xf32> -> vector<32x256xf32>
    %c2_136 = arith.constant 2 : index
    %c0_137 = arith.constant 0 : index
    %c0_138 = arith.constant 0 : index
    %160 = vector.load %arg4[%c2_136, %c0_137, %c0_138] : memref<3x1x256xf32, #tpu.memory_space<vmem>>, vector<1x1x256xf32>
    %161 = vector.shape_cast %160 : vector<1x1x256xf32> to vector<1x256xf32>
    %162 = vector.broadcast %161 : vector<1x256xf32> to vector<32x256xf32>
    %163 = arith.mulf %159, %162 : vector<32x256xf32>
    %164 = arith.addf %151, %163 : vector<32x256xf32>
    %c0_139 = arith.constant 0 : index
    %c0_140 = arith.constant 0 : index
    %165 = vector.load %arg14[%c0_139, %c0_140] : memref<32x1xf32, #tpu.memory_space<vmem>>, vector<32x1xf32>
    %166 = vector.broadcast %165 : vector<32x1xf32> to vector<32x256xf32>
    %167 = arith.addf %164, %166 : vector<32x256xf32>
    %cst_141 = arith.constant 0.000000e+00 : f32
    %168 = vector.broadcast %cst_141 : f32 to vector<32x256xf32>
    %169 = arith.maximumf %167, %168 : vector<32x256xf32>
    %170 = vector.broadcast %1 : vector<1x256xf32> to vector<32x256xf32>
    %171 = arith.mulf %169, %170 : vector<32x256xf32>
    %c0_142 = arith.constant 0 : index
    %c0_143 = arith.constant 0 : index
    %172 = vector.load %arg7[%c0_142, %c0_143] : memref<32x32xbf16, #tpu.memory_space<vmem>>, vector<32x32xbf16>
    %173 = arith.truncf %24 : vector<32x256xf32> to vector<32x256xbf16>
    %cst_144 = arith.constant dense<0.000000e+00> : vector<32x256xf32>
    %174 = tpu.matmul %172, %173, %cst_144 {dimension_numbers = #tpu.dot_dimension_numbers<[1], [0], [0], [1], [0, 0, 1, 1], [], []>} : vector<32x32xbf16>, vector<32x256xbf16>, vector<32x256xf32> -> vector<32x256xf32>
    %c0_145 = arith.constant 0 : index
    %c0_146 = arith.constant 0 : index
    %175 = vector.load %arg8[%c0_145, %c0_146] : memref<32x1xf32, #tpu.memory_space<vmem>>, vector<32x1xf32>
    %176 = vector.broadcast %175 : vector<32x1xf32> to vector<32x256xf32>
    %177 = arith.addf %174, %176 : vector<32x256xf32>
    %cst_147 = arith.constant 0.000000e+00 : f32
    %178 = vector.broadcast %cst_147 : f32 to vector<32x256xf32>
    %179 = arith.maximumf %177, %178 : vector<32x256xf32>
    %180 = vector.broadcast %1 : vector<1x256xf32> to vector<32x256xf32>
    %181 = arith.mulf %179, %180 : vector<32x256xf32>
    %182 = arith.addf %171, %181 : vector<32x256xf32>
    %c0_148 = arith.constant 0 : index
    %c0_149 = arith.constant 0 : index
    %183 = vector.load %arg15[%c0_148, %c0_149] : memref<1x32xbf16, #tpu.memory_space<vmem>>, vector<1x32xbf16>
    %184 = arith.truncf %182 : vector<32x256xf32> to vector<32x256xbf16>
    %cst_150 = arith.constant dense<0.000000e+00> : vector<1x256xf32>
    %185 = tpu.matmul %183, %184, %cst_150 {dimension_numbers = #tpu.dot_dimension_numbers<[1], [0], [0], [1], [0, 0, 1, 1], [], []>} : vector<1x32xbf16>, vector<32x256xbf16>, vector<1x256xf32> -> vector<1x256xf32>
    %c0_151 = arith.constant 0 : index
    %c0_152 = arith.constant 0 : index
    %c0_153 = arith.constant 0 : index
    %186 = vector.load %arg16[%c0_151, %c0_152, %c0_153] : memref<1x1x256xf32, #tpu.memory_space<vmem>>, vector<1x1x256xf32>
    %187 = vector.shape_cast %186 : vector<1x1x256xf32> to vector<1x256xf32>
    %188 = vector.shape_cast %185 : vector<1x256xf32> to vector<1x1x256xf32>
    tpu.vector_store %arg16[%c0_151, %c0_152, %c0_153], %188 {strides = array<i32>} : memref<1x1x256xf32, #tpu.memory_space<vmem>>, vector<1x1x256xf32>,
    return
  }
  func.func @transform_0(%arg0: i32) -> (i32, i32, i32) {
    %c0_i32 = arith.constant 0 : i32
    %c0_i32_0 = arith.constant 0 : i32
    %c0_i32_1 = arith.constant 0 : i32
    return %arg0, %c0_i32, %c0_i32_0 : i32, i32, i32
  }
  func.func @transform_1(%arg0: i32) -> (i32, i32, i32) {
    %c0_i32 = arith.constant 0 : i32
    %c0_i32_0 = arith.constant 0 : i32
    %c0_i32_1 = arith.constant 0 : i32
    return %arg0, %c0_i32, %c0_i32_0 : i32, i32, i32
  }
  func.func @transform_2(%arg0: i32) -> (i32, i32, i32) {
    %c0_i32 = arith.constant 0 : i32
    %c0_i32_0 = arith.constant 0 : i32
    %c0_i32_1 = arith.constant 0 : i32
    return %arg0, %c0_i32, %c0_i32_0 : i32, i32, i32
  }
  func.func @transform_3(%arg0: i32) -> (i32, i32, i32) {
    %c0_i32 = arith.constant 0 : i32
    %c0_i32_0 = arith.constant 0 : i32
    %c0_i32_1 = arith.constant 0 : i32
    %c0_i32_2 = arith.constant 0 : i32
    return %c0_i32, %c0_i32_0, %c0_i32_1 : i32, i32, i32
  }
  func.func @transform_4(%arg0: i32) -> (i32, i32) {
    %c0_i32 = arith.constant 0 : i32
    %c0_i32_0 = arith.constant 0 : i32
    %c0_i32_1 = arith.constant 0 : i32
    return %c0_i32, %c0_i32_0 : i32, i32
  }
  func.func @transform_5(%arg0: i32) -> (i32, i32) {
    %c0_i32 = arith.constant 0 : i32
    %c0_i32_0 = arith.constant 0 : i32
    %c0_i32_1 = arith.constant 0 : i32
    return %c0_i32, %c0_i32_0 : i32, i32
  }
  func.func @transform_6(%arg0: i32) -> (i32, i32) {
    %c0_i32 = arith.constant 0 : i32
    %c0_i32_0 = arith.constant 0 : i32
    %c0_i32_1 = arith.constant 0 : i32
    return %c0_i32, %c0_i32_0 : i32, i32
  }
  func.func @transform_7(%arg0: i32) -> (i32, i32) {
    %c0_i32 = arith.constant 0 : i32
    %c0_i32_0 = arith.constant 0 : i32
    %c0_i32_1 = arith.constant 0 : i32
    return %c0_i32, %c0_i32_0 : i32, i32
  }
  func.func @transform_8(%arg0: i32) -> (i32, i32, i32) {
    %c0_i32 = arith.constant 0 : i32
    %c0_i32_0 = arith.constant 0 : i32
    %c0_i32_1 = arith.constant 0 : i32
    %c0_i32_2 = arith.constant 0 : i32
    return %c0_i32, %c0_i32_0, %c0_i32_1 : i32, i32, i32
  }
  func.func @transform_9(%arg0: i32) -> (i32, i32) {
    %c0_i32 = arith.constant 0 : i32
    %c0_i32_0 = arith.constant 0 : i32
    %c0_i32_1 = arith.constant 0 : i32
    return %c0_i32, %c0_i32_0 : i32, i32
  }
  func.func @transform_10(%arg0: i32) -> (i32, i32, i32) {
    %c0_i32 = arith.constant 0 : i32
    %c0_i32_0 = arith.constant 0 : i32
    %c0_i32_1 = arith.constant 0 : i32
    %c0_i32_2 = arith.constant 0 : i32
    return %c0_i32, %c0_i32_0, %c0_i32_1 : i32, i32, i32
  }
  func.func @transform_11(%arg0: i32) -> (i32, i32) {
    %c0_i32 = arith.constant 0 : i32
    %c0_i32_0 = arith.constant 0 : i32
    %c0_i32_1 = arith.constant 0 : i32
    return %c0_i32, %c0_i32_0 : i32, i32
  }
  func.func @transform_12(%arg0: i32) -> (i32, i32, i32) {
    %c0_i32 = arith.constant 0 : i32
    %c0_i32_0 = arith.constant 0 : i32
    %c0_i32_1 = arith.constant 0 : i32
    %c0_i32_2 = arith.constant 0 : i32
    return %c0_i32, %c0_i32_0, %c0_i32_1 : i32, i32, i32
  }
  func.func @transform_13(%arg0: i32) -> (i32, i32) {
    %c0_i32 = arith.constant 0 : i32
    %c0_i32_0 = arith.constant 0 : i32
    %c0_i32_1 = arith.constant 0 : i32
    return %c0_i32, %c0_i32_0 : i32, i32
  }
  func.func @transform_14(%arg0: i32) -> (i32, i32) {
    %c0_i32 = arith.constant 0 : i32
    %c0_i32_0 = arith.constant 0 : i32
    %c0_i32_1 = arith.constant 0 : i32
    return %c0_i32, %c0_i32_0 : i32, i32
  }
  func.func @transform_15(%arg0: i32) -> (i32, i32, i32) {
    %c0_i32 = arith.constant 0 : i32
    %c0_i32_0 = arith.constant 0 : i32
    %c0_i32_1 = arith.constant 0 : i32
    return %arg0, %c0_i32, %c0_i32_0 : i32, i32, i32
  }
}

</mosaic_0001>

<bundles_post_ra>
// kernel: tpu_custom_call.1
= control target key start
LH: loop header
LB: loop body
LE: loop exit
PB: predicated region body
PF: predicated region fallthrough
CT: control target
= control target key end

     0   :  { %s5387_s0 = inlined_call_operand.vmem [shape: f32[2,32,1], index: 0, kind: input, shape index: {}]   ;;  %s5388_s1 = inlined_call_operand.vmem [shape: bf16[2,32,256], index: 1, kind: input, shape index: {}]   ;;  %s5389_s2 = inlined_call_operand.hbm [shape: f32[2,1,256], index: 2, kind: input, shape index: {}]   ;;  %s5390_s3 = inlined_call_operand.hbm [shape: f32[3,1,256], index: 3, kind: input, shape index: {}]   ;;  %s5391_s4 = inlined_call_operand.vmem [shape: bf16[32,32], index: 4, kind: input, shape index: {}]   ;;  %s5392_s5 = inlined_call_operand.vmem [shape: f32[32,1], index: 5, kind: input, shape index: {}]   ;;  %s5393_s6 = inlined_call_operand.vmem [shape: bf16[32,32], index: 6, kind: input, shape index: {}]   ;;  %s5394_s7 = inlined_call_operand.vmem [shape: f32[32,1], index: 7, kind: input, shape index: {}]   ;;  %s5395_s8 = inlined_call_operand.vmem [shape: bf16[3,32,96], index: 8, kind: input, shape index: {}]   ;;  %s5396_s9 = inlined_call_operand.vmem [shape: f32[32,1], index: 9, kind: input, shape index: {}]   ;;  %s5397_s10 = inlined_call_operand.vmem [shape: bf16[3,32,96], index: 10, kind: input, shape index: {}]   ;;  %s5398_s11 = inlined_call_operand.vmem [shape: f32[32,1], index: 11, kind: input, shape index: {}]   ;;  %s5399_s12 = inlined_call_operand.vmem [shape: bf16[3,32,96], index: 12, kind: input, shape index: {}]   ;;  %s5400_s13 = inlined_call_operand.vmem [shape: f32[32,1], index: 13, kind: input, shape index: {}]   ;;  %s5401_s14 = inlined_call_operand.vmem [shape: bf16[1,32], index: 14, kind: input, shape index: {}]   ;;  %s5402_s15 = inlined_call_operand.hbm [shape: f32[2,1,256], index: 15, kind: output, shape index: {}]  }
   0x1   :  { %5420 = sst [smem:[#allocation15_spill]] %s5387_s0 }
   0x2   :  { %5421 = sst [smem:[#allocation16_spill]] %s5393_s6 }
   0x3   :  { %5422 = sst [smem:[#allocation17_spill]] %s5394_s7 }
   0x4   :  { %5423 = sst [smem:[#allocation18_spill]] %s5399_s12 }
   0x5   :  { %5424 = sst [smem:[#allocation19_spill]] %s5401_s14 }
   0x6   :  { %5425 = sst [smem:[#allocation20_spill]] %s5402_s15 }
   0x7   :  { %20 = vsyncpa [#allocation4], 0 }
   0x8   :  { %22 = vsyncpa [#allocation4 + $0x1], 0 }
   0x9   :  { %23 = vsyncpa [#allocation7], 0 }
   0xa   :  { %24 = vsyncpa [#allocation5], 0 }
   0xb   :  { %26 = vsyncpa [#allocation5 + $0x1], 0  ;;  %s4142_s18 = smov 0   ;;  %s4144_s19 = smov 0  }
   0xc   :  { %s4146_s20 = smov 0   ;;  %s4148_s21 = smov 0  }
   0xd LB: > { %5426 = sst [smem:[#allocation12_spill]] %s4034_s18  ;;  %s4163_s22 = sadd.s32 4294967295, %s4046_s21   ;;  %s4046_s21 = sphi %s4148_s21, %s5454_s21   ;;  %s4042_s20 = sphi %s4146_s20, %s5457_s20   ;;  %s4038_s19 = sphi %s4144_s19, %s5456_s19   ;;  %s4034_s18 = sphi %s4142_s18, %s5455_s18  }
   0xe   : > { %s3449_s23 = sadd.s32 4294967294, %s4046_s21   ;;  %p104_p0 = scmp.ne.s32.totalorder %s4038_s19, %s4034_s18 }
   0xf   : > { %p5409_p1 = scmp.eq.s32.totalorder %s4163_s22, 0  ;;  %p386_p3 = scmp.eq.s32.totalorder %s3449_s23, 1 }
  0x10   : > { %p3450_p5 = scmp.ge.s32.totalorder %s4046_s21, 1  ;;  %p393_p7 = scmp.lt.s32.totalorder %s4046_s21, 3 }
  0x11   : > { %p4172_p4 = por %p5409_p1, %p104_p0  ;;  %p4177_p6 = por %p386_p3, %p104_p0 }
  0x12   : > { %p4182_p8 = pnand %p3450_p5, %p393_p7  ;;  %s4048_s27 = smov [#allocation6]  }
  0x13   : > { %s5427_s24 = scalar_select %p4172_p4, 1, 0 }
  0x14   : > { %s5428_s25 = scalar_select %p4177_p6, 1, 0 }
  0x15   : > { %s5430_s26 = scalar_select %p4182_p8, 1, 0 }
  0x16   : > { %5429 = sst [smem:[#allocation13_spill]] %s5428_s25  ;;  %s405_s28 = sshll.u32 %s4048_s27, 4  ;;  %s4186_s28 = int_to_ptr.vmem [resolvable:$true] %s405_s28 }
  0x17   : > { %p3554_p9 = pneg %p4182_p8  ;;  %s4198_s30 = sadd.s32 1, %s4046_s21  }
  0x18   : > { %5432 = sst [smem:[#allocation14_spill]] %s4198_s30  ;;  %s91_s16 = sadd.s32 1, %s4042_s20 }
  0x19   : > { %p4193_p11 = pnand %p3554_p9, %p5409_p1  ;;  %s88_s17 = ssub.s32 %s4046_s21, %s4198_s30 }
  0x1a   : > { %s3918_s27 = scalar_lea.hbm %s5390_s3, 96 }
  0x1b   : > { %p3919_p12 = scmp.ne.s32.totalorder %s5390_s3, %s3918_s27  ;;  %p3920_p13 = pneg %p4193_p11 }
  0x1c   : > { %p3925_p5 = scmp.lt.u32.totalorder %s3918_s27, %s5390_s3 }
  0x1d   : > { %p3921_p0 = pnand %p3920_p13, %p3919_p12 }
  0x1f   : > { %p3922_p3 = pneg %p3921_p0 }
  0x21   : > { %p3927_p7 = pnand %p3925_p5, %p3922_p3 }
  0x23   : > { %3930 = shalt.err (!%p3927_p7)
}
  0x24   : > { %s3931_s30 = scalar_lea.vmem %s4186_s28, 96  ;;  %p3939_p2 = scmp.lt.s32.totalorder %s4186_s28, %s4186_s28 }
  0x25   : > { %p3932_p9 = scmp.ne.s32.totalorder %s4186_s28, %s3931_s30  ;;  %p3940_p6 = scmp.lt.s32.totalorder %s3931_s30, %s3931_s30 }
  0x27   : > { %p3934_p10 = pnand %p3932_p9, %p3920_p13  ;;  %p3941_p4 = por %p3940_p6, %p3939_p2 }
  0x29   : > { %p3935_p1 = pneg %p3934_p10 }
  0x2b   : > { %p3942_p8 = pnand %p3941_p4, %p3935_p1 }
  0x2d   : > { %3945 = shalt.err (!%p3942_p8)
}
  0x2e   : > { %s4049_s15 = smov 32   ;;  %s4050_s6 = smov 2  }
  0x2f   : > { %3557 = dma.hbm_to_vmem [thread:$0]  (!%p4193_p11), %s5390_s3, 96, %s4186_s28, [#allocation7], %s4049_s15, %s4049_s15, %s4050_s6  }
  0x30   : > { %p89_p2 = scmp.eq.s32.totalorder %s88_s17, 0  ;;  %p98_p1 = scmp.ne.s32.totalorder %s4042_s20, %s4038_s19 }
  0x31   : > { %p99_p4 = scmp.eq.s32.totalorder %s4046_s21, 0  ;;  %p3567_p6 = scmp.lt.s32.totalorder %s4046_s21, 2 }
  0x32   : > { %s4229_s25 = scalar_select %p89_p2, %s4042_s20, %s91_s16  }
  0x33   : > { %p100_p8 = por %p99_p4, %p98_p1  ;;  %p5433_p10 = scmp.eq.s32.totalorder %s4163_s22, 1 }
  0x34   : > { %s468_s23 = sand.u32 1, %s4042_s20   ;;  %s3542_s27 = sshll.u32 %s4046_s21, 5 }
  0x35   : > { %p4233_p12 = por %p5433_p10, %p98_p1  ;;  %s3453_s12 = sshll.u32 %s468_s23, 1 }
  0x36   : > { %s4242_s14 = scalar_lea.hbm %s5389_s2, %s3542_s27  ;;  %s472_s28 = scalar_lea.vmem [#allocation3], %s3453_s12 }
  0x37   : > { %s480_s16 = sshll.u32 %s472_s28, 4  ;;  %p4244_p11 = pnand %p3567_p6, %p100_p8  ;;  %s4248_s16 = int_to_ptr.vmem [resolvable:$true] %s480_s16 }
  0x38   : > { %s469_s15 = scalar_lea.sflag [#allocation4], %s468_s23  ;;  %s3946_s6 = scalar_lea.hbm %s4242_s14, 32 }
  0x39   : > { %p3947_p13 = scmp.ne.s32.totalorder %s4242_s14, %s3946_s6  ;;  %p3948_p0 = pneg %p4244_p11 }
  0x3a   : > { %s3951_s18 = scalar_lea.hbm %s5389_s2, 64  ;;  %p3952_p7 = scmp.lt.u32.totalorder %s4242_s14, %s5389_s2 }
  0x3b   : > { %p3949_p3 = pnand %p3948_p0, %p3947_p13  ;;  %p3953_p9 = scmp.lt.u32.totalorder %s3951_s18, %s3946_s6 }
  0x3c   : > { %p3955_p1 = scmp.lt.u32.totalorder %s3946_s6, %s4242_s14 }
  0x3d   : > { %p3950_p5 = pneg %p3949_p3  ;;  %p3954_p2 = por %p3953_p9, %p3952_p7 }
  0x3f   : > { %p3956_p4 = por %p3955_p1, %p3954_p2 }
  0x41   : > { %p3957_p6 = pnand %p3956_p4, %p3950_p5 }
  0x43   : > { %3960 = shalt.err (!%p3957_p6)
}
  0x44   : > { %s3961_s23 = scalar_lea.vmem %s4248_s16, 32  ;;  %s4051_s28 = smov [#allocation3]  }
  0x45   : > { %p3962_p8 = scmp.ne.s32.totalorder %s4248_s16, %s3961_s23  ;;  %s3966_s7 = sshll.u32 %s4051_s28, 4  ;;  %s3967_s7 = int_to_ptr.vmem [resolvable:$false] %s3966_s7 }
  0x46   : > { %s3968_s12 = scalar_lea.vmem %s3967_s7, 64  ;;  %p3969_p3 = scmp.lt.s32.totalorder %s4248_s16, %s3967_s7 }
  0x47   : > { %p3964_p10 = pnand %p3962_p8, %p3948_p0  ;;  %p3970_p7 = scmp.lt.s32.totalorder %s3968_s12, %s3961_s23 }
  0x49   : > { %p3965_p13 = pneg %p3964_p10  ;;  %p3971_p9 = por %p3970_p7, %p3969_p3 }
  0x4b   : > { %p3972_p2 = pnand %p3971_p9, %p3965_p13 }
  0x4d   : > { %3975 = shalt.err (!%p3972_p2)
}
  0x4e   : > { %3561 = dma.hbm_to_vmem [thread:$0]  (!%p4244_p11), %s4242_s14, 32, %s4248_s16, %s469_s15  }
  0x4f   : > { %p5436_p5 = scmp.ne.s32.totalorder %s5430_s26, 0 }
  0x50   : > { %s4278_s6 = sand.u32 (!%p5436_p5), 1, %s4038_s19   ;;  %p5437_p0 = scmp.ne.s32.totalorder (!%p5436_p5), %s5427_s24, 0 }
  0x51   : > { %489 = sbr.rel (%p5436_p5) target bundleno = 2259 (0x8d3), region = 80  ;;  %s5414_s18 = sshll.u32 (!%p5436_p5), %s4278_s6, 1 }
  0x52   : > { %s492_s27 = scalar_lea.sflag (!%p5436_p5), [#allocation4], %s4278_s6  ;;  %s4284_s29 = scalar_lea.vmem (!%p5436_p5), [#allocation3], %s5414_s18 }
  0x58   : > { %4021 = dma.done.wait (%p5437_p0), %s492_s27, 32  }
  0x59   : > { %4023 = vsyncadd (%p5437_p0), %s492_s27, 4294967264  ;;  %p5438_p11 = scmp.eq.s32.totalorder %s4163_s22, 0 }
  0x5b   : > { %4025 = dma.done.wait (%p5438_p11), [#allocation7], 96   ;;  %p5439_p1 = pmov %p5438_p11 }
  0x5c   : > { %p556_p4 = scmp.lt.s32.totalorder %s4163_s22, 1  ;;  %v4052_v0 = vmov 0   ;;  %v580_v5 = vld [vmem:[%s5392_s5] sm:$0xff]  ;;  %v582_v6 = vld [vmem:[%s5392_s5 + $0x10] sm:$0xff]  ;;  %s5440_s0 = sld [smem:[#allocation15_spill]]  ;;  %v581_v8 = vld [vmem:[%s5392_s5 + $0x8] sm:$0xff]  ;;  %v5415_v17 = vlaneseq }
  0x5d   : > { %4027 = vsyncadd (%p5439_p1), [#allocation7], 4294967200  ;;  %673 = vmatprep.mubr.bf16.mxu0 %v4052_v0  ;;  %3614 = vset.pattern.permute.xlu0 %v4052_v0  ;;  %v3892_v7 = vld [vmem:[%s5391_s4] sm:$0xff]   ;;  %vm634_vm0 = vcmask 261120   ;;  %v583_v9 = vld [vmem:[%s5392_s5 + $0x18] sm:$0xff]  ;;  %v5418_v15 = vmov 0.0  }
  0x5e   : > { %s557_s26 = scalar_select %p556_p4, %s4163_s22, 1  ;;  %3615 = vset.pattern.permute.xlu1 %v4052_v0  ;;  %1090 = vmatprep.mubr.bf16.mxu1 %v4052_v0  ;;  %v3893_v12 = vld [vmem:[%s5391_s4 + $0x8] sm:$0xff]   ;;  %v5416_v16 = vmov 0.0|0.0   ;;  %v4345_v18 = vshrl.u32 %v5415_v17, 7  ;;  %v567_v22 = vld [vmem:[%s4284_s29] sm:$0x3] }
  0x5f   : > { %586 = vperm.xlu0 %3614, %v580_v5   ;;  %596 = vperm.xlu1 %3615, %v582_v6   ;;  %s4054_s18 = smov 112   ;;  %s4056_s7 = smov 17   ;;  %vm863_vm1 = vcmask 916480   ;;  %vm1027_vm2 = vcmask 138240   ;;  %vm1198_vm3 = vcmask 130048   ;;  %vm920_vm4 = vcmask 785408  }
  0x60   : > { %s3543_s24 = sshll.u32 %s557_s26, 5  ;;  %s4057_s12 = smov 15   ;;  %v4348_v21 = vsub.s32 0, %v4345_v18  ;;  %v4352_v23 = vsub.s32 1, %v4345_v18  ;;  %vm1418_vm5 = vcmask 121856  }
  0x61   : > { %s565_s17 = scalar_lea.vmem %s5388_s1, %s3543_s24  ;;  %s4058_s27 = smov 16  }
  0x62   : > { %v3886_v1 = vld [vmem:[%s565_s17 + $0x4] ss:$8 sps:$4 sm:$0xff]   ;;  %v3888_v2 = vld [vmem:[%s565_s17] ss:$8 sps:$4 sm:$0xff]   ;;  %v3889_v3 = vld [vmem:[%s565_s17 + $0x14] ss:$8 sps:$4 sm:$0xff]   ;;  %s560_s26 = scalar_lea.vmem %s5440_s0, %s3543_s24  ;;  %v4355_v25 = vrot.slane %v567_v22, %v4348_v21  ;;  %v4358_v28 = vrot.slane %v567_v22, %v4352_v23 }
  0x63   : > { %641 = vmatprep.subr.bf16.mxu0 %v3886_v1  ;;  %v3891_v4 = vld [vmem:[%s565_s17 + $0x10] ss:$8 sps:$4 sm:$0xff]   ;;  %v568_v10 = vld [vmem:[%s560_s26] sm:$0xff]  ;;  %591 = vperm.xlu0 %3614, %v581_v8   ;;  %v569_v11 = vld [vmem:[%s560_s26 + $0x8] sm:$0xff]  ;;  %s4059_s29 = smov 96   ;;  %s5444_s17 = sld [smem:[#allocation18_spill]] }
  0x64   : > { %642 = vmatpush1.bf16.msra.mxu0 %v3888_v2  ;;  %601 = vperm.xlu1 %3615, %v583_v9   ;;  %v570_v13 = vld [vmem:[%s560_s26 + $0x10] sm:$0xff]  ;;  %v571_v14 = vld [vmem:[%s560_s26 + $0x18] sm:$0xff]  ;;  %s5443_s26 = sld [smem:[#allocation17_spill]]  ;;  %s5445_s16 = sld [smem:[#allocation16_spill]] }
  0x65   : > { %643 = vmatprep.subr.bf16.mxu0 %v3889_v3  ;;  %s5449_s28 = sld [smem:[#allocation20_spill]] }
  0x67   : > { %715 = vperm.xlu0 %3614, %v568_v10  }
  0x68   : > { %644 = vmatpush1.bf16.msra.mxu0 %v3891_v4  ;;  %720 = vperm.xlu1 %3615, %v569_v11  }
  0x6b   : > { %3470 = vmatmul.mubr.msk.bf16.vlgmr.msra.gmra.mrb[0].mxu0 %vm634_vm0, %v3892_v7  ;;  %725 = vperm.xlu0 %3614, %v570_v13  }
  0x6c   : > { %683 = vmatprep.mubr.bf16.mxu0 %v4052_v0  ;;  %730 = vperm.xlu1 %3615, %v571_v14  }
  0x6f   : > { %3617 = vrot.lane.b32.xlu0 %v5418_v15, %s4054_s18 }
  0x70   : > { %3622 = vrot.lane.b32.xlu1 %v5418_v15, %s4054_s18 }
  0x73   : > { %3471 = vmatmul.mubr.msk.bf16.gmra.mrb[4].mxu0 %vm634_vm0, %v3893_v12  ;;  %991 = vrot.lane.b32.xlu0 %v5416_v16, %s4056_s7 }
  0x74   : > { %1261 = vmatprep.mubr.bf16.mxu0 %v4052_v0  ;;  %997 = vrot.lane.b32.xlu1 %v5416_v16, %s4056_s7 }
  0x77   : > { %1162 = vrot.lane.b32.xlu0 %v5416_v16, %s4058_s27 }
  0x78   : > { %1382 = vrot.lane.b32.xlu1 %v5416_v16, %s4057_s12 }
  0x7b   : > { %1168 = vrot.lane.b32.xlu0 %v5416_v16, %s4058_s27 }
  0x7c   : > { %1388 = vrot.lane.b32.xlu1 %v5416_v16, %s4057_s12 }
  0xde   : > { %v587_v19 = vpop.permute.xlu0 %586  ;;  %v597_v20 = vpop.permute.xlu1 %596 }
  0xe2   : > { %v592_v24 = vpop.permute.xlu0 %591 }
  0xe3   : > { %v602_v26 = vpop.permute.xlu1 %601 }
  0xe6   : > { %v716_v36 = vpop.permute.xlu0 %715 }
  0xe7   : > { %v721_v41 = vpop.permute.xlu1 %720 }
  0xea   : > { %v726_v59 = vpop.permute.xlu0 %725 }
  0xeb   : > { %v731_v2 = vpop.permute.xlu1 %730 }
 0x13e   : > { %v675_v27 = vpop.f32.mrb[0].mxu0 }
 0x13f   : > { %v676_v29 = vadd.f32 %v675_v27, %v587_v19  ;;  %v677_v30 = vpop.f32.mrb[1].mxu0 }
 0x140   : > { %v678_v31 = vadd.f32 %v677_v30, %v587_v19  ;;  %v679_v32 = vpop.f32.mrb[2].mxu0 }
 0x141   : > { %v705_v33 = vmul.f32 %v4355_v25, %v676_v29  ;;  %v680_v34 = vadd.f32 %v679_v32, %v592_v24  ;;  %v681_v35 = vpop.f32.mrb[3].mxu0 }
 0x142   : > { %v706_v37 = vmul.f32 %v4358_v28, %v678_v31  ;;  %v682_v38 = vadd.f32 %v681_v35, %v592_v24 }
 0x143   : > { %v733_v39 = vmul.f32 %v716_v36, %v705_v33  ;;  %v707_v40 = vmul.f32 %v4355_v25, %v680_v34 }
 0x144   : > { %v734_v42 = vmul.f32 %v716_v36, %v706_v37  ;;  %v708_v43 = vmul.f32 %v4358_v28, %v682_v38 }
 0x145   : > { %v735_v44 = vmul.f32 %v721_v41, %v707_v40  ;;  %v741_v47 = vmul.f32 %v733_v39, %v733_v39 }
 0x146   : > { %v736_v45 = vmul.f32 %v721_v41, %v708_v43  ;;  %v685_v46 = vpop.f32.mrb[4].mxu0  ;;  %v742_v51 = vmul.f32 %v734_v42, %v734_v42 }
 0x147   : > { %v743_v48 = vmul.f32 %v735_v44, %v735_v44  ;;  %v686_v49 = vadd.f32 %v685_v46, %v597_v20  ;;  %v687_v50 = vpop.f32.mrb[5].mxu0 }
 0x148   : > { %v744_v52 = vmul.f32 %v736_v45, %v736_v45  ;;  %v688_v53 = vadd.f32 %v687_v50, %v597_v20  ;;  %v689_v54 = vpop.f32.mrb[6].mxu0 }
 0x149   : > { %v749_v55 = vadd.f32 %v743_v48, %v741_v47  ;;  %v709_v56 = vmul.f32 %v4355_v25, %v686_v49  ;;  %v690_v57 = vadd.f32 %v689_v54, %v602_v26  ;;  %v691_v58 = vpop.f32.mrb[7].mxu0 }
 0x14a   : > { %v758_v60 = vadd.f32 %v744_v52, %v742_v51  ;;  %v710_v61 = vmul.f32 %v4358_v28, %v688_v53  ;;  %v692_v62 = vadd.f32 %v691_v58, %v602_v26 }
 0x14b   : > { %v737_v63 = vmul.f32 %v726_v59, %v709_v56  ;;  %v711_v1 = vmul.f32 %v4355_v25, %v690_v57 }
 0x14c   : > { %v738_v3 = vmul.f32 %v726_v59, %v710_v61  ;;  %v712_v4 = vmul.f32 %v4358_v28, %v692_v62 }
 0x14d   : > { %v745_v5 = vmul.f32 %v737_v63, %v737_v63  ;;  %v739_v6 = vmul.f32 %v731_v2, %v711_v1 }
 0x14e   : > { %v746_v7 = vmul.f32 %v738_v3, %v738_v3  ;;  %v740_v8 = vmul.f32 %v731_v2, %v712_v4  ;;  %v4428_v4 = vpop.permute.xlu1 %3622 }
 0x14f   : > { %v750_v9 = vadd.f32 %v749_v55, %v745_v5  ;;  %v747_v10 = vmul.f32 %v739_v6, %v739_v6  ;;  %v3618_v5 = vpop.permute.xlu0 %3617 }
 0x150   : > { %v759_v11 = vadd.f32 %v758_v60, %v746_v7  ;;  %v748_v12 = vmul.f32 %v740_v8, %v740_v8 }
 0x151   : > { %v751_v13 = vadd.f32 %v750_v9, %v747_v10 }
 0x152   : > { %v760_v14 = vadd.f32 %v759_v11, %v748_v12 }
 0x153   : > { %v752_v19 = vrot.slane %v751_v13, 4  ;;  %v4432_v7 = vpop.permute.xlu0 %991 }
 0x154   : > { %v761_v20 = vrot.slane %v760_v14, 4 }
 0x155   : > { %v753_v22 = vadd.f32 %v752_v19, %v751_v13 }
 0x156   : > { %v762_v24 = vadd.f32 %v761_v20, %v760_v14 }
 0x157   : > { %v754_v26 = vrot.slane %v753_v22, 2  ;;  %v4436_v9 = vpop.permute.xlu0 %1162 }
 0x158   : > { %v763_v27 = vrot.slane %v762_v24, 2 }
 0x159   : > { %v755_v29 = vadd.f32 %v754_v26, %v753_v22 }
 0x15a   : > { %v764_v30 = vadd.f32 %v763_v27, %v762_v24 }
 0x15b   : > { %v756_v31 = vrot.slane %v755_v29, 1  ;;  %v4440_v11 = vpop.permute.xlu0 %1168 }
 0x15c   : > { %v765_v32 = vrot.slane %v764_v30, 1 }
 0x15d   : > { %v757_v33 = vadd.f32 %v756_v31, %v755_v29 }
 0x15e   : > { %v766_v34 = vadd.f32 %v765_v32, %v764_v30 }
 0x15f   : > { %v767_v35 = vmax.f32 %v757_v33, 1e-24 }
 0x160   : > { %v768_v36 = vmax.f32 %v766_v34, 1e-24 }
 0x161   : > { %3914 = vrsqrt.f32 %v767_v35 }
 0x162   : > { %3916 = vrsqrt.f32 %v768_v36 }
 0x16b   : > { %v3915_v37 = vpop.eup %3914 }
 0x16c   : > { %v3917_v38 = vpop.eup %3916  ;;  %v777_v40 = vmul.f32 %v3915_v37, %v739_v6  ;;  %v773_v41 = vmul.f32 %v3915_v37, %v735_v44  ;;  %v771_v43 = vmul.f32 %v3915_v37, %v733_v39  ;;  %v775_v46 = vmul.f32 %v3915_v37, %v737_v63  ;;  %v4430_v6 = vpop.permute.xlu1 %997 }
 0x16d   : > { %v778_v47 = vmul.f32 %v3917_v38, %v740_v8  ;;  %v774_v48 = vmul.f32 %v3917_v38, %v736_v45  ;;  %v772_v49 = vmul.f32 %v3917_v38, %v734_v42  ;;  %v776_v50 = vmul.f32 %v3917_v38, %v738_v3 }
 0x16e   : > { %v785_v51 = vmul.f32 %v777_v40, %v4355_v25  ;;  %v781_v52 = vmul.f32 %v773_v41, %v4355_v25  ;;  %v779_v53 = vmul.f32 %v771_v43, %v4355_v25  ;;  %v783_v54 = vmul.f32 %v775_v46, %v4355_v25 }
 0x16f   : > { %v786_v55 = vmul.f32 %v778_v47, %v4358_v28  ;;  %v782_v56 = vmul.f32 %v774_v48, %v4358_v28  ;;  %v780_v44 = vmul.f32 %v772_v49, %v4358_v28  ;;  %v784_v39 = vmul.f32 %v776_v50, %v4358_v28 }
 0x170   : > { %v3631_v45 = vpack.i.bf16 %v785_v51, %v5418_v15  ;;  %v3626_v42 = vpack.i.bf16 %v781_v52, %v5418_v15  ;;  %v4380_v61 = vpack.c.bf16 %v785_v51, %v783_v54  ;;  %v4382_v62 = vpack.c.bf16 %v781_v52, %v779_v53  ;;  %v4434_v8 = vpop.permute.xlu1 %1382 }
 0x171   : > { %v3651_v57 = vpack.i.bf16 %v782_v56, %v781_v52  ;;  %v3646_v58 = vpack.i.bf16 %v780_v44, %v779_v53  ;;  %v3656_v59 = vpack.i.bf16 %v784_v39, %v783_v54  ;;  %v3661_v60 = vpack.i.bf16 %v786_v55, %v785_v51 }
 0x172   : > { %3632 = vrot.lane.b32.xlu0 %v3631_v45, %s4059_s29  ;;  %3627 = vrot.lane.b32.xlu1 %v3626_v42, %s4059_s29  ;;  %v4384_v63 = vpack.c.bf16 %v782_v56, %v780_v44  ;;  %v4386_v1 = vpack.c.bf16 %v786_v55, %v784_v39  ;;  %v3681_v2 = vpack.i.bf16 %v5418_v15, %v786_v55 }
 0x173   : > { %v3671_v3 = vpack.i.bf16 %v5418_v15, %v782_v56 }
 0x174   : > { %v4438_v10 = vpop.permute.xlu1 %1388 }
 0x176   : > { %3642 = vrot.lane.b32.xlu0 %v3631_v45, %s4054_s18  ;;  %3637 = vrot.lane.b32.xlu1 %v3626_v42, %s4054_s18  ;;  %v3620_v42 = vunpack.i.h.bf16 %v3618_v5 }
 0x17a   : > { %3652 = vrot.lane.b32.xlu1 %v3651_v57, %s4054_s18  ;;  %3647 = vrot.lane.b32.xlu0 %v3646_v58, %s4054_s18  ;;  %v3619_v57 = vunpack.i.l.bf16 %v3618_v5  ;;  %v3624_v5 = vunpack.i.l.bf16 %v4428_v4 }
 0x17e   : > { %3657 = vrot.lane.b32.xlu1 %v3656_v59, %s4054_s18  ;;  %3662 = vrot.lane.b32.xlu0 %v3661_v60, %s4054_s18 }
 0x182   : > { %3677 = vrot.lane.b32.xlu1 %v3656_v59, %s4059_s29  ;;  %3667 = vrot.lane.b32.xlu0 %v3646_v58, %s4059_s29 }
 0x186   : > { %3682 = vrot.lane.b32.xlu1 %v3681_v2, %s4059_s29  ;;  %3672 = vrot.lane.b32.xlu0 %v3671_v3, %s4059_s29 }
 0x18a   : > { %3697 = vrot.lane.b32.xlu1 %v3656_v59, %s4054_s18  ;;  %3687 = vrot.lane.b32.xlu0 %v3646_v58, %s4054_s18 }
 0x18e   : > { %3702 = vrot.lane.b32.xlu1 %v3681_v2, %s4054_s18  ;;  %3692 = vrot.lane.b32.xlu0 %v3671_v3, %s4054_s18 }
 0x192   : > { %999 = vrot.lane.b32.xlu1 %v4380_v61, %s4056_s7  ;;  %993 = vrot.lane.b32.xlu0 %v4382_v62, %s4056_s7 }
 0x196   : > { %1384 = vrot.lane.b32.xlu1 %v4382_v62, %s4057_s12  ;;  %1164 = vrot.lane.b32.xlu0 %v4382_v62, %s4058_s27 }
 0x19a   : > { %1390 = vrot.lane.b32.xlu1 %v4380_v61, %s4057_s12  ;;  %1170 = vrot.lane.b32.xlu0 %v4380_v61, %s4058_s27 }
 0x19e   : > { %995 = vrot.lane.b32.xlu1 %v4384_v63, %s4056_s7  ;;  %1001 = vrot.lane.b32.xlu0 %v4386_v1, %s4056_s7 }
 0x1a2   : > { %1166 = vrot.lane.b32.xlu1 %v4384_v63, %s4058_s27  ;;  %1386 = vrot.lane.b32.xlu0 %v4384_v63, %s4057_s12 }
 0x1a6   : > { %1172 = vrot.lane.b32.xlu1 %v4386_v1, %s4058_s27  ;;  %1392 = vrot.lane.b32.xlu0 %v4386_v1, %s4057_s12 }
 0x1e4   : > { %v4442_v12 = vpop.permute.xlu0 %3632  ;;  %v4444_v13 = vpop.permute.xlu1 %3627 }
 0x1e5   : > { %v3635_v30 = vunpack.i.h.bf16 %v4442_v12  ;;  %v3630_v31 = vunpack.i.h.bf16 %v4444_v13 }
 0x1e8   : > { %v4446_v14 = vpop.permute.xlu0 %3642  ;;  %v4448_v19 = vpop.permute.xlu1 %3637 }
 0x1e9   : > { %v3640_v49 = vunpack.i.h.bf16 %v4448_v19  ;;  %v3645_v56 = vunpack.i.h.bf16 %v4446_v14 }
 0x1ec   : > { %v4450_v20 = vpop.permute.xlu1 %3652  ;;  %v4452_v22 = vpop.permute.xlu0 %3647 }
 0x1ed   : > { %v3654_v34 = vunpack.i.l.bf16 %v4450_v20  ;;  %v3649_v35 = vunpack.i.l.bf16 %v4452_v22  ;;  %v3655_v58 = vunpack.i.h.bf16 %v4450_v20  ;;  %v3650_v59 = vunpack.i.h.bf16 %v4452_v22 }
 0x1ef   : > { %v1143_v46 = vpack.c.bf16 %v3654_v34, %v3649_v35  ;;  %v864_v3 = vsel %vm863_vm1, %v3619_v57, %v3649_v35  ;;  %v867_v15 = vsel %vm863_vm1, %v3654_v34, %v3655_v58 }
 0x1f0   : > { %v4454_v24 = vpop.permute.xlu1 %3657  ;;  %v4456_v26 = vpop.permute.xlu0 %3662 }
 0x1f1   : > { %v4486_v41 = vunpack.i.l.bf16 %v4454_v24  ;;  %v4489_v43 = vunpack.i.l.bf16 %v4456_v26  ;;  %v3660_v20 = vunpack.i.h.bf16 %v4454_v24  ;;  %v3665_v22 = vunpack.i.h.bf16 %v4456_v26 }
 0x1f3   : > { %v1144_v53 = vpack.c.bf16 %v4489_v43, %v4486_v41  ;;  %v952_v16 = vpack.c.bf16 %v3665_v22, %v3660_v20 }
 0x1f4   : > { %v4458_v27 = vpop.permute.xlu1 %3677  ;;  %v4460_v29 = vpop.permute.xlu0 %3667 }
 0x1f5   : > { %v3679_v32 = vunpack.i.l.bf16 %v4458_v27  ;;  %v3669_v33 = vunpack.i.l.bf16 %v4460_v29 }
 0x1f7   : > { %v4472_v36 = vpack.c.bf16 %v3635_v30, %v3679_v32  ;;  %v953_v37 = vpack.c.bf16 %v3630_v31, %v3669_v33 }
 0x1f8   : > { %v4478_v38 = vpop.permute.xlu1 %3682  ;;  %v4480_v40 = vpop.permute.xlu0 %3672 }
 0x1f9   : > { %1021 = vrot.lane.b32.xlu1 %v4472_v36, %s4056_s7  ;;  %1015 = vrot.lane.b32.xlu0 %v953_v37, %s4056_s7  ;;  %v3674_v24 = vunpack.i.l.bf16 %v4480_v40 }
 0x1fc   : > { %v4491_v47 = vpop.permute.xlu1 %3697  ;;  %v4493_v48 = vpop.permute.xlu0 %3687 }
 0x1fd   : > { %v3689_v50 = vunpack.i.l.bf16 %v4493_v48  ;;  %1174 = vrot.lane.b32.xlu0 %v1143_v46, %s4058_s27  ;;  %v3699_v51 = vunpack.i.l.bf16 %v4491_v47  ;;  %v866_v46 = vsel %vm863_vm1, %v3620_v42, %v3654_v34  ;;  %v868_v42 = vsel %vm863_vm1, %v3624_v5, %v4486_v41 }
 0x1fe   : > { %v3670_v5 = vunpack.i.h.bf16 %v4460_v29  ;;  %v3685_v34 = vunpack.i.h.bf16 %v4478_v38 }
 0x1ff   : > { %v1355_v52 = vpack.c.bf16 %v3640_v49, %v3689_v50  ;;  %v1358_v44 = vpack.c.bf16 %v3645_v56, %v3699_v51 }
 0x200   : > { %v4505_v54 = vpop.permute.xlu1 %3702  ;;  %v4507_v55 = vpop.permute.xlu0 %3692 }
 0x201   : > { %1394 = vrot.lane.b32.xlu1 %v1355_v52, %s4057_s12  ;;  %1180 = vrot.lane.b32.xlu0 %v1144_v53, %s4058_s27  ;;  %v3625_v52 = vunpack.i.h.bf16 %v4428_v4  ;;  %v949_v53 = vpack.c.bf16 %v3655_v58, %v3650_v59 }
 0x204   : > { %v1000_v39 = vpop.permute.xlu1 %999  ;;  %v994_v45 = vpop.permute.xlu0 %993 }
 0x205   : > { %1400 = vrot.lane.b32.xlu1 %v1358_v44, %s4057_s12  ;;  %1186 = vrot.lane.b32.xlu0 %v953_v37, %s4058_s27  ;;  %v947_v44 = vpack.c.bf16 %v866_v46, %v864_v3  ;;  %v865_v46 = vsel %vm863_vm1, %v3649_v35, %v3650_v59  ;;  %v3684_v35 = vunpack.i.l.bf16 %v4478_v38  ;;  %v923_v59 = vsel %vm920_vm4, %v3630_v31, %v3674_v24 }
 0x206   : > { %v3634_v31 = vunpack.i.l.bf16 %v4442_v12  ;;  %v3704_v12 = vunpack.i.l.bf16 %v4505_v54 }
 0x208   : > { %v4520_v60 = vpop.permute.xlu1 %1384  ;;  %v1165_v2 = vpop.permute.xlu0 %1164 }
 0x209   : > { %1406 = vrot.lane.b32.xlu1 %v953_v37, %s4057_s12  ;;  %1192 = vrot.lane.b32.xlu0 %v4472_v36, %s4058_s27  ;;  %v870_v37 = vsel %vm863_vm1, %v3625_v52, %v4489_v43  ;;  %v1199_v38 = vsel %vm1198_vm3, %v4436_v9, %v1165_v2  ;;  %v928_v9 = vsel %vm920_vm4, %v3684_v35, %v3685_v34  ;;  %v3705_v34 = vunpack.i.h.bf16 %v4505_v54 }
 0x20a   : > { %v950_v4 = vpack.c.bf16 %v870_v37, %v868_v42  ;;  %v948_v37 = vpack.c.bf16 %v867_v15, %v865_v46  ;;  %v3680_v15 = vunpack.i.h.bf16 %v4458_v27  ;;  %v869_v46 = vsel %vm863_vm1, %v4486_v41, %v3660_v20 }
 0x20b   : > { %v3694_v20 = vunpack.i.l.bf16 %v4507_v55  ;;  %v3700_v27 = vunpack.i.h.bf16 %v4491_v47  ;;  %v1341_v54 = vsel %vm863_vm1, %v3645_v56, %v3704_v12  ;;  %v1532_v47 = vld [vmem:[%s5396_s9 + $0x8] sm:$0xff]  ;;  %v1534_v56 = vld [vmem:[%s5396_s9 + $0x18] sm:$0xff] }
 0x20c   : > { %v4531_v17 = vpop.permute.xlu1 %1390  ;;  %v1171_v57 = vpop.permute.xlu0 %1170 }
 0x20d   : > { %1007 = vrot.lane.b32.xlu1 %v949_v53, %s4056_s7  ;;  %1003 = vrot.lane.b32.xlu0 %v947_v44, %s4056_s7  ;;  %v1028_v44 = vsel %vm1027_vm2, %v4432_v7, %v994_v45 }
 0x210   : > { %v996_v26 = vpop.permute.xlu1 %995  ;;  %v1002_v3 = vpop.permute.xlu0 %1001 }
 0x211   : > { %1009 = vrot.lane.b32.xlu1 %v950_v4, %s4056_s7  ;;  %1013 = vrot.lane.b32.xlu0 %v952_v16, %s4056_s7  ;;  %v1029_v52 = vsel %vm1027_vm2, %v994_v45, %v996_v26  ;;  %v1031_v42 = vsel %vm1027_vm2, %v1000_v39, %v1002_v3  ;;  %v1030_v45 = vsel %vm1027_vm2, %v4430_v6, %v1000_v39  ;;  %v3675_v26 = vunpack.i.h.bf16 %v4480_v40 }
 0x212   : > { %1058 = vmatprep.subr.bf16.mxu1 %v1029_v52  ;;  %v921_v4 = vsel %vm920_vm4, %v3669_v33, %v3670_v5  ;;  %v871_v6 = vsel %vm863_vm1, %v4489_v43, %v3665_v22  ;;  %v1201_v33 = vsel %vm1198_vm3, %v4440_v11, %v1171_v57  ;;  %v926_v40 = vsel %vm920_vm4, %v3680_v15, %v3634_v31 }
 0x213   : > { %1059 = vmatpush1.bf16.msra.mxu1 %v1028_v44  ;;  %v951_v39 = vpack.c.bf16 %v871_v6, %v869_v46  ;;  %v958_v41 = vpack.c.bf16 %v928_v9, %v926_v40  ;;  %v3695_v43 = vunpack.i.h.bf16 %v4507_v55  ;;  %v3690_v22 = vunpack.i.h.bf16 %v4493_v48 }
 0x214   : > { %v1167_v58 = vpop.permute.xlu1 %1166  ;;  %1060 = vmatprep.subr.bf16.mxu1 %v1031_v42  ;;  %v3639_v52 = vunpack.i.l.bf16 %v4448_v19  ;;  %v925_v55 = vsel %vm920_vm4, %v3679_v32, %v3680_v15  ;;  %v1342_v19 = vsel %vm863_vm1, %v3704_v12, %v3705_v34 }
 0x215   : > { %1178 = vrot.lane.b32.xlu1 %v949_v53, %s4058_s27  ;;  %1005 = vrot.lane.b32.xlu0 %v948_v37, %s4056_s7  ;;  %v1200_v7 = vsel %vm1198_vm3, %v1165_v2, %v1167_v58  ;;  %v954_v53 = vpack.c.bf16 %v923_v59, %v921_v4  ;;  %v3629_v2 = vunpack.i.l.bf16 %v4444_v13  ;;  %v927_v13 = vsel %vm920_vm4, %v3635_v30, %v3684_v35  ;;  %v1387_v59 = vpop.permute.xlu0 %1386 }
 0x216   : > { %1229 = vmatprep.subr.bf16.mxu0 %v1200_v7  ;;  %v1338_v44 = vsel %vm863_vm1, %v3694_v20, %v3695_v43  ;;  %v1337_v30 = vsel %vm863_vm1, %v3640_v49, %v3694_v20  ;;  %v1335_v32 = vsel %vm863_vm1, %v3689_v50, %v3690_v22  ;;  %v3644_v35 = vunpack.i.l.bf16 %v4446_v14  ;;  %v1531_v14 = vld [vmem:[%s5396_s9] sm:$0xff] }
 0x217   : > { %1061 = vmatpush1.bf16.msra.mxu1 %v1030_v45  ;;  %1230 = vmatpush1.bf16.msra.mxu0 %v1199_v38  ;;  %v922_v11 = vsel %vm920_vm4, %v3670_v5, %v3629_v2  ;;  %v957_v5 = vpack.c.bf16 %v927_v13, %v925_v55  ;;  %v1339_v49 = vsel %vm863_vm1, %v3699_v51, %v3700_v27  ;;  %v1533_v51 = vld [vmem:[%s5396_s9 + $0x10] sm:$0xff] }
 0x218   : > { %v1173_v3 = vpop.permute.xlu1 %1172  ;;  %v1340_v48 = vsel %vm863_vm1, %v3700_v27, %v3644_v35  ;;  %v1359_v50 = vpack.c.bf16 %v1341_v54, %v1339_v49  ;;  %v1420_v27 = vsel %vm1418_vm5, %v4520_v60, %v1387_v59 }
 0x219   : > { %1184 = vrot.lane.b32.xlu1 %v952_v16, %s4058_s27  ;;  %1017 = vrot.lane.b32.xlu0 %v954_v53, %s4056_s7  ;;  %v1202_v29 = vsel %vm1198_vm3, %v1171_v57, %v1173_v3  ;;  %v924_v16 = vsel %vm920_vm4, %v3674_v24, %v3675_v26  ;;  %v1336_v24 = vsel %vm863_vm1, %v3690_v22, %v3639_v52  ;;  %v1393_v7 = vpop.permute.xlu0 %1392 }
 0x21a   : > { %1231 = vmatprep.subr.bf16.mxu0 %v1202_v29  ;;  %v955_v57 = vpack.c.bf16 %v924_v16, %v922_v11  ;;  %v1357_v42 = vpack.c.bf16 %v1338_v44, %v1336_v24  ;;  %v1360_v58 = vpack.c.bf16 %v1342_v19, %v1340_v48  ;;  %v1419_v19 = vsel %vm1418_vm5, %v4434_v8, %v4520_v60 }
 0x21b   : > { %1232 = vmatpush1.bf16.msra.mxu0 %v1201_v33  ;;  %v1422_v49 = vsel %vm1418_vm5, %v4531_v17, %v1393_v7 }
 0x21d   : > { %1011 = vrot.lane.b32.xlu1 %v951_v39, %s4056_s7  ;;  %1025 = vrot.lane.b32.xlu0 %v958_v41, %s4056_s7 }
 0x221   : > { %1019 = vrot.lane.b32.xlu1 %v955_v57, %s4056_s7  ;;  %1176 = vrot.lane.b32.xlu0 %v948_v37, %s4058_s27  ;;  %v1356_v37 = vpack.c.bf16 %v1337_v30, %v1335_v32  ;;  %v3894_v30 = vld [vmem:[%s5395_s8] sm:$0xff]  }
 0x225   : > { %1023 = vrot.lane.b32.xlu1 %v957_v5, %s4056_s7  ;;  %1398 = vrot.lane.b32.xlu0 %v1357_v42, %s4057_s12 }
 0x229   : > { %1396 = vrot.lane.b32.xlu1 %v1356_v37, %s4057_s12  ;;  %1182 = vrot.lane.b32.xlu0 %v951_v39, %s4058_s27 }
 0x22d   : > { %1402 = vrot.lane.b32.xlu1 %v1359_v50, %s4057_s12  ;;  %1404 = vrot.lane.b32.xlu0 %v1360_v58, %s4057_s12  ;;  %v1421_v58 = vsel %vm1418_vm5, %v4438_v10, %v4531_v17 }
 0x231   : > { %1190 = vrot.lane.b32.xlu1 %v955_v57, %s4058_s27  ;;  %1188 = vrot.lane.b32.xlu0 %v954_v53, %s4058_s27 }
 0x235   : > { %1408 = vrot.lane.b32.xlu1 %v954_v53, %s4057_s12  ;;  %1410 = vrot.lane.b32.xlu0 %v955_v57, %s4057_s12 }
 0x239   : > { %1196 = vrot.lane.b32.xlu1 %v958_v41, %s4058_s27  ;;  %1194 = vrot.lane.b32.xlu0 %v957_v5, %s4058_s27 }
 0x23d   : > { %1414 = vrot.lane.b32.xlu1 %v957_v5, %s4057_s12  ;;  %1416 = vrot.lane.b32.xlu0 %v958_v41, %s4057_s12 }
 0x241   : > { %1412 = vrot.lane.b32.xlu1 %v4472_v36, %s4057_s12  ;;  %1537 = vperm.xlu0 %3614, %v1531_v14   ;;  %v3895_v14 = vld [vmem:[%s5395_s8 + $0x8] sm:$0xff]  }
 0x245   : > { %1542 = vperm.xlu1 %3615, %v1532_v47   ;;  %1547 = vperm.xlu0 %3614, %v1533_v51  }
 0x249   : > { %1552 = vperm.xlu1 %3615, %v1534_v56  }
 0x26b   : > { %v1016_v15 = vpop.permute.xlu0 %1015  ;;  %v1022_v36 = vpop.permute.xlu1 %1021 }
 0x26f   : > { %v1175_v45 = vpop.permute.xlu0 %1174 }
 0x273   : > { %v4643_v38 = vpop.permute.xlu1 %1394  ;;  %v1181_v4 = vpop.permute.xlu0 %1180 }
 0x277   : > { %v4645_v31 = vpop.permute.xlu1 %1400  ;;  %v4647_v53 = vpop.permute.xlu0 %1186 }
 0x27b   : > { %v4649_v26 = vpop.permute.xlu1 %1406  ;;  %v4651_v3 = vpop.permute.xlu0 %1192 }
 0x27f   : > { %v1008_v46 = vpop.permute.xlu1 %1007  ;;  %v1004_v6 = vpop.permute.xlu0 %1003 }
 0x283   : > { %v1010_v9 = vpop.permute.xlu1 %1009  ;;  %v1014_v29 = vpop.permute.xlu0 %1013 }
 0x287   : > { %v1179_v33 = vpop.permute.xlu1 %1178  ;;  %v1006_v40 = vpop.permute.xlu0 %1005 }
 0x288   : > { %v1033_v39 = vsel %vm1027_vm2, %v1006_v40, %v1008_v46  ;;  %v1032_v41 = vsel %vm1027_vm2, %v1004_v6, %v1006_v40  ;;  %v3896_v6 = vld [vmem:[%s5395_s8 + $0x10] sm:$0xff]   ;;  %v3898_v40 = vld [vmem:[%s5395_s8 + $0x18] sm:$0xff]  }
 0x289   : > { %1062 = vmatprep.subr.bf16.mxu1 %v1033_v39  ;;  %v3899_v39 = vld [vmem:[%s5395_s8 + $0x28] sm:$0xff]  }
 0x28a   : > { %1063 = vmatpush1.bf16.msra.mxu1 %v1032_v41  ;;  %v5441_v41 = vmov 0.0  }
 0x28b   : > { %v1185_v2 = vpop.permute.xlu1 %1184  ;;  %v1018_v43 = vpop.permute.xlu0 %1017  ;;  %3707 = vrot.lane.b32.xlu0 %v5441_v41, %s4054_s18  ;;  %3712 = vrot.lane.b32.xlu1 %v5441_v41, %s4054_s18 }
 0x28c   : > { %v1036_v24 = vsel %vm1027_vm2, %v1016_v15, %v1018_v43 }
 0x28f   : > { %v1012_v20 = vpop.permute.xlu1 %1011  ;;  %v1026_v16 = vpop.permute.xlu0 %1025 }
 0x290   : > { %v1035_v22 = vsel %vm1027_vm2, %v1012_v20, %v1014_v29  ;;  %v1034_v11 = vsel %vm1027_vm2, %v1010_v9, %v1012_v20 }
 0x291   : > { %1064 = vmatprep.subr.bf16.mxu1 %v1035_v22 }
 0x292   : > { %1065 = vmatpush1.bf16.msra.mxu1 %v1034_v11 }
 0x293   : > { %v1020_v57 = vpop.permute.xlu1 %1019  ;;  %v1177_v52 = vpop.permute.xlu0 %1176 }
 0x294   : > { %v1037_v13 = vsel %vm1027_vm2, %v1018_v43, %v1020_v57  ;;  %v1204_v44 = vsel %vm1198_vm3, %v1177_v52, %v1179_v33  ;;  %v1203_v55 = vsel %vm1198_vm3, %v1175_v45, %v1177_v52 }
 0x295   : > { %1066 = vmatprep.subr.bf16.mxu1 %v1037_v13  ;;  %1233 = vmatprep.subr.bf16.mxu0 %v1204_v44  ;;  %v1111_v44 = vld [vmem:[#allocation6] sm:$0x3] }
 0x296   : > { %1067 = vmatpush1.bf16.msra.mxu1 %v1036_v24  ;;  %1234 = vmatpush1.bf16.msra.mxu0 %v1203_v55  ;;  %v1283_v55 = vld [vmem:[#allocation6 + $0x2] sm:$0x3]  ;;  %v1116_v24 = vrot.slane %v1111_v44, %v4348_v21 }
 0x297   : > { %v1024_v5 = vpop.permute.xlu1 %1023  ;;  %v1399_v42 = vpop.permute.xlu0 %1398 }
 0x298   : > { %v1039_v34 = vsel %vm1027_vm2, %v1024_v5, %v1026_v16  ;;  %v1038_v12 = vsel %vm1027_vm2, %v1022_v36, %v1024_v5  ;;  %v1288_v5 = vrot.slane %v1283_v55, %v4348_v21 }
 0x299   : > { %1068 = vmatprep.subr.bf16.mxu1 %v1039_v34  ;;  %v1292_v34 = vrot.slane %v1283_v55, %v4352_v23 }
 0x29a   : > { %1069 = vmatpush1.bf16.msra.mxu1 %v1038_v12 }
 0x29b   : > { %v1397_v32 = vpop.permute.xlu1 %1396  ;;  %1449 = vmatprep.subr.bf16.mxu1 %v1420_v27  ;;  %v1183_v37 = vpop.permute.xlu0 %1182 }
 0x29c   : > { %v1206_v35 = vsel %vm1198_vm3, %v1183_v37, %v1185_v2  ;;  %v1205_v54 = vsel %vm1198_vm3, %v1181_v4, %v1183_v37  ;;  %v1424_v8 = vsel %vm1418_vm5, %v1397_v32, %v1399_v42  ;;  %v1423_v59 = vsel %vm1418_vm5, %v4643_v38, %v1397_v32  ;;  %v1503_v37 = vld [vmem:[#allocation6 + $0x4] sm:$0x3] }
 0x29d   : > { %1235 = vmatprep.subr.bf16.mxu0 %v1206_v35  ;;  %3474 = vmatmul.mubr.msk.bf16.vlgmr.msra.gmra.mrb[0].mxu1 %vm920_vm4, %v3894_v30  ;;  %v5442_v2 = vmov 0.0|0.0   ;;  %v1120_v42 = vrot.slane %v1111_v44, %v4352_v23 }
 0x29e   : > { %1236 = vmatpush1.bf16.msra.mxu0 %v1205_v54  ;;  %1450 = vmatpush1.bf16.msra.mxu1 %v1419_v19 }
 0x29f   : > { %v1403_v48 = vpop.permute.xlu1 %1402  ;;  %1451 = vmatprep.subr.bf16.mxu1 %v1422_v49  ;;  %v1405_v50 = vpop.permute.xlu0 %1404  ;;  %1100 = vmatprep.mubr.bf16.mxu1 %v4052_v0 }
 0x2a0   : > { %v1426_v17 = vsel %vm1418_vm5, %v1403_v48, %v1405_v50  ;;  %v1425_v15 = vsel %vm1418_vm5, %v4645_v31, %v1403_v48  ;;  %1773 = vrot.lane.b32.xlu0 %v5442_v2, %s4056_s7  ;;  %1779 = vrot.lane.b32.xlu1 %v5442_v2, %s4056_s7 }
 0x2a2   : > { %1452 = vmatpush1.bf16.msra.mxu1 %v1421_v58 }
 0x2a3   : > { %v1191_v60 = vpop.permute.xlu1 %1190  ;;  %1453 = vmatprep.subr.bf16.mxu1 %v1424_v8  ;;  %v1189_v47 = vpop.permute.xlu0 %1188 }
 0x2a4   : > { %v1208_v51 = vsel %vm1198_vm3, %v1189_v47, %v1191_v60  ;;  %v1207_v56 = vsel %vm1198_vm3, %v4647_v53, %v1189_v47  ;;  %v1508_v47 = vrot.slane %v1503_v37, %v4348_v21 }
 0x2a5   : > { %1237 = vmatprep.subr.bf16.mxu0 %v1208_v51  ;;  %3475 = vmatmul.mubr.msk.bf16.gmra.mrb[4].mxu1 %vm920_vm4, %v3895_v14 }
 0x2a6   : > { %1238 = vmatpush1.bf16.msra.mxu0 %v1207_v56  ;;  %1454 = vmatpush1.bf16.msra.mxu1 %v1423_v59  ;;  %v1512_v56 = vrot.slane %v1503_v37, %v4352_v23 }
 0x2a7   : > { %v1409_v10 = vpop.permute.xlu1 %1408  ;;  %1455 = vmatprep.subr.bf16.mxu1 %v1426_v17  ;;  %v1411_v7 = vpop.permute.xlu0 %1410  ;;  %1481 = vmatprep.mubr.bf16.mxu1 %v4052_v0 }
 0x2a8   : > { %v1428_v36 = vsel %vm1418_vm5, %v1409_v10, %v1411_v7  ;;  %v1427_v46 = vsel %vm1418_vm5, %v4649_v26, %v1409_v10  ;;  %v3897_v26 = vld [vmem:[%s5395_s8 + $0x20] sm:$0xff]  }
 0x2aa   : > { %1456 = vmatpush1.bf16.msra.mxu1 %v1425_v15 }
 0x2ab   : > { %v1197_v45 = vpop.permute.xlu1 %1196  ;;  %1457 = vmatprep.subr.bf16.mxu1 %v1428_v36  ;;  %v1195_v38 = vpop.permute.xlu0 %1194 }
 0x2ac   : > { %v1210_v4 = vsel %vm1198_vm3, %v1195_v38, %v1197_v45  ;;  %v1209_v53 = vsel %vm1198_vm3, %v4651_v3, %v1195_v38 }
 0x2ad   : > { %1239 = vmatprep.subr.bf16.mxu0 %v1210_v4 }
 0x2ae   : > { %1240 = vmatpush1.bf16.msra.mxu0 %v1209_v53  ;;  %1458 = vmatpush1.bf16.msra.mxu1 %v1427_v46 }
 0x2af   : > { %v1415_v31 = vpop.permute.xlu1 %1414  ;;  %v1417_v9 = vpop.permute.xlu0 %1416 }
 0x2b0   : > { %v1430_v29 = vsel %vm1418_vm5, %v1415_v31, %v1417_v9 }
 0x2b1   : > { %3482 = vmatmul.mubr.msk.bf16.vlgmr.msra.gmra.mrb[8].mxu0 %vm920_vm4, %v3896_v6  ;;  %1459 = vmatprep.subr.bf16.mxu1 %v1430_v29 }
 0x2b2   : > { %1271 = vmatprep.mubr.bf16.mxu0 %v4052_v0 }
 0x2b3   : > { %v1413_v3 = vpop.permute.xlu1 %1412 }
 0x2b4   : > { %v1429_v33 = vsel %vm1418_vm5, %v1413_v3, %v1415_v31 }
 0x2b5   : > { %1460 = vmatpush1.bf16.msra.mxu1 %v1429_v33 }
 0x2b8   : > { %3490 = vmatmul.mubr.msk.bf16.vlgmr.msra.gmra.mrb[8].mxu1 %vm920_vm4, %v3897_v26 }
 0x2b9   : > { %3483 = vmatmul.mubr.msk.bf16.gmra.mrb[12].mxu0 %vm920_vm4, %v3898_v40  ;;  %1491 = vmatprep.mubr.bf16.mxu1 %v4052_v0 }
 0x2ba   : > { %1871 = vmatprep.mubr.bf16.mxu0 %v4052_v0 }
 0x2c0   : > { %3491 = vmatmul.mubr.msk.bf16.gmra.mrb[12].mxu1 %vm920_vm4, %v3899_v39  ;;  %v1538_v40 = vpop.permute.xlu0 %1537 }
 0x2c1   : > { %2041 = vmatprep.mubr.bf16.mxu1 %v4052_v0 }
 0x2c4   : > { %v1543_v55 = vpop.permute.xlu1 %1542 }
 0x370   : > { %v1092_v43 = vpop.f32.mrb[0].mxu1 }
 0x371   : > { %v1094_v20 = vpop.f32.mrb[1].mxu1  ;;  %v1123_v30 = vmul.f32 %v1116_v24, %v1092_v43 }
 0x372   : > { %v1096_v16 = vpop.f32.mrb[2].mxu1  ;;  %v1124_v35 = vmul.f32 %v1120_v42, %v1094_v20 }
 0x373   : > { %v1098_v22 = vpop.f32.mrb[3].mxu1  ;;  %v1125_v49 = vmul.f32 %v1116_v24, %v1096_v16 }
 0x374   : > { %v1126_v14 = vmul.f32 %v1120_v42, %v1098_v22 }
 0x378   : > { %v1102_v11 = vpop.f32.mrb[4].mxu1 }
 0x379   : > { %v1104_v57 = vpop.f32.mrb[5].mxu1  ;;  %v1127_v10 = vmul.f32 %v1116_v24, %v1102_v11 }
 0x37a   : > { %v1106_v52 = vpop.f32.mrb[6].mxu1  ;;  %v1128_v45 = vmul.f32 %v1120_v42, %v1104_v57 }
 0x37b   : > { %v1108_v13 = vpop.f32.mrb[7].mxu1  ;;  %v1129_v38 = vmul.f32 %v1116_v24, %v1106_v52 }
 0x37c   : > { %v1130_v31 = vmul.f32 %v1120_v42, %v1108_v13 }
 0x384   : > { %v1263_v12 = vpop.f32.mrb[8].mxu0 }
 0x385   : > { %v1295_v27 = vmul.f32 %v1288_v5, %v1263_v12  ;;  %v1265_v32 = vpop.f32.mrb[9].mxu0 }
 0x386   : > { %v1296_v54 = vmul.f32 %v1292_v34, %v1265_v32  ;;  %v1267_v19 = vpop.f32.mrb[10].mxu0 }
 0x387   : > { %v1303_v48 = vadd.f32 %v1295_v27, %v1123_v30  ;;  %v1297_v50 = vmul.f32 %v1288_v5, %v1267_v19  ;;  %v1269_v58 = vpop.f32.mrb[11].mxu0 }
 0x388   : > { %v1304_v8 = vadd.f32 %v1296_v54, %v1124_v35  ;;  %v1298_v60 = vmul.f32 %v1292_v34, %v1269_v58 }
 0x389   : > { %v1305_v51 = vadd.f32 %v1297_v50, %v1125_v49 }
 0x38a   : > { %v1306_v59 = vadd.f32 %v1298_v60, %v1126_v14 }
 0x38b   : > { %v1483_v17 = vpop.f32.mrb[8].mxu1 }
 0x38c   : > { %v1515_v7 = vmul.f32 %v1508_v47, %v1483_v17  ;;  %v1273_v15 = vpop.f32.mrb[12].mxu0  ;;  %v1485_v36 = vpop.f32.mrb[9].mxu1 }
 0x38d   : > { %v1299_v4 = vmul.f32 %v1288_v5, %v1273_v15  ;;  %v1516_v53 = vmul.f32 %v1512_v56, %v1485_v36  ;;  %v1275_v46 = vpop.f32.mrb[13].mxu0  ;;  %v1487_v6 = vpop.f32.mrb[10].mxu1 }
 0x38e   : > { %v1523_v9 = vadd.f32 %v1515_v7, %v1303_v48  ;;  %v1300_v29 = vmul.f32 %v1292_v34, %v1275_v46  ;;  %v1517_v3 = vmul.f32 %v1508_v47, %v1487_v6  ;;  %v1277_v33 = vpop.f32.mrb[14].mxu0  ;;  %v1489_v26 = vpop.f32.mrb[11].mxu1 }
 0x38f   : > { %v1307_v39 = vadd.f32 %v1299_v4, %v1127_v10  ;;  %v1524_v43 = vadd.f32 %v1516_v53, %v1304_v8  ;;  %v1301_v20 = vmul.f32 %v1288_v5, %v1277_v33  ;;  %v1518_v16 = vmul.f32 %v1512_v56, %v1489_v26  ;;  %v1279_v22 = vpop.f32.mrb[15].mxu0  ;;  %v1553_v4 = vpop.permute.xlu1 %1552 }
 0x390   : > { %v1555_v11 = vadd.f32 %v1538_v40, %v1523_v9  ;;  %v1308_v44 = vadd.f32 %v1300_v29, %v1128_v45  ;;  %v1525_v57 = vadd.f32 %v1517_v3, %v1305_v51  ;;  %v1302_v52 = vmul.f32 %v1292_v34, %v1279_v22 }
 0x391   : > { %v1556_v24 = vadd.f32 %v1538_v40, %v1524_v43  ;;  %v1309_v12 = vadd.f32 %v1301_v20, %v1129_v38  ;;  %v1526_v30 = vadd.f32 %v1518_v16, %v1306_v59  ;;  %v1548_v59 = vpop.permute.xlu0 %1547 }
 0x392   : > { %v1563_v13 = vmax.f32 %v1555_v11, 0.0  ;;  %v1557_v42 = vadd.f32 %v1543_v55, %v1525_v57  ;;  %v1310_v27 = vadd.f32 %v1302_v52, %v1130_v31 }
 0x393   : > { %v1564_v32 = vmax.f32 %v1556_v24, 0.0  ;;  %v1558_v37 = vadd.f32 %v1543_v55, %v1526_v30  ;;  %v1493_v35 = vpop.f32.mrb[12].mxu1 }
 0x394   : > { %v1571_v54 = vmul.f32 %v1563_v13, %v4355_v25  ;;  %v1565_v19 = vmax.f32 %v1557_v42, 0.0  ;;  %v1519_v5 = vmul.f32 %v1508_v47, %v1493_v35  ;;  %v1495_v49 = vpop.f32.mrb[13].mxu1 }
 0x395   : > { %v1572_v48 = vmul.f32 %v1564_v32, %v4358_v28  ;;  %v1566_v50 = vmax.f32 %v1558_v37, 0.0  ;;  %v1520_v58 = vmul.f32 %v1512_v56, %v1495_v49  ;;  %v1497_v34 = vpop.f32.mrb[14].mxu1  ;;  %v3708_v24 = vpop.permute.xlu0 %3707 }
 0x396   : > { %v1573_v14 = vmul.f32 %v1565_v19, %v4355_v25  ;;  %v1527_v8 = vadd.f32 %v1519_v5, %v1307_v39  ;;  %v1521_v60 = vmul.f32 %v1508_v47, %v1497_v34  ;;  %v1499_v51 = vpop.f32.mrb[15].mxu1 }
 0x397   : > { %v1574_v17 = vmul.f32 %v1566_v50, %v4358_v28  ;;  %v1528_v10 = vadd.f32 %v1520_v58, %v1308_v44  ;;  %v1522_v7 = vmul.f32 %v1512_v56, %v1499_v51  ;;  %v3716_v15 = vpack.i.bf16 %v1572_v48, %v1571_v54 }
 0x398   : > { %v1559_v36 = vadd.f32 %v1548_v59, %v1527_v8  ;;  %v1529_v45 = vadd.f32 %v1521_v60, %v1309_v12  ;;  %v3731_v38 = vpack.i.bf16 %v1573_v14, %v5441_v41  ;;  %v1724_v26 = vpack.c.bf16 %v1573_v14, %v1571_v54  ;;  %v4784_v12 = vpop.permute.xlu1 %3712 }
 0x399   : > { %v1560_v53 = vadd.f32 %v1548_v59, %v1528_v10  ;;  %v1530_v46 = vadd.f32 %v1522_v7, %v1310_v27  ;;  %3717 = vrot.lane.b32.xlu0 %v3716_v15, %s4054_s18  ;;  %v3741_v47 = vpack.i.bf16 %v1574_v17, %v1573_v14  ;;  %v1725_v3 = vpack.c.bf16 %v1574_v17, %v1572_v48  ;;  %v1774_v30 = vpop.permute.xlu0 %1773 }
 0x39a   : > { %v1567_v6 = vmax.f32 %v1559_v36, 0.0  ;;  %v1561_v31 = vadd.f32 %v1553_v4, %v1529_v45  ;;  %3732 = vrot.lane.b32.xlu1 %v3731_v38, %s4059_s29  ;;  %v3746_v57 = vpack.i.bf16 %v5441_v41, %v1574_v17  ;;  %v3710_v14 = vunpack.i.h.bf16 %v3708_v24 }
 0x39b   : > { %v1568_v9 = vmax.f32 %v1560_v53, 0.0  ;;  %v1562_v29 = vadd.f32 %v1553_v4, %v1530_v46  ;;  %v3709_v17 = vunpack.i.l.bf16 %v3708_v24 }
 0x39c   : > { %v1575_v56 = vmul.f32 %v1567_v6, %v4355_v25  ;;  %v1569_v33 = vmax.f32 %v1561_v31, 0.0  ;;  %v4786_v13 = vpop.permute.xlu1 %1779 }
 0x39d   : > { %v1576_v40 = vmul.f32 %v1568_v9, %v4358_v28  ;;  %v1570_v39 = vmax.f32 %v1562_v29, 0.0  ;;  %3722 = vrot.lane.b32.xlu0 %v3716_v15, %s4059_s29 }
 0x39e   : > { %v1577_v43 = vmul.f32 %v1569_v33, %v4355_v25  ;;  %3737 = vrot.lane.b32.xlu1 %v3731_v38, %s4054_s18 }
 0x39f   : > { %v1578_v20 = vmul.f32 %v1570_v39, %v4358_v28  ;;  %v3756_v16 = vpack.i.bf16 %v1576_v40, %v1575_v56 }
 0x3a0   : > { %v1727_v22 = vpack.c.bf16 %v1577_v43, %v1575_v56  ;;  %v3771_v52 = vpack.i.bf16 %v1577_v43, %v5441_v41 }
 0x3a1   : > { %3727 = vrot.lane.b32.xlu0 %v3716_v15, %s4054_s18  ;;  %v3781_v11 = vpack.i.bf16 %v1578_v20, %v1577_v43  ;;  %v1728_v44 = vpack.c.bf16 %v1578_v20, %v1576_v40  ;;  %v3786_v55 = vpack.i.bf16 %v5441_v41, %v1578_v20 }
 0x3a2   : > { %3742 = vrot.lane.b32.xlu1 %v3741_v47, %s4054_s18 }
 0x3a5   : > { %3747 = vrot.lane.b32.xlu0 %v3746_v57, %s4059_s29 }
 0x3a6   : > { %1777 = vrot.lane.b32.xlu1 %v1725_v3, %s4056_s7 }
 0x3a9   : > { %3752 = vrot.lane.b32.xlu0 %v3746_v57, %s4054_s18 }
 0x3aa   : > { %1947 = vrot.lane.b32.xlu1 %v1725_v3, %s4058_s27 }
 0x3ad   : > { %1775 = vrot.lane.b32.xlu0 %v1724_v26, %s4056_s7 }
 0x3ae   : > { %3757 = vrot.lane.b32.xlu1 %v3756_v16, %s4054_s18 }
 0x3b1   : > { %1945 = vrot.lane.b32.xlu0 %v1724_v26, %s4058_s27 }
 0x3b2   : > { %3762 = vrot.lane.b32.xlu1 %v3756_v16, %s4059_s29 }
 0x3b5   : > { %3772 = vrot.lane.b32.xlu0 %v3771_v52, %s4059_s29 }
 0x3b6   : > { %3767 = vrot.lane.b32.xlu1 %v3756_v16, %s4054_s18 }
 0x3b9   : > { %3777 = vrot.lane.b32.xlu0 %v3771_v52, %s4054_s18 }
 0x3ba   : > { %2163 = vrot.lane.b32.xlu1 %v1724_v26, %s4057_s12 }
 0x3bd   : > { %3782 = vrot.lane.b32.xlu0 %v3781_v11, %s4054_s18 }
 0x3be   : > { %2161 = vrot.lane.b32.xlu1 %v5442_v2, %s4057_s12 }
 0x3c1   : > { %1943 = vrot.lane.b32.xlu0 %v5442_v2, %s4058_s27 }
 0x3c2   : > { %2167 = vrot.lane.b32.xlu1 %v5442_v2, %s4057_s12 }
 0x3c5   : > { %2165 = vrot.lane.b32.xlu0 %v1725_v3, %s4057_s12 }
 0x3c6   : > { %3787 = vrot.lane.b32.xlu1 %v3786_v55, %s4059_s29 }
 0x3c9   : > { %1949 = vrot.lane.b32.xlu0 %v5442_v2, %s4058_s27 }
 0x3ca   : > { %3792 = vrot.lane.b32.xlu1 %v3786_v55, %s4054_s18 }
 0x3cd   : > { %1951 = vrot.lane.b32.xlu0 %v1727_v22, %s4058_s27 }
 0x3ce   : > { %1781 = vrot.lane.b32.xlu1 %v1727_v22, %s4056_s7 }
 0x3d1   : > { %1783 = vrot.lane.b32.xlu0 %v1728_v44, %s4056_s7 }
 0x3d2   : > { %2169 = vrot.lane.b32.xlu1 %v1727_v22, %s4057_s12 }
 0x3d5   : > { %2171 = vrot.lane.b32.xlu0 %v1728_v44, %s4057_s12 }
 0x3d6   : > { %1953 = vrot.lane.b32.xlu1 %v1728_v44, %s4058_s27 }
 0x40b   : > { %v3718_v42 = vpop.permute.xlu0 %3717 }
 0x40c   : > { %v3733_v27 = vpop.permute.xlu1 %3732  ;;  %v3719_v58 = vunpack.i.l.bf16 %v3718_v42  ;;  %v3720_v10 = vunpack.i.h.bf16 %v3718_v42 }
 0x40d   : > { %v3735_v37 = vunpack.i.h.bf16 %v3733_v27  ;;  %v3734_v29 = vunpack.i.l.bf16 %v3733_v27 }
 0x40e   : > { %v1647_v36 = vsel %vm863_vm1, %v3709_v17, %v3719_v58  ;;  %v1648_v9 = vsel %vm863_vm1, %v3719_v58, %v3720_v10  ;;  %v3714_v17 = vunpack.i.l.bf16 %v4784_v12 }
 0x40f   : > { %v3723_v32 = vpop.permute.xlu0 %3722 }
 0x410   : > { %v3724_v35 = vunpack.i.l.bf16 %v3723_v32  ;;  %v4788_v54 = vpop.permute.xlu1 %3737  ;;  %v3725_v47 = vunpack.i.h.bf16 %v3723_v32 }
 0x411   : > { %v3740_v49 = vunpack.i.h.bf16 %v4788_v54 }
 0x412   : > { %v4790_v19 = vpack.c.bf16 %v3735_v37, %v3724_v35  ;;  %v1704_v16 = vsel %vm920_vm4, %v3725_v47, %v3734_v29  ;;  %v1703_v11 = vsel %vm920_vm4, %v3724_v35, %v3725_v47  ;;  %v3739_v35 = vunpack.i.l.bf16 %v4788_v54 }
 0x413   : > { %v4792_v5 = vpop.permute.xlu0 %3727 }
 0x414   : > { %v3729_v48 = vunpack.i.l.bf16 %v4792_v5  ;;  %v3743_v50 = vpop.permute.xlu1 %3742  ;;  %1797 = vrot.lane.b32.xlu0 %v4790_v19, %s4056_s7  ;;  %v3730_v22 = vunpack.i.h.bf16 %v4792_v5 }
 0x415   : > { %v3744_v34 = vunpack.i.l.bf16 %v3743_v50  ;;  %v3745_v60 = vunpack.i.h.bf16 %v3743_v50 }
 0x416   : > { %v2134_v8 = vpack.c.bf16 %v3740_v49, %v3729_v48  ;;  %v2114_v27 = vsel %vm863_vm1, %v3729_v48, %v3730_v22  ;;  %v2115_v48 = vsel %vm863_vm1, %v3730_v22, %v3739_v35 }
 0x417   : > { %v3748_v51 = vpop.permute.xlu0 %3747  ;;  %v1924_v59 = vpack.c.bf16 %v3744_v34, %v3719_v58  ;;  %v1649_v7 = vsel %vm863_vm1, %v3710_v14, %v3744_v34  ;;  %v1731_v45 = vpack.c.bf16 %v3745_v60, %v3720_v10  ;;  %v1650_v6 = vsel %vm863_vm1, %v3744_v34, %v3745_v60 }
 0x418   : > { %v1778_v15 = vpop.permute.xlu1 %1777  ;;  %2173 = vrot.lane.b32.xlu1 %v2134_v8, %s4057_s12  ;;  %v3750_v38 = vunpack.i.h.bf16 %v3748_v51  ;;  %v3749_v4 = vunpack.i.l.bf16 %v3748_v51  ;;  %v1729_v46 = vpack.c.bf16 %v1649_v7, %v1647_v36  ;;  %v1730_v26 = vpack.c.bf16 %v1650_v6, %v1648_v9 }
 0x419   : > { %1955 = vrot.lane.b32.xlu0 %v1924_v59, %s4058_s27  ;;  %v3715_v59 = vunpack.i.h.bf16 %v4784_v12 }
 0x41a   : > { %v1706_v3 = vsel %vm920_vm4, %v3749_v4, %v3750_v38  ;;  %v1705_v40 = vsel %vm920_vm4, %v3735_v37, %v3749_v4 }
 0x41b   : > { %v3753_v53 = vpop.permute.xlu0 %3752  ;;  %v4817_v44 = vpack.c.bf16 %v1706_v3, %v1704_v16  ;;  %v4820_v55 = vpack.c.bf16 %v1705_v40, %v1703_v11 }
 0x41c   : > { %v1948_v31 = vpop.permute.xlu1 %1947  ;;  %1789 = vrot.lane.b32.xlu1 %v1731_v45, %s4056_s7  ;;  %v3754_v56 = vunpack.i.l.bf16 %v3753_v53  ;;  %v3755_v24 = vunpack.i.h.bf16 %v3753_v53 }
 0x41d   : > { %1785 = vrot.lane.b32.xlu0 %v1729_v46, %s4056_s7 }
 0x41e   : > { %v2116_v57 = vsel %vm863_vm1, %v3740_v49, %v3754_v56  ;;  %v2117_v5 = vsel %vm863_vm1, %v3754_v56, %v3755_v24 }
 0x41f   : > { %v1776_v33 = vpop.permute.xlu0 %1775  ;;  %v2135_v32 = vpack.c.bf16 %v2116_v57, %v2114_v27  ;;  %v2136_v8 = vpack.c.bf16 %v2117_v5, %v2115_v48 }
 0x420   : > { %v4808_v39 = vpop.permute.xlu1 %3757  ;;  %1959 = vrot.lane.b32.xlu1 %v1731_v45, %s4058_s27  ;;  %v1810_v43 = vsel %vm1027_vm2, %v1776_v33, %v1778_v15  ;;  %v1809_v20 = vsel %vm1027_vm2, %v1774_v30, %v1776_v33 }
 0x421   : > { %1839 = vmatprep.subr.bf16.mxu0 %v1810_v43  ;;  %1787 = vrot.lane.b32.xlu0 %v1730_v26, %s4056_s7  ;;  %v3759_v54 = vunpack.i.l.bf16 %v4808_v39  ;;  %v3760_v46 = vunpack.i.h.bf16 %v4808_v39 }
 0x422   : > { %1840 = vmatpush1.bf16.msra.mxu0 %v1809_v20 }
 0x423   : > { %v1946_v52 = vpop.permute.xlu0 %1945  ;;  %v1651_v15 = vsel %vm863_vm1, %v3714_v17, %v3759_v54  ;;  %v1652_v3 = vsel %vm863_vm1, %v3759_v54, %v3760_v46 }
 0x424   : > { %v4822_v42 = vpop.permute.xlu1 %3762  ;;  %1801 = vrot.lane.b32.xlu1 %v4817_v44, %s4056_s7  ;;  %v1980_v30 = vsel %vm1198_vm3, %v1946_v52, %v1948_v31 }
 0x425   : > { %2009 = vmatprep.subr.bf16.mxu1 %v1980_v30  ;;  %1799 = vrot.lane.b32.xlu0 %v4820_v55, %s4056_s7  ;;  %v3764_v49 = vunpack.i.l.bf16 %v4822_v42  ;;  %v3765_v22 = vunpack.i.h.bf16 %v4822_v42 }
 0x427   : > { %v3773_v37 = vpop.permute.xlu0 %3772 }
 0x428   : > { %v3775_v50 = vunpack.i.h.bf16 %v3773_v37  ;;  %v4833_v58 = vpop.permute.xlu1 %3767  ;;  %2175 = vrot.lane.b32.xlu1 %v2135_v32, %s4057_s12  ;;  %v3774_v20 = vunpack.i.l.bf16 %v3773_v37  ;;  %v1707_v32 = vsel %vm920_vm4, %v3764_v49, %v3765_v22 }
 0x429   : > { %1957 = vrot.lane.b32.xlu0 %v1730_v26, %s4058_s27  ;;  %v3769_v16 = vunpack.i.l.bf16 %v4833_v58  ;;  %v3770_v17 = vunpack.i.h.bf16 %v4833_v58  ;;  %v2309_v58 = vld [vmem:[%s5398_s11 + $0x8] sm:$0xff] }
 0x42a   : > { %v4838_v34 = vpack.c.bf16 %v3775_v50, %v3764_v49  ;;  %v1708_v27 = vsel %vm920_vm4, %v3765_v22, %v3774_v20 }
 0x42b   : > { %v4840_v14 = vpop.permute.xlu0 %3777 }
 0x42c   : > { %v4842_v60 = vpop.permute.xlu1 %2163  ;;  %1803 = vrot.lane.b32.xlu1 %v4838_v34, %s4056_s7  ;;  %v3780_v56 = vunpack.i.h.bf16 %v4840_v14 }
 0x42d   : > { %2177 = vrot.lane.b32.xlu0 %v2136_v8, %s4057_s12 }
 0x42e   : > { %v2137_v11 = vpack.c.bf16 %v3780_v56, %v3769_v16 }
 0x42f   : > { %v3783_v51 = vpop.permute.xlu0 %3782 }
 0x430   : > { %v3784_v10 = vunpack.i.l.bf16 %v3783_v51  ;;  %v4850_v7 = vpop.permute.xlu1 %2161  ;;  %v3785_v36 = vunpack.i.h.bf16 %v3783_v51 }
 0x432   : > { %v1653_v45 = vsel %vm863_vm1, %v3715_v59, %v3784_v10  ;;  %v1925_v38 = vpack.c.bf16 %v3784_v10, %v3759_v54  ;;  %v1734_v12 = vpack.c.bf16 %v3785_v36, %v3760_v46  ;;  %v1654_v9 = vsel %vm863_vm1, %v3784_v10, %v3785_v36 }
 0x433   : > { %v1944_v4 = vpop.permute.xlu0 %1943  ;;  %v1732_v53 = vpack.c.bf16 %v1653_v45, %v1651_v15  ;;  %v1733_v39 = vpack.c.bf16 %v1654_v9, %v1652_v3  ;;  %v2118_v36 = vsel %vm863_vm1, %v3769_v16, %v3770_v17 }
 0x434   : > { %v1979_v6 = vsel %vm1198_vm3, %v1944_v4, %v1946_v52  ;;  %v4856_v31 = vpop.permute.xlu1 %2167  ;;  %1961 = vrot.lane.b32.xlu0 %v1925_v38, %s4058_s27  ;;  %v2311_v38 = vld [vmem:[%s5398_s11 + $0x18] sm:$0xff] }
 0x435   : > { %2010 = vmatpush1.bf16.msra.mxu1 %v1979_v6  ;;  %1791 = vrot.lane.b32.xlu1 %v1732_v53, %s4056_s7 }
 0x437   : > { %v4860_v47 = vpop.permute.xlu0 %2165 }
 0x438   : > { %v3788_v29 = vpop.permute.xlu1 %3787  ;;  %1795 = vrot.lane.b32.xlu0 %v1734_v12, %s4056_s7 }
 0x439   : > { %1965 = vrot.lane.b32.xlu1 %v1734_v12, %s4058_s27  ;;  %v3790_v33 = vunpack.i.h.bf16 %v3788_v29  ;;  %v3789_v26 = vunpack.i.l.bf16 %v3788_v29 }
 0x43b   : > { %v1950_v40 = vpop.permute.xlu0 %1949  ;;  %v1710_v57 = vsel %vm920_vm4, %v3789_v26, %v3790_v33  ;;  %v1709_v24 = vsel %vm920_vm4, %v3775_v50, %v3789_v26 }
 0x43c   : > { %v3793_v43 = vpop.permute.xlu1 %3792  ;;  %1969 = vrot.lane.b32.xlu0 %v4820_v55, %s4058_s27  ;;  %v1740_v37 = vpack.c.bf16 %v1710_v57, %v1708_v27  ;;  %v1739_v5 = vpack.c.bf16 %v1709_v24, %v1707_v32 }
 0x43d   : > { %1793 = vrot.lane.b32.xlu1 %v1733_v39, %s4056_s7  ;;  %v3795_v51 = vunpack.i.h.bf16 %v3793_v43  ;;  %v3794_v59 = vunpack.i.l.bf16 %v3793_v43 }
 0x43f   : > { %v1952_v52 = vpop.permute.xlu0 %1951  ;;  %v2120_v10 = vsel %vm863_vm1, %v3780_v56, %v3794_v59 }
 0x440   : > { %v1782_v30 = vpop.permute.xlu1 %1781  ;;  %1967 = vrot.lane.b32.xlu0 %v4790_v19, %s4058_s27  ;;  %v1981_v54 = vsel %vm1198_vm3, %v1950_v40, %v1952_v52 }
 0x441   : > { %2179 = vrot.lane.b32.xlu1 %v2137_v11, %s4057_s12  ;;  %v1811_v50 = vsel %vm1027_vm2, %v4786_v13, %v1782_v30  ;;  %v3779_v13 = vunpack.i.l.bf16 %v4840_v14  ;;  %v2138_v14 = vpack.c.bf16 %v2120_v10, %v2118_v36  ;;  %v2197_v10 = vsel %vm1418_vm5, %v4850_v7, %v4842_v60 }
 0x443   : > { %v1784_v35 = vpop.permute.xlu0 %1783  ;;  %v2119_v15 = vsel %vm863_vm1, %v3770_v17, %v3779_v13  ;;  %v2198_v17 = vsel %vm1418_vm5, %v4842_v60, %v4860_v47 }
 0x444   : > { %v4879_v42 = vpop.permute.xlu1 %2169  ;;  %1807 = vrot.lane.b32.xlu0 %v1740_v37, %s4056_s7  ;;  %v1812_v48 = vsel %vm1027_vm2, %v1782_v30, %v1784_v35 }
 0x445   : > { %1841 = vmatprep.subr.bf16.mxu0 %v1812_v48  ;;  %1805 = vrot.lane.b32.xlu1 %v1739_v5, %s4056_s7  ;;  %v2199_v47 = vsel %vm1418_vm5, %v4856_v31, %v4879_v42 }
 0x446   : > { %1842 = vmatpush1.bf16.msra.mxu0 %v1811_v50 }
 0x447   : > { %v2172_v4 = vpop.permute.xlu0 %2171 }
 0x448   : > { %v1954_v8 = vpop.permute.xlu1 %1953  ;;  %2189 = vrot.lane.b32.xlu0 %v4817_v44, %s4057_s12  ;;  %v2200_v36 = vsel %vm1418_vm5, %v4879_v42, %v2172_v4 }
 0x449   : > { %1971 = vrot.lane.b32.xlu1 %v4817_v44, %s4058_s27  ;;  %v1982_v49 = vsel %vm1198_vm3, %v1952_v52, %v1954_v8  ;;  %v2121_v44 = vsel %vm863_vm1, %v3794_v59, %v3795_v51  ;;  %v3900_v59 = vld [vmem:[%s5397_s10] sm:$0xff]  }
 0x44a   : > { %2011 = vmatprep.subr.bf16.mxu1 %v1982_v49  ;;  %v2139_v45 = vpack.c.bf16 %v2121_v44, %v2119_v15 }
 0x44b   : > { %2012 = vmatpush1.bf16.msra.mxu1 %v1981_v54 }
 0x44c   : > { %1973 = vrot.lane.b32.xlu0 %v4838_v34, %s4058_s27 }
 0x44d   : > { %2187 = vrot.lane.b32.xlu1 %v4820_v55, %s4057_s12  ;;  %v2310_v55 = vld [vmem:[%s5398_s11 + $0x10] sm:$0xff] }
 0x450   : > { %1963 = vrot.lane.b32.xlu0 %v1733_v39, %s4058_s27 }
 0x451   : > { %2185 = vrot.lane.b32.xlu1 %v4790_v19, %s4057_s12  ;;  %v2308_v19 = vld [vmem:[%s5398_s11] sm:$0xff] }
 0x454   : > { %2183 = vrot.lane.b32.xlu0 %v2139_v45, %s4057_s12 }
 0x455   : > { %2181 = vrot.lane.b32.xlu1 %v2138_v14, %s4057_s12  ;;  %v3901_v14 = vld [vmem:[%s5397_s10 + $0x8] sm:$0xff]  }
 0x458   : > { %1975 = vrot.lane.b32.xlu0 %v1739_v5, %s4058_s27 }
 0x459   : > { %1977 = vrot.lane.b32.xlu1 %v1740_v37, %s4058_s27 }
 0x45c   : > { %2195 = vrot.lane.b32.xlu0 %v1740_v37, %s4057_s12 }
 0x45d   : > { %2193 = vrot.lane.b32.xlu1 %v1739_v5, %s4057_s12 }
 0x460   : > { %2314 = vperm.xlu0 %3614, %v2308_v19  }
 0x461   : > { %2191 = vrot.lane.b32.xlu1 %v4838_v34, %s4057_s12 }
 0x464   : > { %2324 = vperm.xlu0 %3614, %v2310_v55  }
 0x465   : > { %2319 = vperm.xlu1 %3615, %v2309_v58  }
 0x468   : > { %3797 = vrot.lane.b32.xlu0 %v5441_v41, %s4054_s18 }
 0x469   : > { %2329 = vperm.xlu1 %3615, %v2311_v38  }
 0x46c   : > { %2550 = vrot.lane.b32.xlu0 %v5442_v2, %s4056_s7 }
 0x46d   : > { %3802 = vrot.lane.b32.xlu1 %v5441_v41, %s4054_s18 }
 0x471   : > { %2556 = vrot.lane.b32.xlu1 %v5442_v2, %s4056_s7 }
 0x486   : > { %v1798_v53 = vpop.permute.xlu0 %1797 }
 0x48a   : > { %v4925_v46 = vpop.permute.xlu1 %2173 }
 0x48b   : > { %v1956_v34 = vpop.permute.xlu0 %1955 }
 0x48e   : > { %v1790_v6 = vpop.permute.xlu1 %1789 }
 0x48f   : > { %v1786_v12 = vpop.permute.xlu0 %1785 }
 0x492   : > { %v1960_v9 = vpop.permute.xlu1 %1959 }
 0x493   : > { %v1788_v29 = vpop.permute.xlu0 %1787 }
 0x494   : > { %v1814_v3 = vsel %vm1027_vm2, %v1788_v29, %v1790_v6  ;;  %v1813_v56 = vsel %vm1027_vm2, %v1786_v12, %v1788_v29 }
 0x495   : > { %1843 = vmatprep.subr.bf16.mxu0 %v1814_v3 }
 0x496   : > { %1844 = vmatpush1.bf16.msra.mxu0 %v1813_v56  ;;  %v1802_v33 = vpop.permute.xlu1 %1801 }
 0x497   : > { %v1800_v26 = vpop.permute.xlu0 %1799 }
 0x498   : > { %v1818_v5 = vsel %vm1027_vm2, %v1800_v26, %v1802_v33  ;;  %v1817_v50 = vsel %vm1027_vm2, %v1798_v53, %v1800_v26  ;;  %v3902_v33 = vld [vmem:[%s5397_s10 + $0x10] sm:$0xff]  }
 0x49a   : > { %v2176_v20 = vpop.permute.xlu1 %2175 }
 0x49b   : > { %v1958_v40 = vpop.permute.xlu0 %1957  ;;  %v2201_v31 = vsel %vm1418_vm5, %v4925_v46, %v2176_v20 }
 0x49c   : > { %v1984_v39 = vsel %vm1198_vm3, %v1958_v40, %v1960_v9  ;;  %v1983_v43 = vsel %vm1198_vm3, %v1956_v34, %v1958_v40 }
 0x49d   : > { %2013 = vmatprep.subr.bf16.mxu1 %v1984_v39 }
 0x49e   : > { %2014 = vmatpush1.bf16.msra.mxu1 %v1983_v43  ;;  %v1804_v22 = vpop.permute.xlu1 %1803 }
 0x49f   : > { %v2178_v16 = vpop.permute.xlu0 %2177 }
 0x4a0   : > { %v2202_v7 = vsel %vm1418_vm5, %v2176_v20, %v2178_v16  ;;  %v3903_v16 = vld [vmem:[%s5397_s10 + $0x20] sm:$0xff]  }
 0x4a6   : > { %v1962_v11 = vpop.permute.xlu0 %1961 }
 0x4a7   : > { %v1792_v57 = vpop.permute.xlu1 %1791 }
 0x4aa   : > { %v1796_v52 = vpop.permute.xlu0 %1795 }
 0x4ab   : > { %v1966_v24 = vpop.permute.xlu1 %1965 }
 0x4ae   : > { %v1970_v30 = vpop.permute.xlu0 %1969 }
 0x4af   : > { %v1794_v27 = vpop.permute.xlu1 %1793 }
 0x4b0   : > { %v1816_v32 = vsel %vm1027_vm2, %v1794_v27, %v1796_v52  ;;  %v1815_v37 = vsel %vm1027_vm2, %v1792_v57, %v1794_v27 }
 0x4b1   : > { %1845 = vmatprep.subr.bf16.mxu0 %v1816_v32 }
 0x4b2   : > { %1846 = vmatpush1.bf16.msra.mxu0 %v1815_v37  ;;  %v1968_v35 = vpop.permute.xlu0 %1967 }
 0x4b3   : > { %v2180_v48 = vpop.permute.xlu1 %2179  ;;  %1847 = vmatprep.subr.bf16.mxu0 %v1818_v5  ;;  %v1987_v53 = vsel %vm1198_vm3, %v1968_v35, %v1970_v30  ;;  %v1892_v5 = vld [vmem:[#allocation6] sm:$0x3] }
 0x4b6   : > { %1848 = vmatpush1.bf16.msra.mxu0 %v1817_v50  ;;  %v1808_v8 = vpop.permute.xlu0 %1807  ;;  %v1897_v50 = vrot.slane %v1892_v5, %v4348_v21 }
 0x4b7   : > { %v1806_v49 = vpop.permute.xlu1 %1805 }
 0x4b8   : > { %v1820_v54 = vsel %vm1027_vm2, %v1806_v49, %v1808_v8  ;;  %v1819_v51 = vsel %vm1027_vm2, %v1804_v22, %v1806_v49  ;;  %v3904_v22 = vld [vmem:[%s5397_s10 + $0x18] sm:$0xff]   ;;  %v1901_v49 = vrot.slane %v1892_v5, %v4352_v23 }
 0x4b9   : > { %1849 = vmatprep.subr.bf16.mxu0 %v1820_v54 }
 0x4ba   : > { %1850 = vmatpush1.bf16.msra.mxu0 %v1819_v51  ;;  %v2190_v13 = vpop.permute.xlu0 %2189 }
 0x4bb   : > { %v1972_v44 = vpop.permute.xlu1 %1971  ;;  %2227 = vmatprep.subr.bf16.mxu0 %v2198_v17 }
 0x4bc   : > { %v1988_v38 = vsel %vm1198_vm3, %v1970_v30, %v1972_v44  ;;  %v2280_v44 = vld [vmem:[#allocation6 + $0x4] sm:$0x3] }
 0x4bd   : > { %3494 = vmatmul.mubr.msk.bf16.vlgmr.msra.gmra.mrb[16].mxu0 %vm920_vm4, %v3900_v59 }
 0x4be   : > { %2228 = vmatpush1.bf16.msra.mxu0 %v2197_v10  ;;  %v1974_v15 = vpop.permute.xlu0 %1973  ;;  %1881 = vmatprep.mubr.bf16.mxu0 %v4052_v0 }
 0x4bf   : > { %v2188_v45 = vpop.permute.xlu1 %2187  ;;  %2229 = vmatprep.subr.bf16.mxu0 %v2200_v36 }
 0x4c0   : > { %v2206_v46 = vsel %vm1418_vm5, %v2188_v45, %v2190_v13 }
 0x4c2   : > { %2230 = vmatpush1.bf16.msra.mxu0 %v2199_v47  ;;  %v1964_v60 = vpop.permute.xlu0 %1963 }
 0x4c3   : > { %v1985_v19 = vsel %vm1198_vm3, %v1962_v11, %v1964_v60  ;;  %v2186_v55 = vpop.permute.xlu1 %2185  ;;  %2231 = vmatprep.subr.bf16.mxu0 %v2202_v7  ;;  %v1986_v58 = vsel %vm1198_vm3, %v1964_v60, %v1966_v24  ;;  %v3905_v11 = vld [vmem:[%s5397_s10 + $0x28] sm:$0xff]  }
 0x4c4   : > { %2015 = vmatprep.subr.bf16.mxu1 %v1986_v58  ;;  %v2205_v3 = vsel %vm1418_vm5, %v2186_v55, %v2188_v45  ;;  %v2285_v58 = vrot.slane %v2280_v44, %v4348_v21 }
 0x4c5   : > { %2016 = vmatpush1.bf16.msra.mxu1 %v1985_v19  ;;  %3495 = vmatmul.mubr.msk.bf16.gmra.mrb[20].mxu0 %vm920_vm4, %v3901_v14 }
 0x4c6   : > { %2017 = vmatprep.subr.bf16.mxu1 %v1988_v38  ;;  %2232 = vmatpush1.bf16.msra.mxu0 %v2201_v31  ;;  %v2184_v42 = vpop.permute.xlu0 %2183  ;;  %v2289_v31 = vrot.slane %v2280_v44, %v4352_v23 }
 0x4c7   : > { %v2182_v4 = vpop.permute.xlu1 %2181  ;;  %2259 = vmatprep.mubr.bf16.mxu0 %v4052_v0 }
 0x4c8   : > { %v2203_v34 = vsel %vm1418_vm5, %v2180_v48, %v2182_v4  ;;  %v2204_v6 = vsel %vm1418_vm5, %v2182_v4, %v2184_v42  ;;  %v2062_v48 = vld [vmem:[#allocation6 + $0x2] sm:$0x3] }
 0x4c9   : > { %2018 = vmatpush1.bf16.msra.mxu1 %v1987_v53  ;;  %2233 = vmatprep.subr.bf16.mxu0 %v2204_v6  ;;  %v2067_v8 = vrot.slane %v2062_v48, %v4348_v21  ;;  %v2071_v54 = vrot.slane %v2062_v48, %v4352_v23 }
 0x4ca   : > { %2234 = vmatpush1.bf16.msra.mxu0 %v2203_v34  ;;  %v1976_v12 = vpop.permute.xlu0 %1975 }
 0x4cb   : > { %v1978_v9 = vpop.permute.xlu1 %1977  ;;  %2235 = vmatprep.subr.bf16.mxu0 %v2206_v46  ;;  %v1989_v56 = vsel %vm1198_vm3, %v1974_v15, %v1976_v12 }
 0x4cc   : > { %v1990_v29 = vsel %vm1198_vm3, %v1976_v12, %v1978_v9 }
 0x4cd   : > { %2019 = vmatprep.subr.bf16.mxu1 %v1990_v29 }
 0x4ce   : > { %2020 = vmatpush1.bf16.msra.mxu1 %v1989_v56  ;;  %2236 = vmatpush1.bf16.msra.mxu0 %v2205_v3  ;;  %v2196_v26 = vpop.permute.xlu0 %2195 }
 0x4cf   : > { %v2194_v40 = vpop.permute.xlu1 %2193 }
 0x4d0   : > { %v2208_v39 = vsel %vm1418_vm5, %v2194_v40, %v2196_v26 }
 0x4d1   : > { %3502 = vmatmul.mubr.msk.bf16.vlgmr.msra.gmra.mrb[16].mxu1 %vm920_vm4, %v3902_v33  ;;  %2237 = vmatprep.subr.bf16.mxu0 %v2208_v39 }
 0x4d2   : > { %2051 = vmatprep.mubr.bf16.mxu1 %v4052_v0 }
 0x4d3   : > { %v2192_v43 = vpop.permute.xlu1 %2191 }
 0x4d4   : > { %v2207_v20 = vsel %vm1418_vm5, %v2192_v43, %v2194_v40 }
 0x4d5   : > { %2238 = vmatpush1.bf16.msra.mxu0 %v2207_v20 }
 0x4d8   : > { %3510 = vmatmul.mubr.msk.bf16.vlgmr.msra.gmra.mrb[24].mxu0 %vm920_vm4, %v3903_v16 }
 0x4d9   : > { %3503 = vmatmul.mubr.msk.bf16.gmra.mrb[20].mxu1 %vm920_vm4, %v3904_v22  ;;  %2269 = vmatprep.mubr.bf16.mxu0 %v4052_v0 }
 0x4da   : > { %2648 = vmatprep.mubr.bf16.mxu1 %v4052_v0 }
 0x4df   : > { %v2315_v22 = vpop.permute.xlu0 %2314 }
 0x4e0   : > { %3511 = vmatmul.mubr.msk.bf16.gmra.mrb[28].mxu0 %vm920_vm4, %v3905_v11 }
 0x4e1   : > { %2818 = vmatprep.mubr.bf16.mxu0 %v4052_v0 }
 0x4e4   : > { %v2320_v48 = vpop.permute.xlu1 %2319 }
 0x590   : > { %v1873_v57 = vpop.f32.mrb[16].mxu0 }
 0x591   : > { %v1875_v52 = vpop.f32.mrb[17].mxu0  ;;  %v1904_v59 = vmul.f32 %v1897_v50, %v1873_v57 }
 0x592   : > { %v1877_v24 = vpop.f32.mrb[18].mxu0  ;;  %v1905_v10 = vmul.f32 %v1901_v49, %v1875_v52 }
 0x593   : > { %v1879_v30 = vpop.f32.mrb[19].mxu0  ;;  %v1906_v45 = vmul.f32 %v1897_v50, %v1877_v24 }
 0x594   : > { %v1907_v7 = vmul.f32 %v1901_v49, %v1879_v30 }
 0x598   : > { %v1883_v27 = vpop.f32.mrb[20].mxu0 }
 0x599   : > { %v1885_v32 = vpop.f32.mrb[21].mxu0  ;;  %v1908_v53 = vmul.f32 %v1897_v50, %v1883_v27 }
 0x59a   : > { %v1887_v37 = vpop.f32.mrb[22].mxu0  ;;  %v1909_v46 = vmul.f32 %v1901_v49, %v1885_v32 }
 0x59b   : > { %v1889_v35 = vpop.f32.mrb[23].mxu0  ;;  %v1910_v9 = vmul.f32 %v1897_v50, %v1887_v37 }
 0x59c   : > { %v1911_v26 = vmul.f32 %v1901_v49, %v1889_v35 }
 0x5a4   : > { %v2043_v51 = vpop.f32.mrb[16].mxu1 }
 0x5a5   : > { %v2074_v13 = vmul.f32 %v2067_v8, %v2043_v51  ;;  %v2045_v17 = vpop.f32.mrb[17].mxu1 }
 0x5a6   : > { %v2075_v15 = vmul.f32 %v2071_v54, %v2045_v17  ;;  %v2047_v36 = vpop.f32.mrb[18].mxu1 }
 0x5a7   : > { %v2082_v47 = vadd.f32 %v2074_v13, %v1904_v59  ;;  %v2076_v14 = vmul.f32 %v2067_v8, %v2047_v36  ;;  %v2049_v60 = vpop.f32.mrb[19].mxu1 }
 0x5a8   : > { %v2083_v19 = vadd.f32 %v2075_v15, %v1905_v10  ;;  %v2077_v55 = vmul.f32 %v2071_v54, %v2049_v60 }
 0x5a9   : > { %v2084_v38 = vadd.f32 %v2076_v14, %v1906_v45 }
 0x5aa   : > { %v2085_v42 = vadd.f32 %v2077_v55, %v1907_v7 }
 0x5ab   : > { %v2261_v4 = vpop.f32.mrb[24].mxu0 }
 0x5ac   : > { %v2292_v34 = vmul.f32 %v2285_v58, %v2261_v4  ;;  %v2053_v6 = vpop.f32.mrb[20].mxu1  ;;  %v2263_v12 = vpop.f32.mrb[25].mxu0 }
 0x5ad   : > { %v2078_v29 = vmul.f32 %v2067_v8, %v2053_v6  ;;  %v2293_v3 = vmul.f32 %v2289_v31, %v2263_v12  ;;  %v2055_v56 = vpop.f32.mrb[21].mxu1  ;;  %v2265_v33 = vpop.f32.mrb[26].mxu0 }
 0x5ae   : > { %v2300_v40 = vadd.f32 %v2292_v34, %v2082_v47  ;;  %v2079_v39 = vmul.f32 %v2071_v54, %v2055_v56  ;;  %v2294_v43 = vmul.f32 %v2285_v58, %v2265_v33  ;;  %v2057_v20 = vpop.f32.mrb[22].mxu1  ;;  %v2267_v16 = vpop.f32.mrb[27].mxu0 }
 0x5af   : > { %v2086_v11 = vadd.f32 %v2078_v29, %v1908_v53  ;;  %v2301_v57 = vadd.f32 %v2293_v3, %v2083_v19  ;;  %v2080_v52 = vmul.f32 %v2067_v8, %v2057_v20  ;;  %v2295_v24 = vmul.f32 %v2289_v31, %v2267_v16  ;;  %v2059_v30 = vpop.f32.mrb[23].mxu1  ;;  %v2330_v29 = vpop.permute.xlu1 %2329 }
 0x5b0   : > { %v2332_v27 = vadd.f32 %v2315_v22, %v2300_v40  ;;  %v2087_v5 = vadd.f32 %v2079_v39, %v1909_v46  ;;  %v2302_v32 = vadd.f32 %v2294_v43, %v2084_v38  ;;  %v2081_v37 = vmul.f32 %v2071_v54, %v2059_v30 }
 0x5b1   : > { %v2333_v50 = vadd.f32 %v2315_v22, %v2301_v57  ;;  %v2088_v51 = vadd.f32 %v2080_v52, %v1910_v9  ;;  %v2303_v59 = vadd.f32 %v2295_v24, %v2085_v42  ;;  %v2325_v42 = vpop.permute.xlu0 %2324 }
 0x5b2   : > { %v2340_v35 = vmax.f32 %v2332_v27, 0.0  ;;  %v2334_v49 = vadd.f32 %v2320_v48, %v2302_v32  ;;  %v2089_v13 = vadd.f32 %v2081_v37, %v1911_v26 }
 0x5b3   : > { %v2341_v17 = vmax.f32 %v2333_v50, 0.0  ;;  %v2335_v44 = vadd.f32 %v2320_v48, %v2303_v59  ;;  %v2271_v10 = vpop.f32.mrb[28].mxu0  ;;  %v5055_v50 = vpop.permute.xlu1 %3802 }
 0x5b4   : > { %v2348_v15 = vmul.f32 %v2340_v35, %v4355_v25  ;;  %v2342_v36 = vmax.f32 %v2334_v49, 0.0  ;;  %v2296_v8 = vmul.f32 %v2285_v58, %v2271_v10  ;;  %v2273_v45 = vpop.f32.mrb[29].mxu0 }
 0x5b5   : > { %v2349_v47 = vmul.f32 %v2341_v17, %v4358_v28  ;;  %v2343_v14 = vmax.f32 %v2335_v44, 0.0  ;;  %v2297_v60 = vmul.f32 %v2289_v31, %v2273_v45  ;;  %v2275_v54 = vpop.f32.mrb[30].mxu0 }
 0x5b6   : > { %v2350_v7 = vmul.f32 %v2342_v36, %v4355_v25  ;;  %v2304_v19 = vadd.f32 %v2296_v8, %v2086_v11  ;;  %v2298_v55 = vmul.f32 %v2285_v58, %v2275_v54  ;;  %v2277_v38 = vpop.f32.mrb[31].mxu0 }
 0x5b7   : > { %v2351_v4 = vmul.f32 %v2343_v14, %v4358_v28  ;;  %v2305_v53 = vadd.f32 %v2297_v60, %v2087_v5  ;;  %v2299_v34 = vmul.f32 %v2289_v31, %v2277_v38  ;;  %v3806_v6 = vpack.i.bf16 %v2349_v47, %v2348_v15  ;;  %v5057_v59 = vpop.permute.xlu1 %2556 }
 0x5b8   : > { %v2336_v12 = vadd.f32 %v2325_v42, %v2304_v19  ;;  %v2306_v46 = vadd.f32 %v2298_v55, %v2088_v51  ;;  %v3821_v9 = vpack.i.bf16 %v2350_v7, %v5441_v41  ;;  %v2501_v43 = vpack.c.bf16 %v2350_v7, %v2348_v15 }
 0x5b9   : > { %v2337_v3 = vadd.f32 %v2325_v42, %v2305_v53  ;;  %v2307_v56 = vadd.f32 %v2299_v34, %v2089_v13  ;;  %3807 = vrot.lane.b32.xlu0 %v3806_v6, %s4054_s18  ;;  %v3831_v58 = vpack.i.bf16 %v2351_v4, %v2350_v7  ;;  %v2502_v16 = vpack.c.bf16 %v2351_v4, %v2349_v47 }
 0x5ba   : > { %v2344_v33 = vmax.f32 %v2336_v12, 0.0  ;;  %v2338_v26 = vadd.f32 %v2330_v29, %v2306_v46  ;;  %3822 = vrot.lane.b32.xlu1 %v3821_v9, %s4059_s29  ;;  %v3836_v32 = vpack.i.bf16 %v5441_v41, %v2351_v4 }
 0x5bb   : > { %v2345_v40 = vmax.f32 %v2337_v3, 0.0  ;;  %v2339_v39 = vadd.f32 %v2330_v29, %v2307_v56 }
 0x5bc   : > { %v2352_v31 = vmul.f32 %v2344_v33, %v4355_v25  ;;  %v2346_v20 = vmax.f32 %v2338_v26, 0.0 }
 0x5bd   : > { %v2353_v22 = vmul.f32 %v2345_v40, %v4358_v28  ;;  %v2347_v11 = vmax.f32 %v2339_v39, 0.0  ;;  %3812 = vrot.lane.b32.xlu0 %v3806_v6, %s4059_s29 }
 0x5be   : > { %v2354_v57 = vmul.f32 %v2346_v20, %v4355_v25  ;;  %3827 = vrot.lane.b32.xlu1 %v3821_v9, %s4054_s18 }
 0x5bf   : > { %v2355_v52 = vmul.f32 %v2347_v11, %v4358_v28  ;;  %v3846_v24 = vpack.i.bf16 %v2353_v22, %v2352_v31 }
 0x5c0   : > { %v2504_v30 = vpack.c.bf16 %v2354_v57, %v2352_v31  ;;  %v3861_v37 = vpack.i.bf16 %v2354_v57, %v5441_v41 }
 0x5c1   : > { %3817 = vrot.lane.b32.xlu0 %v3806_v6, %s4054_s18  ;;  %v3871_v27 = vpack.i.bf16 %v2355_v52, %v2354_v57  ;;  %v2505_v5 = vpack.c.bf16 %v2355_v52, %v2353_v22  ;;  %v3876_v48 = vpack.i.bf16 %v5441_v41, %v2355_v52  ;;  %v3798_v41 = vpop.permute.xlu0 %3797 }
 0x5c2   : > { %3832 = vrot.lane.b32.xlu1 %v3831_v58, %s4054_s18  ;;  %v3800_v47 = vunpack.i.h.bf16 %v3798_v41  ;;  %v3799_v7 = vunpack.i.l.bf16 %v3798_v41 }
 0x5c5   : > { %3837 = vrot.lane.b32.xlu0 %v3836_v32, %s4059_s29  ;;  %v2551_v51 = vpop.permute.xlu0 %2550 }
 0x5c6   : > { %2722 = vrot.lane.b32.xlu1 %v2501_v43, %s4058_s27 }
 0x5c9   : > { %3842 = vrot.lane.b32.xlu0 %v3836_v32, %s4054_s18 }
 0x5ca   : > { %2554 = vrot.lane.b32.xlu1 %v2502_v16, %s4056_s7 }
 0x5cd   : > { %2552 = vrot.lane.b32.xlu0 %v2501_v43, %s4056_s7 }
 0x5ce   : > { %3847 = vrot.lane.b32.xlu1 %v3846_v24, %s4054_s18 }
 0x5d1   : > { %2724 = vrot.lane.b32.xlu0 %v2502_v16, %s4058_s27 }
 0x5d2   : > { %3852 = vrot.lane.b32.xlu1 %v3846_v24, %s4059_s29 }
 0x5d5   : > { %3862 = vrot.lane.b32.xlu0 %v3861_v37, %s4059_s29 }
 0x5d6   : > { %3857 = vrot.lane.b32.xlu1 %v3846_v24, %s4054_s18 }
 0x5d9   : > { %3867 = vrot.lane.b32.xlu0 %v3861_v37, %s4054_s18 }
 0x5da   : > { %2940 = vrot.lane.b32.xlu1 %v2501_v43, %s4057_s12 }
 0x5dd   : > { %3872 = vrot.lane.b32.xlu0 %v3871_v27, %s4054_s18 }
 0x5de   : > { %3877 = vrot.lane.b32.xlu1 %v3876_v48, %s4059_s29  ;;  %s5446_s29 = sld [smem:[#allocation19_spill]] }
 0x5e1   : > { %2720 = vrot.lane.b32.xlu0 %v5442_v2, %s4058_s27 }
 0x5e2   : > { %3882 = vrot.lane.b32.xlu1 %v3876_v48, %s4054_s18 }
 0x5e5   : > { %2726 = vrot.lane.b32.xlu0 %v5442_v2, %s4058_s27 }
 0x5e6   : > { %2558 = vrot.lane.b32.xlu1 %v2504_v30, %s4056_s7 }
 0x5e9   : > { %2942 = vrot.lane.b32.xlu0 %v2502_v16, %s4057_s12 }
 0x5ea   : > { %2728 = vrot.lane.b32.xlu1 %v2504_v30, %s4058_s27 }
 0x5ed   : > { %2938 = vrot.lane.b32.xlu0 %v5442_v2, %s4057_s12 }
 0x5ee   : > { %2946 = vrot.lane.b32.xlu1 %v2504_v30, %s4057_s12 }
 0x5f1   : > { %2944 = vrot.lane.b32.xlu0 %v5442_v2, %s4057_s12 }
 0x5f5   : > { %2560 = vrot.lane.b32.xlu0 %v2505_v5, %s4056_s7 }
 0x5f9   : > { %2730 = vrot.lane.b32.xlu0 %v2505_v5, %s4058_s27 }
 0x5fd   : > { %2948 = vrot.lane.b32.xlu0 %v2505_v5, %s4057_s12 }
 0x62b   : > { %v3808_v35 = vpop.permute.xlu0 %3807 }
 0x62c   : > { %v3823_v49 = vpop.permute.xlu1 %3822  ;;  %v3809_v8 = vunpack.i.l.bf16 %v3808_v35  ;;  %v3810_v19 = vunpack.i.h.bf16 %v3808_v35 }
 0x62d   : > { %v3825_v17 = vunpack.i.h.bf16 %v3823_v49  ;;  %v3824_v22 = vunpack.i.l.bf16 %v3823_v49 }
 0x62e   : > { %v2424_v53 = vsel %vm863_vm1, %v3799_v7, %v3809_v8  ;;  %v2425_v43 = vsel %vm863_vm1, %v3809_v8, %v3810_v19 }
 0x62f   : > { %v3813_v13 = vpop.permute.xlu0 %3812 }
 0x630   : > { %v3814_v44 = vunpack.i.l.bf16 %v3813_v13  ;;  %v5059_v10 = vpop.permute.xlu1 %3827  ;;  %v3815_v4 = vunpack.i.h.bf16 %v3813_v13 }
 0x631   : > { %v3830_v24 = vunpack.i.h.bf16 %v5059_v10 }
 0x632   : > { %v5061_v2 = vpack.c.bf16 %v3825_v17, %v3814_v44  ;;  %v2480_v29 = vsel %vm920_vm4, %v3814_v44, %v3815_v4  ;;  %v2481_v5 = vsel %vm920_vm4, %v3815_v4, %v3824_v22  ;;  %v3829_v44 = vunpack.i.l.bf16 %v5059_v10 }
 0x633   : > { %v5063_v15 = vpop.permute.xlu0 %3817 }
 0x634   : > { %v3833_v36 = vpop.permute.xlu1 %3832  ;;  %2574 = vrot.lane.b32.xlu1 %v5061_v2, %s4056_s7  ;;  %v3820_v30 = vunpack.i.h.bf16 %v5063_v15  ;;  %v3819_v27 = vunpack.i.l.bf16 %v5063_v15 }
 0x635   : > { %v3834_v45 = vunpack.i.l.bf16 %v3833_v36  ;;  %v3835_v14 = vunpack.i.h.bf16 %v3833_v36 }
 0x636   : > { %v2891_v35 = vsel %vm863_vm1, %v3819_v27, %v3820_v30 }
 0x637   : > { %v2701_v60 = vpack.c.bf16 %v3834_v45, %v3809_v8  ;;  %v3838_v54 = vpop.permute.xlu0 %3837  ;;  %v2426_v55 = vsel %vm863_vm1, %v3800_v47, %v3834_v45  ;;  %v2508_v34 = vpack.c.bf16 %v3835_v14, %v3810_v19  ;;  %v2427_v56 = vsel %vm863_vm1, %v3834_v45, %v3835_v14 }
 0x638   : > { %v3839_v38 = vunpack.i.l.bf16 %v3838_v54  ;;  %v5068_v42 = vpop.permute.xlu1 %2722  ;;  %2744 = vrot.lane.b32.xlu1 %v5061_v2, %s4058_s27  ;;  %v2506_v6 = vpack.c.bf16 %v2426_v55, %v2424_v53  ;;  %v3840_v26 = vunpack.i.h.bf16 %v3838_v54  ;;  %v2507_v31 = vpack.c.bf16 %v2427_v56, %v2425_v43 }
 0x639   : > { %2732 = vrot.lane.b32.xlu0 %v2701_v60, %s4058_s27  ;;  %v2892_v45 = vsel %vm863_vm1, %v3820_v30, %v3829_v44 }
 0x63a   : > { %v2482_v12 = vsel %vm920_vm4, %v3825_v17, %v3839_v38  ;;  %v2483_v11 = vsel %vm920_vm4, %v3839_v38, %v3840_v26  ;;  %v3805_v38 = vunpack.i.h.bf16 %v5055_v50 }
 0x63b   : > { %v3843_v46 = vpop.permute.xlu0 %3842  ;;  %v5078_v3 = vpack.c.bf16 %v2482_v12, %v2480_v29  ;;  %v5100_v32 = vpack.c.bf16 %v2483_v11, %v2481_v5 }
 0x63c   : > { %v2555_v9 = vpop.permute.xlu1 %2554  ;;  %2566 = vrot.lane.b32.xlu1 %v2508_v34, %s4056_s7  ;;  %v3844_v20 = vunpack.i.l.bf16 %v3843_v46  ;;  %v3845_v41 = vunpack.i.h.bf16 %v3843_v46 }
 0x63d   : > { %2562 = vrot.lane.b32.xlu0 %v2506_v6, %s4056_s7  ;;  %v3804_v6 = vunpack.i.l.bf16 %v5055_v50 }
 0x63e   : > { %v2893_v37 = vsel %vm863_vm1, %v3830_v24, %v3844_v20  ;;  %v2894_v15 = vsel %vm863_vm1, %v3844_v20, %v3845_v41 }
 0x63f   : > { %v2553_v33 = vpop.permute.xlu0 %2552  ;;  %v2912_v49 = vpack.c.bf16 %v2893_v37, %v2891_v35  ;;  %v2913_v14 = vpack.c.bf16 %v2894_v15, %v2892_v45 }
 0x640   : > { %v2586_v58 = vsel %vm1027_vm2, %v2551_v51, %v2553_v33  ;;  %v5082_v40 = vpop.permute.xlu1 %3847  ;;  %2576 = vrot.lane.b32.xlu1 %v5078_v3, %s4056_s7  ;;  %v2587_v39 = vsel %vm1027_vm2, %v2553_v33, %v2555_v9 }
 0x641   : > { %2616 = vmatprep.subr.bf16.mxu1 %v2587_v39  ;;  %2736 = vrot.lane.b32.xlu0 %v2508_v34, %s4058_s27  ;;  %v3850_v54 = vunpack.i.h.bf16 %v5082_v40  ;;  %v3849_v7 = vunpack.i.l.bf16 %v5082_v40 }
 0x642   : > { %2617 = vmatpush1.bf16.msra.mxu1 %v2586_v58 }
 0x643   : > { %v2725_v16 = vpop.permute.xlu0 %2724  ;;  %v2428_v33 = vsel %vm863_vm1, %v3804_v6, %v3849_v7  ;;  %v3142_v6 = vld [vmem:[%s5443_s26 + $0x8] sm:$0xff] }
 0x644   : > { %v5090_v57 = vpop.permute.xlu1 %3852  ;;  %2734 = vrot.lane.b32.xlu1 %v2507_v31, %s4058_s27  ;;  %v2757_v52 = vsel %vm1198_vm3, %v5068_v42, %v2725_v16 }
 0x645   : > { %2786 = vmatprep.subr.bf16.mxu0 %v2757_v52  ;;  %2564 = vrot.lane.b32.xlu0 %v2507_v31, %s4056_s7  ;;  %v3854_v36 = vunpack.i.l.bf16 %v5090_v57  ;;  %v3855_v39 = vunpack.i.h.bf16 %v5090_v57  ;;  %v2911_v52 = vpack.c.bf16 %v3830_v24, %v3819_v27 }
 0x647   : > { %v3863_v48 = vpop.permute.xlu0 %3862 }
 0x648   : > { %v5105_v51 = vpop.permute.xlu1 %3857  ;;  %2746 = vrot.lane.b32.xlu1 %v5078_v3, %s4058_s27  ;;  %v3865_v13 = vunpack.i.h.bf16 %v3863_v48  ;;  %v3864_v26 = vunpack.i.l.bf16 %v3863_v48  ;;  %v2484_v48 = vsel %vm920_vm4, %v3854_v36, %v3855_v39 }
 0x649   : > { %2578 = vrot.lane.b32.xlu0 %v5100_v32, %s4056_s7  ;;  %v3860_v15 = vunpack.i.h.bf16 %v5105_v51 }
 0x64a   : > { %v5121_v47 = vpack.c.bf16 %v3865_v13, %v3854_v36  ;;  %v2485_v31 = vsel %vm920_vm4, %v3855_v39, %v3864_v26  ;;  %v3859_v36 = vunpack.i.l.bf16 %v5105_v51 }
 0x64b   : > { %v5112_v17 = vpop.permute.xlu0 %3867 }
 0x64c   : > { %v2941_v8 = vpop.permute.xlu1 %2940  ;;  %2952 = vrot.lane.b32.xlu1 %v2912_v49, %s4057_s12  ;;  %v3870_v24 = vunpack.i.h.bf16 %v5112_v17  ;;  %v3869_v27 = vunpack.i.l.bf16 %v5112_v17 }
 0x64d   : > { %2748 = vrot.lane.b32.xlu0 %v5100_v32, %s4058_s27 }
 0x64e   : > { %v2896_v17 = vsel %vm863_vm1, %v3860_v15, %v3869_v27 }
 0x64f   : > { %v3873_v60 = vpop.permute.xlu0 %3872 }
 0x650   : > { %v3875_v19 = vunpack.i.h.bf16 %v3873_v60  ;;  %v3874_v55 = vunpack.i.l.bf16 %v3873_v60  ;;  %2580 = vrot.lane.b32.xlu1 %v5121_v47, %s4056_s7  ;;  %v3878_v4 = vpop.permute.xlu1 %3877 }
 0x651   : > { %2954 = vrot.lane.b32.xlu0 %v2913_v14, %s4057_s12  ;;  %v3880_v9 = vunpack.i.h.bf16 %v3878_v4  ;;  %v3879_v29 = vunpack.i.l.bf16 %v3878_v4  ;;  %v3085_v4 = vld [vmem:[%s5400_s13] sm:$0xff] }
 0x652   : > { %v2511_v53 = vpack.c.bf16 %v3875_v19, %v3850_v54  ;;  %v2702_v34 = vpack.c.bf16 %v3874_v55, %v3849_v7  ;;  %v2430_v12 = vsel %vm863_vm1, %v3805_v38, %v3874_v55  ;;  %v2431_v40 = vsel %vm863_vm1, %v3874_v55, %v3875_v19 }
 0x653   : > { %v2721_v46 = vpop.permute.xlu0 %2720  ;;  %v2509_v58 = vpack.c.bf16 %v2430_v12, %v2428_v33  ;;  %v2487_v43 = vsel %vm920_vm4, %v3879_v29, %v3880_v9  ;;  %v2486_v30 = vsel %vm920_vm4, %v3865_v13, %v3879_v29  ;;  %v2895_v55 = vsel %vm863_vm1, %v3859_v36, %v3860_v15  ;;  %v3144_v12 = vld [vmem:[%s5443_s26 + $0x18] sm:$0xff] }
 0x654   : > { %v2756_v56 = vsel %vm1198_vm3, %v2721_v46, %v5068_v42  ;;  %2738 = vrot.lane.b32.xlu1 %v2702_v34, %s4058_s27  ;;  %v2429_v42 = vsel %vm863_vm1, %v3849_v7, %v3850_v54  ;;  %v2517_v16 = vpack.c.bf16 %v2487_v43, %v2485_v31  ;;  %v3883_v57 = vpop.permute.xlu1 %3882  ;;  %v2516_v41 = vpack.c.bf16 %v2486_v30, %v2484_v48  ;;  %v3143_v34 = vld [vmem:[%s5443_s26 + $0x10] sm:$0xff] }
 0x655   : > { %2787 = vmatpush1.bf16.msra.mxu0 %v2756_v56  ;;  %2572 = vrot.lane.b32.xlu0 %v2511_v53, %s4056_s7  ;;  %v2510_v20 = vpack.c.bf16 %v2431_v40, %v2429_v42  ;;  %v3885_v49 = vunpack.i.h.bf16 %v3883_v57  ;;  %v3884_v44 = vunpack.i.l.bf16 %v3883_v57 }
 0x657   : > { %v2727_v50 = vpop.permute.xlu0 %2726 }
 0x658   : > { %2568 = vrot.lane.b32.xlu1 %v2509_v58, %s4056_s7  ;;  %v2559_v10 = vpop.permute.xlu1 %2558 }
 0x659   : > { %2742 = vrot.lane.b32.xlu0 %v2511_v53, %s4058_s27  ;;  %v2588_v14 = vsel %vm1027_vm2, %v5057_v59, %v2559_v10  ;;  %v2897_v59 = vsel %vm863_vm1, %v3870_v24, %v3884_v44  ;;  %v3141_v53 = vld [vmem:[%s5443_s26] sm:$0xff] }
 0x65a   : > { %v2915_v38 = vpack.c.bf16 %v2897_v59, %v2895_v55 }
 0x65b   : > { %v2943_v22 = vpop.permute.xlu0 %2942 }
 0x65c   : > { %2570 = vrot.lane.b32.xlu1 %v2510_v20, %s4056_s7  ;;  %v5145_v11 = vsel %vm1418_vm5, %v2941_v8, %v2943_v22  ;;  %v2729_v60 = vpop.permute.xlu1 %2728 }
 0x65d   : > { %2584 = vrot.lane.b32.xlu0 %v2517_v16, %s4056_s7  ;;  %v2758_v19 = vsel %vm1198_vm3, %v2727_v50, %v2729_v60 }
 0x65f   : > { %v2939_v5 = vpop.permute.xlu0 %2938 }
 0x660   : > { %v5152_v37 = vsel %vm1418_vm5, %v2939_v5, %v2941_v8  ;;  %2750 = vrot.lane.b32.xlu1 %v5121_v47, %s4058_s27  ;;  %v2898_v8 = vsel %vm863_vm1, %v3884_v44, %v3885_v49  ;;  %v5214_v46 = vpop.permute.xlu1 %2946 }
 0x661   : > { %2950 = vrot.lane.b32.xlu0 %v2911_v52, %s4057_s12  ;;  %v2916_v54 = vpack.c.bf16 %v2898_v8, %v2896_v17 }
 0x663   : > { %v5158_v35 = vpop.permute.xlu0 %2944 }
 0x664   : > { %2582 = vrot.lane.b32.xlu1 %v2516_v41, %s4056_s7  ;;  %s3331_s7 = scalar_lea.sflag [#allocation5], %s4278_s6 }
 0x665   : > { %2964 = vrot.lane.b32.xlu0 %v5078_v3, %s4057_s12  ;;  %v2914_v3 = vpack.c.bf16 %v3870_v24, %v3859_v36 }
 0x667   : > { %v2561_v13 = vpop.permute.xlu0 %2560 }
 0x668   : > { %2740 = vrot.lane.b32.xlu1 %v2510_v20, %s4058_s27  ;;  %v2589_v45 = vsel %vm1027_vm2, %v2559_v10, %v2561_v13 }
 0x669   : > { %2618 = vmatprep.subr.bf16.mxu1 %v2589_v45  ;;  %2754 = vrot.lane.b32.xlu0 %v2517_v16, %s4058_s27 }
 0x66a   : > { %2619 = vmatpush1.bf16.msra.mxu1 %v2588_v14 }
 0x66b   : > { %v2731_v7 = vpop.permute.xlu0 %2730 }
 0x66c   : > { %2956 = vrot.lane.b32.xlu1 %v2914_v3, %s4057_s12  ;;  %v2759_v51 = vsel %vm1198_vm3, %v2729_v60, %v2731_v7  ;;  %v3906_v7 = vld [vmem:[%s5444_s17] sm:$0xff]  }
 0x66d   : > { %2788 = vmatprep.subr.bf16.mxu0 %v2759_v51  ;;  %2960 = vrot.lane.b32.xlu0 %v2916_v54, %s4057_s12 }
 0x66e   : > { %2789 = vmatpush1.bf16.msra.mxu0 %v2758_v19 }
 0x66f   : > { %v2949_v29 = vpop.permute.xlu0 %2948 }
 0x670   : > { %2752 = vrot.lane.b32.xlu1 %v2516_v41, %s4058_s27  ;;  %s5447_s27 = sshll.u32 %s4278_s6, 1 }
 0x671   : > { %2962 = vrot.lane.b32.xlu0 %v5061_v2, %s4057_s12  ;;  %v3087_v2 = vld [vmem:[%s5400_s13 + $0x10] sm:$0xff]  ;;  %s555_s14 = scalar_lea.vmem [#allocation8], %s5447_s27 }
 0x672   : > { %s3345_s15 = sshll.u32 %s555_s14, 4  ;;  %s5345_s15 = int_to_ptr.vmem [resolvable:$true] %s3345_s15 }
 0x674   : > { %2958 = vrot.lane.b32.xlu1 %v2915_v38, %s4057_s12 }
 0x675   : > { %2972 = vrot.lane.b32.xlu0 %v2517_v16, %s4057_s12 }
 0x678   : > { %2966 = vrot.lane.b32.xlu1 %v5100_v32, %s4057_s12  ;;  %v3086_v32 = vld [vmem:[%s5400_s13 + $0x8] sm:$0xff] }
 0x679   : > { %3091 = vperm.xlu0 %3614, %v3085_v4   ;;  %v2977_v4 = vsel %vm1418_vm5, %v5214_v46, %v2949_v29 }
 0x67c   : > { %2970 = vrot.lane.b32.xlu1 %v2516_v41, %s4057_s12 }
 0x67d   : > { %3147 = vperm.xlu0 %3614, %v3141_v53  }
 0x680   : > { %2968 = vrot.lane.b32.xlu1 %v5121_v47, %s4057_s12  ;;  %v3088_v47 = vld [vmem:[%s5400_s13 + $0x18] sm:$0xff]  ;;  %s3545_s12 = sshll.u32 %s4163_s22, 5  ;;  %s3976_s22 = scalar_lea.vmem %s5345_s15, 32 }
 0x681   : > { %3101 = vperm.xlu0 %3614, %v3087_v2   ;;  %s5343_s18 = scalar_lea.hbm %s5449_s28, %s3545_s12  ;;  %p3977_p6 = scmp.ne.s32.totalorder %s5345_s15, %s3976_s22 }
 0x683   : > { %p3978_p8 = pnand %p3977_p6, %p4233_p12 }
 0x684   : > { %3096 = vperm.xlu1 %3615, %v3086_v32  }
 0x685   : > { %3157 = vperm.xlu0 %3614, %v3143_v34   ;;  %p3979_p10 = pneg %p3978_p8 }
 0x688   : > { %3152 = vperm.xlu1 %3615, %v3142_v6  }
 0x68c   : > { %3106 = vperm.xlu1 %3615, %v3088_v47  }
 0x690   : > { %3162 = vperm.xlu1 %3615, %v3144_v12  }
 0x6a6   : > { %v2575_v9 = vpop.permute.xlu1 %2574 }
 0x6aa   : > { %v2745_v56 = vpop.permute.xlu1 %2744 }
 0x6ab   : > { %v2733_v33 = vpop.permute.xlu0 %2732 }
 0x6ae   : > { %v2567_v26 = vpop.permute.xlu1 %2566 }
 0x6af   : > { %v2563_v58 = vpop.permute.xlu0 %2562 }
 0x6b2   : > { %v2577_v40 = vpop.permute.xlu1 %2576 }
 0x6b3   : > { %v2737_v50 = vpop.permute.xlu0 %2736  ;;  %v2594_v14 = vsel %vm1027_vm2, %v2575_v9, %v2577_v40 }
 0x6b6   : > { %v2735_v39 = vpop.permute.xlu1 %2734 }
 0x6b7   : > { %v2760_v43 = vsel %vm1198_vm3, %v2733_v33, %v2735_v39  ;;  %v2565_v42 = vpop.permute.xlu0 %2564  ;;  %v2761_v31 = vsel %vm1198_vm3, %v2735_v39, %v2737_v50 }
 0x6b8   : > { %v2590_v20 = vsel %vm1027_vm2, %v2563_v58, %v2565_v42  ;;  %2790 = vmatprep.subr.bf16.mxu0 %v2761_v31  ;;  %v2591_v16 = vsel %vm1027_vm2, %v2565_v42, %v2567_v26  ;;  %v3910_v42 = vld [vmem:[%s5444_s17 + $0x20] sm:$0xff]   ;;  %v3912_v31 = vld [vmem:[%s5444_s17 + $0x28] sm:$0xff]  }
 0x6b9   : > { %2620 = vmatprep.subr.bf16.mxu1 %v2591_v16  ;;  %2791 = vmatpush1.bf16.msra.mxu0 %v2760_v43 }
 0x6ba   : > { %v2747_v22 = vpop.permute.xlu1 %2746  ;;  %2621 = vmatpush1.bf16.msra.mxu1 %v2590_v20  ;;  %v3913_v20 = vld [vmem:[%s5445_s16 + $0x8] sm:$0xff]  }
 0x6bb   : > { %v2579_v57 = vpop.permute.xlu0 %2578  ;;  %v2764_v2 = vsel %vm1198_vm3, %v2745_v56, %v2747_v22 }
 0x6bc   : > { %v2595_v36 = vsel %vm1027_vm2, %v2577_v40, %v2579_v57  ;;  %v3909_v40 = vld [vmem:[%s5444_s17 + $0x18] sm:$0xff]  }
 0x6be   : > { %v2953_v52 = vpop.permute.xlu1 %2952 }
 0x6bf   : > { %v2749_v30 = vpop.permute.xlu0 %2748 }
 0x6c0   : > { %v2765_v38 = vsel %vm1198_vm3, %v2747_v22, %v2749_v30  ;;  %v2669_v30 = vld [vmem:[#allocation6] sm:$0x3] }
 0x6c2   : > { %v2581_v5 = vpop.permute.xlu1 %2580 }
 0x6c3   : > { %v2955_v48 = vpop.permute.xlu0 %2954 }
 0x6c4   : > { %v2979_v32 = vsel %vm1418_vm5, %v2953_v52, %v2955_v48 }
 0x6c6   : > { %v2739_v41 = vpop.permute.xlu1 %2738 }
 0x6c7   : > { %v2573_v49 = vpop.permute.xlu0 %2572 }
 0x6ca   : > { %v2569_v44 = vpop.permute.xlu1 %2568 }
 0x6cb   : > { %v2743_v10 = vpop.permute.xlu0 %2742 }
 0x6ce   : > { %v2571_v24 = vpop.permute.xlu1 %2570 }
 0x6cf   : > { %v2592_v27 = vsel %vm1027_vm2, %v2569_v44, %v2571_v24  ;;  %v2585_v13 = vpop.permute.xlu0 %2584  ;;  %v2593_v15 = vsel %vm1027_vm2, %v2571_v24, %v2573_v49 }
 0x6d0   : > { %2622 = vmatprep.subr.bf16.mxu1 %v2593_v15 }
 0x6d1   : > { %2623 = vmatpush1.bf16.msra.mxu1 %v2592_v27 }
 0x6d2   : > { %v2751_v8 = vpop.permute.xlu1 %2750  ;;  %2624 = vmatprep.subr.bf16.mxu1 %v2595_v36 }
 0x6d3   : > { %v2951_v45 = vpop.permute.xlu0 %2950 }
 0x6d4   : > { %v2978_v9 = vsel %vm1418_vm5, %v2951_v45, %v2953_v52 }
 0x6d5   : > { %2625 = vmatpush1.bf16.msra.mxu1 %v2594_v14 }
 0x6d6   : > { %v2583_v3 = vpop.permute.xlu1 %2582 }
 0x6d7   : > { %v2596_v17 = vsel %vm1027_vm2, %v2581_v5, %v2583_v3  ;;  %v2965_v60 = vpop.permute.xlu0 %2964  ;;  %v2597_v54 = vsel %vm1027_vm2, %v2583_v3, %v2585_v13  ;;  %v2839_v5 = vld [vmem:[#allocation6 + $0x2] sm:$0x3] }
 0x6d8   : > { %2626 = vmatprep.subr.bf16.mxu1 %v2597_v54  ;;  %v2844_v49 = vrot.slane %v2839_v5, %v4348_v21  ;;  %v2848_v24 = vrot.slane %v2839_v5, %v4352_v23 }
 0x6d9   : > { %2627 = vmatpush1.bf16.msra.mxu1 %v2596_v17 }
 0x6da   : > { %v2741_v51 = vpop.permute.xlu1 %2740  ;;  %3004 = vmatprep.subr.bf16.mxu1 %v5145_v11  ;;  %v2976_v11 = vsel %vm1418_vm5, %v5158_v35, %v5214_v46  ;;  %v3907_v35 = vld [vmem:[%s5444_s17 + $0x10] sm:$0xff]  }
 0x6db   : > { %v2762_v19 = vsel %vm1198_vm3, %v2739_v41, %v2741_v51  ;;  %v2763_v59 = vsel %vm1198_vm3, %v2741_v51, %v2743_v10  ;;  %v2755_v55 = vpop.permute.xlu0 %2754  ;;  %v2674_v41 = vrot.slane %v2669_v30, %v4348_v21  ;;  %v2678_v10 = vrot.slane %v2669_v30, %v4352_v23 }
 0x6dc   : > { %2792 = vmatprep.subr.bf16.mxu0 %v2763_v59  ;;  %3514 = vmatmul.mubr.msk.bf16.vlgmr.msra.gmra.mrb[24].mxu1 %vm920_vm4, %v3906_v7 }
 0x6dd   : > { %2793 = vmatpush1.bf16.msra.mxu0 %v2762_v19  ;;  %3005 = vmatpush1.bf16.msra.mxu1 %v5152_v37  ;;  %v3908_v37 = vld [vmem:[%s5444_s17 + $0x8] sm:$0xff]  }
 0x6de   : > { %v2957_v53 = vpop.permute.xlu1 %2956  ;;  %2794 = vmatprep.subr.bf16.mxu0 %v2765_v38  ;;  %3006 = vmatprep.subr.bf16.mxu1 %v2977_v4 }
 0x6df   : > { %2658 = vmatprep.mubr.bf16.mxu1 %v4052_v0  ;;  %v2961_v34 = vpop.permute.xlu0 %2960 }
 0x6e1   : > { %2795 = vmatpush1.bf16.msra.mxu0 %v2764_v2  ;;  %3007 = vmatpush1.bf16.msra.mxu1 %v2976_v11 }
 0x6e2   : > { %v2753_v6 = vpop.permute.xlu1 %2752  ;;  %3008 = vmatprep.subr.bf16.mxu1 %v2979_v32 }
 0x6e3   : > { %v2766_v47 = vsel %vm1198_vm3, %v2751_v8, %v2753_v6  ;;  %v2767_v12 = vsel %vm1198_vm3, %v2753_v6, %v2755_v55  ;;  %v2963_v33 = vpop.permute.xlu0 %2962  ;;  %v3057_v6 = vld [vmem:[#allocation6 + $0x4] sm:$0x3] }
 0x6e4   : > { %2796 = vmatprep.subr.bf16.mxu0 %v2767_v12  ;;  %3515 = vmatmul.mubr.msk.bf16.gmra.mrb[28].mxu1 %vm920_vm4, %v3908_v37  ;;  %v2982_v58 = vsel %vm1418_vm5, %v2963_v33, %v2965_v60 }
 0x6e5   : > { %2797 = vmatpush1.bf16.msra.mxu0 %v2766_v47  ;;  %3009 = vmatpush1.bf16.msra.mxu1 %v2978_v9 }
 0x6e6   : > { %v2959_v46 = vpop.permute.xlu1 %2958  ;;  %3181 = vmatprep.subr.bf16.mxu0 %v4384_v63  ;;  %3036 = vmatprep.mubr.bf16.mxu1 %v4052_v0 }
 0x6e7   : > { %v2980_v29 = vsel %vm1418_vm5, %v2957_v53, %v2959_v46  ;;  %v2981_v56 = vsel %vm1418_vm5, %v2959_v46, %v2961_v34  ;;  %v2973_v50 = vpop.permute.xlu0 %2972 }
 0x6e8   : > { %3522 = vmatmul.mubr.msk.bf16.vlgmr.msra.gmra.mrb[32].mxu0 %vm920_vm4, %v3907_v35  ;;  %3010 = vmatprep.subr.bf16.mxu1 %v2981_v56 }
 0x6e9   : > { %3011 = vmatpush1.bf16.msra.mxu1 %v2980_v29  ;;  %3182 = vmatpush1.bf16.msra.mxu0 %v4382_v62 }
 0x6ea   : > { %v2967_v26 = vpop.permute.xlu1 %2966  ;;  %3183 = vmatprep.subr.bf16.mxu0 %v4386_v1  ;;  %2828 = vmatprep.mubr.bf16.mxu0 %v4052_v0 }
 0x6eb   : > { %v2983_v63 = vsel %vm1418_vm5, %v2965_v60, %v2967_v26 }
 0x6ec   : > { %3012 = vmatprep.subr.bf16.mxu1 %v2983_v63 }
 0x6ed   : > { %3013 = vmatpush1.bf16.msra.mxu1 %v2982_v58  ;;  %3184 = vmatpush1.bf16.msra.mxu0 %v4380_v61  ;;  %v3911_v61 = vld [vmem:[%s5445_s16] sm:$0xff]   ;;  %v3062_v58 = vrot.slane %v3057_v6, %v4348_v21 }
 0x6ee   : > { %v2971_v39 = vpop.permute.xlu1 %2970 }
 0x6ef   : > { %v2985_v62 = vsel %vm1418_vm5, %v2971_v39, %v2973_v50  ;;  %v5300_v50 = vrot.slane %v3057_v6, %v4352_v23 }
 0x6f0   : > { %3523 = vmatmul.mubr.msk.bf16.gmra.mrb[36].mxu0 %vm920_vm4, %v3909_v40  ;;  %3014 = vmatprep.subr.bf16.mxu1 %v2985_v62 }
 0x6f1   : > { %3213 = vmatprep.mubr.bf16.mxu0 %v4052_v0 }
 0x6f2   : > { %v2969_v1 = vpop.permute.xlu1 %2968 }
 0x6f3   : > { %v2984_v43 = vsel %vm1418_vm5, %v2969_v1, %v2971_v39 }
 0x6f4   : > { %3015 = vmatpush1.bf16.msra.mxu1 %v2984_v43 }
 0x6f7   : > { %3530 = vmatmul.mubr.msk.bf16.vlgmr.msra.gmra.mrb[32].mxu1 %vm920_vm4, %v3910_v42 }
 0x6f8   : > { %3534 = vmatmul.mubr.msk.bf16.vlgmr.msra.gmra.mrb[40].mxu0 %vm634_vm0, %v3911_v61  ;;  %3046 = vmatprep.mubr.bf16.mxu1 %v4052_v0  ;;  %v3092_v45 = vpop.permute.xlu0 %3091 }
 0x6f9   : > { %3223 = vmatprep.mubr.bf16.mxu0 %v4052_v0 }
 0x6fc   : > { %v3148_v11 = vpop.permute.xlu0 %3147 }
 0x6ff   : > { %3531 = vmatmul.mubr.msk.bf16.gmra.mrb[36].mxu1 %vm920_vm4, %v3912_v31 }
 0x700   : > { %3535 = vmatmul.mubr.msk.bf16.gmra.mrb[44].mxu0 %vm634_vm0, %v3913_v20  ;;  %v5302_v39 = vpop.permute.xlu0 %3101 }
 0x701   : > { %3298 = vmatprep.mubr.bf16.mxu0 %v4052_v0 }
 0x703   : > { %v3097_v37 = vpop.permute.xlu1 %3096 }
 0x707   : > { %v3153_v1 = vpop.permute.xlu1 %3152 }
 0x7af   : > { %v2650_v16 = vpop.f32.mrb[24].mxu1 }
 0x7b0   : > { %v2652_v22 = vpop.f32.mrb[25].mxu1  ;;  %v2681_v0 = vmul.f32 %v2674_v41, %v2650_v16 }
 0x7b1   : > { %v2654_v57 = vpop.f32.mrb[26].mxu1  ;;  %v2682_v14 = vmul.f32 %v2678_v10, %v2652_v22 }
 0x7b2   : > { %v2656_v52 = vpop.f32.mrb[27].mxu1  ;;  %v2683_v60 = vmul.f32 %v2674_v41, %v2654_v57 }
 0x7b3   : > { %v2684_v19 = vmul.f32 %v2678_v10, %v2656_v52 }
 0x7b7   : > { %v2660_v48 = vpop.f32.mrb[28].mxu1 }
 0x7b8   : > { %v2662_v44 = vpop.f32.mrb[29].mxu1  ;;  %v2685_v53 = vmul.f32 %v2674_v41, %v2660_v48 }
 0x7b9   : > { %v2664_v27 = vpop.f32.mrb[30].mxu1  ;;  %v2686_v47 = vmul.f32 %v2678_v10, %v2662_v44 }
 0x7ba   : > { %v2666_v13 = vpop.f32.mrb[31].mxu1  ;;  %v2687_v35 = vmul.f32 %v2674_v41, %v2664_v27 }
 0x7bb   : > { %v2820_v15 = vpop.f32.mrb[32].mxu0  ;;  %v2688_v33 = vmul.f32 %v2678_v10, %v2666_v13 }
 0x7bc   : > { %v2851_v36 = vmul.f32 %v2844_v49, %v2820_v15  ;;  %v2822_v8 = vpop.f32.mrb[33].mxu0 }
 0x7bd   : > { %v2852_v3 = vmul.f32 %v2848_v24, %v2822_v8  ;;  %v2824_v17 = vpop.f32.mrb[34].mxu0 }
 0x7be   : > { %v2859_v54 = vadd.f32 %v2851_v36, %v2681_v0  ;;  %v2853_v7 = vmul.f32 %v2844_v49, %v2824_v17  ;;  %v2826_v51 = vpop.f32.mrb[35].mxu0 }
 0x7bf   : > { %v2860_v59 = vadd.f32 %v2852_v3, %v2682_v14  ;;  %v2854_v55 = vmul.f32 %v2848_v24, %v2826_v51  ;;  %v3158_v14 = vpop.permute.xlu0 %3157 }
 0x7c0   : > { %v2861_v38 = vadd.f32 %v2853_v7, %v2683_v60  ;;  %v3107_v7 = vpop.permute.xlu1 %3106 }
 0x7c1   : > { %v2862_v4 = vadd.f32 %v2854_v55, %v2684_v19 }
 0x7c3   : > { %v2830_v2 = vpop.f32.mrb[36].mxu0 }
 0x7c4   : > { %v2855_v32 = vmul.f32 %v2844_v49, %v2830_v2  ;;  %v2832_v34 = vpop.f32.mrb[37].mxu0 }
 0x7c5   : > { %v2856_v12 = vmul.f32 %v2848_v24, %v2832_v34  ;;  %v2834_v9 = vpop.f32.mrb[38].mxu0 }
 0x7c6   : > { %v2863_v46 = vadd.f32 %v2855_v32, %v2685_v53  ;;  %v2857_v29 = vmul.f32 %v2844_v49, %v2834_v9  ;;  %v2836_v56 = vpop.f32.mrb[39].mxu0 }
 0x7c7   : > { %v5294_v26 = vadd.f32 %v2856_v12, %v2686_v47  ;;  %v2858_v63 = vmul.f32 %v2848_v24, %v2836_v56 }
 0x7c8   : > { %v5297_v40 = vadd.f32 %v2857_v29, %v2687_v35 }
 0x7c9   : > { %v5304_v62 = vadd.f32 %v2858_v63, %v2688_v33 }
 0x7ca   : > { %v3038_v43 = vpop.f32.mrb[32].mxu1 }
 0x7cb   : > { %v3069_v42 = vmul.f32 %v3062_v58, %v3038_v43  ;;  %v3040_v61 = vpop.f32.mrb[33].mxu1  ;;  %v3215_v31 = vpop.f32.mrb[40].mxu0 }
 0x7cc   : > { %v3070_v20 = vmul.f32 %v5300_v50, %v3040_v61  ;;  %v3216_v16 = vadd.f32 %v3215_v31, %v3148_v11  ;;  %v3042_v22 = vpop.f32.mrb[34].mxu1  ;;  %v3217_v57 = vpop.f32.mrb[41].mxu0 }
 0x7cd   : > { %v3077_v21 = vadd.f32 %v3069_v42, %v2859_v54  ;;  %v3071_v52 = vmul.f32 %v3062_v58, %v3042_v22  ;;  %v3218_v30 = vadd.f32 %v3217_v57, %v3148_v11  ;;  %v3044_v5 = vpop.f32.mrb[35].mxu1  ;;  %v3219_v23 = vpop.f32.mrb[42].mxu0 }
 0x7ce   : > { %v3078_v48 = vadd.f32 %v3070_v20, %v2860_v59  ;;  %v3234_v41 = vmax.f32 %v3216_v16, 0.0  ;;  %v3072_v49 = vmul.f32 %v5300_v50, %v3044_v5  ;;  %v3220_v44 = vadd.f32 %v3219_v23, %v3153_v1  ;;  %v3221_v10 = vpop.f32.mrb[43].mxu0  ;;  %v3163_v5 = vpop.permute.xlu1 %3162 }
 0x7cf   : > { %v3109_v24 = vadd.f32 %v3092_v45, %v3077_v21  ;;  %v3079_v27 = vadd.f32 %v3071_v52, %v2861_v38  ;;  %v3235_v13 = vmax.f32 %v3218_v30, 0.0  ;;  %v3222_v15 = vadd.f32 %v3221_v10, %v3153_v1 }
 0x7d0   : > { %v3110_v0 = vadd.f32 %v3092_v45, %v3078_v48  ;;  %v3080_v36 = vadd.f32 %v3072_v49, %v2862_v4  ;;  %v3236_v8 = vmax.f32 %v3220_v44, 0.0  ;;  %v3242_v17 = vmul.f32 %v3234_v41, %v4355_v25 }
 0x7d1   : > { %v3117_v3 = vmax.f32 %v3109_v24, 0.0  ;;  %v3111_v60 = vadd.f32 %v3097_v37, %v3079_v27  ;;  %v3237_v54 = vmax.f32 %v3222_v15, 0.0  ;;  %v3243_v19 = vmul.f32 %v3235_v13, %v4358_v28 }
 0x7d2   : > { %v3118_v51 = vmax.f32 %v3110_v0, 0.0  ;;  %v3112_v59 = vadd.f32 %v3097_v37, %v3080_v36  ;;  %v3244_v55 = vmul.f32 %v3236_v8, %v4355_v25  ;;  %v3048_v53 = vpop.f32.mrb[36].mxu1 }
 0x7d3   : > { %v3125_v38 = vmul.f32 %v3117_v3, %v4355_v25  ;;  %v3119_v11 = vmax.f32 %v3111_v60, 0.0  ;;  %v3245_v45 = vmul.f32 %v3237_v54, %v4358_v28  ;;  %v3073_v4 = vmul.f32 %v3062_v58, %v3048_v53  ;;  %v3050_v2 = vpop.f32.mrb[37].mxu1  ;;  %v3225_v32 = vpop.f32.mrb[44].mxu0 }
 0x7d4   : > { %v3126_v34 = vmul.f32 %v3118_v51, %v4358_v28  ;;  %v3120_v6 = vmax.f32 %v3112_v59, 0.0  ;;  %v3074_v47 = vmul.f32 %v5300_v50, %v3050_v2  ;;  %v3226_v12 = vadd.f32 %v3225_v32, %v3158_v14  ;;  %v3052_v9 = vpop.f32.mrb[38].mxu1  ;;  %v3227_v35 = vpop.f32.mrb[45].mxu0 }
 0x7d5   : > { %v3250_v37 = vadd.f32 %v3242_v17, %v3125_v38  ;;  %v3127_v29 = vmul.f32 %v3119_v11, %v4355_v25  ;;  %v3081_v56 = vadd.f32 %v3073_v4, %v2863_v46  ;;  %v3075_v33 = vmul.f32 %v3062_v58, %v3052_v9  ;;  %v3054_v63 = vpop.f32.mrb[39].mxu1  ;;  %v3229_v1 = vpop.f32.mrb[46].mxu0 }
 0x7d6   : > { %v3251_v43 = vadd.f32 %v3243_v19, %v3126_v34  ;;  %v3128_v42 = vmul.f32 %v3120_v6, %v4358_v28  ;;  %v3082_v61 = vadd.f32 %v3074_v47, %v5294_v26  ;;  %v3238_v31 = vmax.f32 %v3226_v12, 0.0  ;;  %v3231_v20 = vpop.f32.mrb[47].mxu0 }
 0x7d7   : > { %v3252_v16 = vadd.f32 %v3244_v55, %v3127_v29  ;;  %v3113_v22 = vadd.f32 %v5302_v39, %v3081_v56  ;;  %v3083_v57 = vadd.f32 %v3075_v33, %v5297_v40  ;;  %v3228_v21 = vadd.f32 %v3227_v35, %v3158_v14  ;;  %v3258_v55 = vld [vmem:[%s5446_s29] sm:$0x1]  ;;  %s4061_s29 = smov [#allocation8]  }
 0x7d8   : > { %v3253_v52 = vadd.f32 %v3245_v45, %v3128_v42  ;;  %v3114_v30 = vadd.f32 %v5302_v39, %v3082_v61  ;;  %v3246_v46 = vmul.f32 %v3238_v31, %v4355_v25  ;;  %v3076_v58 = vmul.f32 %v5300_v50, %v3054_v63  ;;  %s3980_s27 = sshll.u32 %s4061_s29, 4  ;;  %s3981_s27 = int_to_ptr.vmem [resolvable:$false] %s3980_s27 }
 0x7d9   : > { %v3259_v23 = vpack.c.bf16 %v3252_v16, %v3250_v37  ;;  %v3121_v48 = vmax.f32 %v3113_v22, 0.0  ;;  %v3115_v41 = vadd.f32 %v3107_v7, %v3083_v57  ;;  %v3239_v26 = vmax.f32 %v3228_v21, 0.0  ;;  %s3982_s0 = scalar_lea.vmem %s3981_s27, 64  ;;  %p3983_p13 = scmp.lt.s32.totalorder %s5345_s15, %s3981_s27 }
 0x7da   : > { %v3122_v49 = vmax.f32 %v3114_v30, 0.0  ;;  %v3084_v44 = vadd.f32 %v3076_v58, %v5304_v62  ;;  %v3230_v10 = vadd.f32 %v3229_v1, %v3163_v5  ;;  %v3232_v24 = vadd.f32 %v3231_v20, %v3163_v5  ;;  %p3984_p3 = scmp.lt.s32.totalorder %s3982_s0, %s3976_s22 }
 0x7db   : > { %v3129_v40 = vmul.f32 %v3121_v48, %v4355_v25  ;;  %v3123_v27 = vmax.f32 %v3115_v41, 0.0  ;;  %v3247_v13 = vmul.f32 %v3239_v26, %v4358_v28  ;;  %v3260_v39 = vpack.c.bf16 %v3253_v52, %v3251_v43 }
 0x7dc   : > { %v3130_v15 = vmul.f32 %v3122_v49, %v4358_v28  ;;  %v3116_v0 = vadd.f32 %v3107_v7, %v3084_v44  ;;  %v3240_v50 = vmax.f32 %v3230_v10, 0.0  ;;  %v3241_v36 = vmax.f32 %v3232_v24, 0.0  ;;  %p3985_p7 = por %p3984_p3, %p3983_p13 }
 0x7dd   : > { %v3254_v8 = vadd.f32 %v3246_v46, %v3129_v40  ;;  %v3131_v14 = vmul.f32 %v3123_v27, %v4355_v25  ;;  %3266 = vmatprep.subr.bf16.mxu0 %v3260_v39  ;;  %v5448_v6 = vlaneseq }
 0x7de   : > { %v3255_v3 = vadd.f32 %v3247_v13, %v3130_v15  ;;  %v3124_v17 = vmax.f32 %v3116_v0, 0.0  ;;  %v3248_v62 = vmul.f32 %v3240_v50, %v4355_v25  ;;  %3267 = vmatpush1.bf16.msra.mxu0 %v3259_v23  ;;  %v3249_v51 = vmul.f32 %v3241_v36, %v4358_v28  ;;  %p3986_p9 = pnand %p3985_p7, %p3979_p10 }
 0x7df   : > { %v4060_v25 = vmov 1966171168   ;;  %vm3327_vm6 = vcmp.lt.s32.totalorder %v5448_v6, 256 }
 0x7e0   : > { %v3256_v60 = vadd.f32 %v3248_v62, %v3131_v14  ;;  %v3132_v54 = vmul.f32 %v3124_v17, %v4358_v28  ;;  %v3311_v53 = vunpack.c.l.s4 %v4060_v25 }
 0x7e2   : > { %v3261_v19 = vpack.c.bf16 %v3256_v60, %v3254_v8  ;;  %v3257_v59 = vadd.f32 %v3249_v51, %v3132_v54  ;;  %v3312_v38 = vunpack.c.0.s8 %v3311_v53 }
 0x7e4   : > { %v3262_v7 = vpack.c.bf16 %v3257_v59, %v3255_v3  ;;  %v3315_v28 = vsub.s32 %v3312_v38, %v4345_v18 }
 0x7e6   : > { %3268 = vmatprep.subr.bf16.mxu0 %v3262_v7 }
 0x7e7   : > { %3269 = vmatpush1.bf16.msra.mxu0 %v3261_v19 }
 0x7ea   : > { %3536 = vmatmul.mubr.msk.bf16.vlgmr.msra.gmra.mrb[48].mxu0 %vm634_vm0, %v3258_v55 }
 0x8bd   : > { %v3300_v11 = vpop.f32.mrb[48].mxu0 }
 0x8be   : > { %v3302_v45 = vpop.f32.mrb[49].mxu0 }
 0x8bf   : > { %v3309_v4 = vcombine.low %v3300_v11, %v3302_v45  ;;  %v3304_v2 = vpop.f32.mrb[50].mxu0 }
 0x8c0   : > { %v3305_v32 = vpop.f32.mrb[51].mxu0 }
 0x8c1   : > { %v3316_v34 = vrot.slane %v3309_v4, %v3315_v28 }
 0x8c3   : > { %v3323_v47 = vrot.slane %v3316_v34, %v3315_v28 }
 0x8c5   : > { %3329 = vst.msk [vmem:[%s555_s14] sm:$0x3] %vm3327_vm6, %v3323_v47 }
 0x8c6   : > { %3989 = shalt.err (!%p3986_p9)
}
 0x8c7   : > { %s3990_s6 = scalar_lea.hbm %s5343_s18, 32  ;;  %s3994_s23 = scalar_lea.hbm %s5449_s28, 64 }
 0x8c8   : > { %p3991_p2 = scmp.ne.s32.totalorder %s5343_s18, %s3990_s6  ;;  %p3995_p11 = scmp.lt.u32.totalorder %s5343_s18, %s5449_s28 }
 0x8c9   : > { %p3996_p1 = scmp.lt.u32.totalorder %s3994_s23, %s3990_s6  ;;  %p3998_p6 = scmp.lt.u32.totalorder %s3990_s6, %s5343_s18 }
 0x8ca   : > { %p3992_p5 = pnand %p3991_p2, %p4233_p12 }
 0x8cb   : > { %p3997_p4 = por %p3996_p1, %p3995_p11 }
 0x8cc   : > { %p3993_p0 = pneg %p3992_p5 }
 0x8cd   : > { %p3999_p8 = por %p3998_p6, %p3997_p4 }
 0x8cf   : > { %p4000_p10 = pnand %p3999_p8, %p3993_p0 }
 0x8d1   : > { %4003 = shalt.err (!%p4000_p10)
}
 0x8d2   : > { %3552 = dma.vmem_to_hbm [thread:$0]  (%p4233_p12), %s5345_s15, 32, %s5343_s18, %s3331_s7  }
 0x8d3 PF: > { %s5450_s0 = sld [smem:[#allocation12_spill]]  ;;  %s5451_s22 = sld [smem:[#allocation13_spill]] }
 0x8d4   : > { %p5453_p3 = scmp.ge.s32.totalorder %s4046_s21, 2 }
 0x8d9   : > { %s3357_s27 = sand.u32 1, %s5450_s0   ;;  %p5452_p13 = scmp.ne.s32.totalorder %s5451_s22, 0 }
 0x8da   : > { %s3358_s12 = scalar_lea.sflag [#allocation5], %s3357_s27 }
 0x8db   : > { %p3563_p7 = pnand %p5453_p3, %p5452_p13 }
 0x8dd   : > { %4029 = dma.done.wait (!%p3563_p7), %s3358_s12, 32  }
 0x8de   : > { %4031 = vsyncadd (!%p3563_p7), %s3358_s12, 4294967264  ;;  %s5454_s21 = sld [smem:[#allocation14_spill]]  ;;  %s5455_s18 = smov %s4038_s19 }
 0x8df   : > { %s5456_s19 = smov %s4042_s20  ;;  %s5457_s20 = smov %s4229_s25 }
 0x8e4   : > { %p29_p9 = scmp.ge.s32.totalorder %s5454_s21, 4  }
 0x8e6   :  { %31 = sbr.rel (!%p29_p9) target bundleno = 13 (0xd), region = 143 }
 0x8ed   :  { %3363 = vsyncpa [#allocation4], 1 }
 0x8ee   :  { %3365 = vsyncpa [#allocation4 + $0x1], 1 }
 0x8ef   :  { %3366 = vsyncpa [#allocation7], 1 }
 0x8f0   :  { %3367 = vsyncpa [#allocation5], 1 }
 0x8f1   :  { %3369 = vsyncpa [#allocation5 + $0x1], 1 }

</bundles_post_ra>
